<compile_context>
chip_gen: v7x
topology: tpu7x:2x2x1
jax: 0.10.0
libtpu: 0.0.40
codegen_flags: <defaults>
</compile_context>

<pallas_src>
import functools

import jax
import jax.numpy as jnp
from jax.experimental import pallas as pl
from jax.experimental.pallas import tpu as pltpu

BN_EPS = 1e-5
LANE = 128                        # lane width: channel dims padded to this
_VMEM_LIMIT = 48 * 1024 * 1024    # scoped VMEM budget, < 64 MiB (v7x physical)


# ----------------------------------------------------------------------------
# small padding helpers
# ----------------------------------------------------------------------------
def _round_up(n, m):
    return ((n + m - 1) // m) * m


def _pad_last(x, target):
    c = x.shape[-1]
    if c == target:
        return x
    return jnp.pad(x, ((0, 0),) * (x.ndim - 1) + ((0, target - c),))


def _pad_rows(x2, target):
    m = x2.shape[0]
    if m == target:
        return x2
    return jnp.pad(x2, ((0, target - m), (0, 0)))


# ----------------------------------------------------------------------------
# Kernel 1: 3x3 stride-1 conv, one output row per grid step (no im2col)
# ----------------------------------------------------------------------------
def _conv3x3_row_kernel(x0_ref, x1_ref, x2_ref, w_ref, b_ref, o_ref, *, wout):
    cout = o_ref.shape[-1]
    # bias folded into the f32 accumulator init
    acc = jnp.broadcast_to(b_ref[...], (wout, cout)).astype(jnp.float32)
    rows = (x0_ref, x1_ref, x2_ref)
    for dh in range(3):
        for dw in range(3):
            tap = rows[dh][0, 0, pl.ds(dw, wout), :]            # (wout, Cin) bf16
            acc = acc + jnp.dot(tap, w_ref[dh, dw, :, :],
                                preferred_element_type=jnp.float32)
    o_ref[0, 0, :, :] = acc.astype(o_ref.dtype)


def conv3x3_nhwc(x, w, b):
    """3x3 / stride 1 / pad 1 conv.  x: (N,H,W,Cp_in) bf16 channel-padded.
    w: PyTorch layout (Cout, Cin, 3, 3); b: (Cout,)."""
    N, H, W, cp_in = x.shape
    cout, cin = w.shape[0], w.shape[1]
    cp_out = _round_up(cout, LANE)

    wk = jnp.transpose(w, (2, 3, 1, 0))                          # (3,3,Cin,Cout)
    wk = jnp.pad(wk, ((0, 0), (0, 0), (0, cp_in - cin), (0, cp_out - cout)))
    wk = wk.astype(jnp.bfloat16)
    bk = jnp.pad(b, (0, cp_out - cout)).astype(jnp.float32).reshape(1, cp_out)

    xp = jnp.pad(x, ((0, 0), (1, 1), (1, 1), (0, 0)))
    wp = W + 2

    def x_spec(dh):
        return pl.BlockSpec((1, 1, wp, cp_in),
                            lambda n, h, _dh=dh: (n, h + _dh, 0, 0))

    return pl.pallas_call(
        functools.partial(_conv3x3_row_kernel, wout=W),
        out_shape=jax.ShapeDtypeStruct((N, H, W, cp_out), jnp.bfloat16),
        grid=(N, H),
        in_specs=[x_spec(0), x_spec(1), x_spec(2),
                  pl.BlockSpec((3, 3, cp_in, cp_out), lambda n, h: (0, 0, 0, 0)),
                  pl.BlockSpec((1, cp_out), lambda n, h: (0, 0))],
        out_specs=pl.BlockSpec((1, 1, W, cp_out), lambda n, h: (n, h, 0, 0)),
        compiler_params=pltpu.CompilerParams(
            dimension_semantics=("parallel", "parallel"),
            vmem_limit_bytes=_VMEM_LIMIT),
    )(xp, xp, xp, wk, bk)


# ----------------------------------------------------------------------------
# Kernel 2: K-tiled matmul + bias (used by 1x1 conv and stride-2 downsample)
# ----------------------------------------------------------------------------
def _matmul_bias_kernel(a_ref, w_ref, b_ref, o_ref, acc_ref):
    k = pl.program_id(1)

    @pl.when(k == 0)
    def _():
        acc_ref[...] = jnp.broadcast_to(b_ref[...], acc_ref.shape)

    acc_ref[...] += jnp.dot(a_ref[...], w_ref[...],
                            preferred_element_type=jnp.float32)

    @pl.when(k == pl.num_programs(1) - 1)
    def _():
        o_ref[...] = acc_ref[...].astype(o_ref.dtype)


def matmul_bias(a, w, b, *, tile_m=256):
    """(M,K) bf16 @ (K,Co) bf16 + b(1,Co) f32 -> (M,Co) bf16. K-tiled f32 acc."""
    M, K = a.shape
    _, co = w.shape
    if K % 512 == 0:
        tile_k = 512
    elif K % 256 == 0:
        tile_k = 256
    else:
        tile_k = K
    mp = _round_up(M, tile_m)
    a = _pad_rows(a, mp)
    out = pl.pallas_call(
        _matmul_bias_kernel,
        out_shape=jax.ShapeDtypeStruct((mp, co), jnp.bfloat16),
        grid=(mp // tile_m, K // tile_k),
        in_specs=[pl.BlockSpec((tile_m, tile_k), lambda i, k: (i, k)),
                  pl.BlockSpec((tile_k, co), lambda i, k: (k, 0)),
                  pl.BlockSpec((1, co), lambda i, k: (0, 0))],
        out_specs=pl.BlockSpec((tile_m, co), lambda i, k: (i, 0)),
        scratch_shapes=[pltpu.VMEM((tile_m, co), jnp.float32)],
        compiler_params=pltpu.CompilerParams(
            dimension_semantics=("parallel", "arbitrary"),
            vmem_limit_bytes=_VMEM_LIMIT),
    )(a, w, b)
    return out[:M]


def conv1x1_nhwc(x, w, b):
    """1x1 conv (nin_shortcut). w: (Cout, Cin, 1, 1)."""
    N, H, W, cp_in = x.shape
    cout, cin = w.shape[0], w.shape[1]
    cp_out = _round_up(cout, LANE)
    wk = jnp.pad(w.reshape(cout, cin).T,
                 ((0, cp_in - cin), (0, cp_out - cout))).astype(jnp.bfloat16)
    bk = jnp.pad(b, (0, cp_out - cout)).astype(jnp.float32).reshape(1, cp_out)
    out = matmul_bias(x.reshape(N * H * W, cp_in), wk, bk)
    return out.reshape(N, H, W, cp_out)


def downsample_conv_s2(x, w, b):
    """Downsample: F.pad(x,(0,1,0,1)) then 3x3 stride-2 conv.
    Uses im2col (only 2.25x inflation at the reduced output resolution) plus
    the K-tiled matmul kernel."""
    N, H, W, cp_in = x.shape
    cout, cin = w.shape[0], w.shape[1]
    cp_out = _round_up(cout, LANE)
    xp = jnp.pad(x, ((0, 0), (0, 1), (0, 1), (0, 0)))
    hout, wout = H // 2, W // 2
    cols = []
    for dh in range(3):
        for dw in range(3):
            cols.append(xp[:, dh:dh + 2 * hout:2, dw:dw + 2 * wout:2, :])
    patches = jnp.concatenate(cols, axis=-1).reshape(N * hout * wout, 9 * cp_in)
    wk = jnp.transpose(w, (2, 3, 1, 0))
    wk = jnp.pad(wk, ((0, 0), (0, 0), (0, cp_in - cin), (0, cp_out - cout)))
    wk = wk.reshape(9 * cp_in, cp_out).astype(jnp.bfloat16)
    bk = jnp.pad(b, (0, cp_out - cout)).astype(jnp.float32).reshape(1, cp_out)
    out = matmul_bias(patches, wk, bk)
    return out.reshape(N, hout, wout, cp_out)


# ----------------------------------------------------------------------------
# Kernel 3: BatchNorm (training-mode batch stats) + SiLU, two tiled passes
# ----------------------------------------------------------------------------
def _bn_stats_kernel(x_ref, sum_ref, ssq_ref):
    @pl.when(pl.program_id(0) == 0)
    def _():
        sum_ref[...] = jnp.zeros_like(sum_ref)
        ssq_ref[...] = jnp.zeros_like(ssq_ref)

    x = x_ref[...].astype(jnp.float32)
    sum_ref[...] += jnp.sum(x, axis=0, keepdims=True)
    ssq_ref[...] += jnp.sum(x * x, axis=0, keepdims=True)


def _bn_apply_silu_kernel(x_ref, scale_ref, shift_ref, o_ref):
    y = x_ref[...].astype(jnp.float32) * scale_ref[...] + shift_ref[...]
    sig = pl.reciprocal(1.0 + jnp.exp(-y), approx=True)     # EUP exp + vrcp
    o_ref[...] = (y * sig).astype(o_ref.dtype)


def bn_silu(x, gamma, beta, *, tile_m=256):
    """x: (N,H,W,Cp) bf16 channel-padded; gamma/beta: real-size (C,) params.
    Global per-channel statistics are preserved across M tiles (two passes)."""
    N, H, W, cp = x.shape
    c = gamma.shape[0]
    M = N * H * W
    mp = _round_up(M, tile_m)
    x2 = _pad_rows(x.reshape(M, cp), mp)      # zero rows: do not perturb sums
    g = jnp.pad(gamma, (0, cp - c)).astype(jnp.float32).reshape(1, cp)
    bt = jnp.pad(beta, (0, cp - c)).astype(jnp.float32).reshape(1, cp)

    s, ssq = pl.pallas_call(
        _bn_stats_kernel,
        out_shape=(jax.ShapeDtypeStruct((1, cp), jnp.float32),
                   jax.ShapeDtypeStruct((1, cp), jnp.float32)),
        grid=(mp // tile_m,),
        in_specs=[pl.BlockSpec((tile_m, cp), lambda i: (i, 0))],
        out_specs=(pl.BlockSpec((1, cp), lambda i: (0, 0)),
                   pl.BlockSpec((1, cp), lambda i: (0, 0))),
        compiler_params=pltpu.CompilerParams(
            dimension_semantics=("arbitrary",),
            vmem_limit_bytes=_VMEM_LIMIT),
    )(x2)

    mean = s / M                              # true element count
    var = ssq / M - mean * mean               # biased variance (torch train mode)
    scale = g * jax.lax.rsqrt(var + BN_EPS)
    shift = bt - mean * scale

    out = pl.pallas_call(
        _bn_apply_silu_kernel,
        out_shape=jax.ShapeDtypeStruct((mp, cp), jnp.bfloat16),
        grid=(mp // tile_m,),
        in_specs=[pl.BlockSpec((tile_m, cp), lambda i: (i, 0)),
                  pl.BlockSpec((1, cp), lambda i: (0, 0)),
                  pl.BlockSpec((1, cp), lambda i: (0, 0))],
        out_specs=pl.BlockSpec((tile_m, cp), lambda i: (i, 0)),
        compiler_params=pltpu.CompilerParams(
            dimension_semantics=("parallel",),
            vmem_limit_bytes=_VMEM_LIMIT),
    )(x2, scale, shift)
    return out[:M].reshape(N, H, W, cp)


# ----------------------------------------------------------------------------
# Encoder building blocks
# ----------------------------------------------------------------------------
def resnet_block(x, p):
    h = bn_silu(x, p["norm1_g"], p["norm1_b"])
    h = conv3x3_nhwc(h, p["conv1_w"], p["conv1_b"])
    h = bn_silu(h, p["norm2_g"], p["norm2_b"])
    # dropout(p=0.0) == identity
    h = conv3x3_nhwc(h, p["conv2_w"], p["conv2_b"])
    if "nin_w" in p:
        x = conv1x1_nhwc(x, p["nin_w"], p["nin_b"])
    return x + h            # residual add (bf16, identically channel-padded)


def downsample(x, p):
    # taming-transformers Downsample: F.pad(x,(0,1,0,1)) then 3x3 stride-2 conv.
    return downsample_conv_s2(x, p["conv_w"], p["conv_b"])


def encoder_forward(x_nchw, params):
    x = jnp.transpose(x_nchw, (0, 2, 3, 1)).astype(jnp.bfloat16)   # NCHW->NHWC
    x = _pad_last(x, _round_up(x.shape[-1], LANE))                 # pad channels
    h = conv3x3_nhwc(x, params["conv_in_w"], params["conv_in_b"])
    for blk in params["blocks"]:
        if blk["type"] == "res":
            h = resnet_block(h, blk)
        else:
            h = downsample(h, blk)
    h = resnet_block(h, params["block_1"])
    h = resnet_block(h, params["block_2"])
    h = bn_silu(h, params["norm_out_g"], params["norm_out_b"])
    h = conv3x3_nhwc(h, params["conv_out_w"], params["conv_out_b"])
    out_ch = params["conv_out_w"].shape[0]
    h = h[..., :out_ch].astype(jnp.float32)                        # drop pad
    return jnp.transpose(h, (0, 3, 1, 2))                          # NHWC->NCHW


# ----------------------------------------------------------------------------
# Deterministic parameter init (mirrors the torch module's __init__ shapes)
# ----------------------------------------------------------------------------
def _init_conv(key, cout, cin, k):
    k1, k2 = jax.random.split(key)
    fan_in = cin * k * k
    bound = 1.0 / (fan_in ** 0.5)
    w = jax.random.uniform(k1, (cout, cin, k, k), jnp.float32, -bound, bound)
    b = jax.random.uniform(k2, (cout,), jnp.float32, -bound, bound)
    return w, b


def init_encoder_params(key, in_channels, ch, ch_mult, num_res_blocks,
                        z_channels, double_z):
    keys = iter(jax.random.split(key, 256))

    def nk():
        return next(keys)

    def bn(c):  # PyTorch BatchNorm2d default affine init
        return jnp.ones((c,), jnp.float32), jnp.zeros((c,), jnp.float32)

    def res_params(cin, cout):
        p = {"type": "res"}
        p["norm1_g"], p["norm1_b"] = bn(cin)
        p["conv1_w"], p["conv1_b"] = _init_conv(nk(), cout, cin, 3)
        p["norm2_g"], p["norm2_b"] = bn(cout)
        p["conv2_w"], p["conv2_b"] = _init_conv(nk(), cout, cout, 3)
        if cin != cout:
            p["nin_w"], p["nin_b"] = _init_conv(nk(), cout, cin, 1)
        return p

    params = {}
    params["conv_in_w"], params["conv_in_b"] = _init_conv(nk(), ch, in_channels, 3)
    in_ch_mult = (1,) + tuple(ch_mult)
    num_resolutions = len(ch_mult)
    blocks = []
    block_in = ch
    for i_level in range(num_resolutions):
        block_in = ch * in_ch_mult[i_level]
        block_out = ch * ch_mult[i_level]
        for _ in range(num_res_blocks):
            blocks.append(res_params(block_in, block_out))
            block_in = block_out
        if i_level != num_resolutions - 1:
            w, b = _init_conv(nk(), block_in, block_in, 3)
            blocks.append({"type": "down", "conv_w": w, "conv_b": b})
    params["blocks"] = blocks
    params["block_1"] = res_params(block_in, block_in)
    params["block_2"] = res_params(block_in, block_in)
    params["norm_out_g"], params["norm_out_b"] = bn(block_in)
    out_ch = 2 * z_channels if double_z else z_channels
    params["conv_out_w"], params["conv_out_b"] = _init_conv(nk(), out_ch, block_in, 3)
    return params


# ----------------------------------------------------------------------------
if __name__ == "__main__":
    key = jax.random.PRNGKey(0)
    kx, kp = jax.random.split(key)

    # Small config consistent with the module: 2 resolutions, 1 res block each.
    in_channels, ch, ch_mult, num_res_blocks = 4, 16, (1, 2), 1
    z_channels, double_z = 4, True
    batch, spatial = 2, 16

    x = jax.random.normal(kx, (batch, in_channels, spatial, spatial), jnp.float32)
    params = init_encoder_params(kp, in_channels, ch, ch_mult, num_res_blocks,
                                 z_channels, double_z)

    fwd = jax.jit(functools.partial(encoder_forward, params=params))
    out = fwd(x)
    jax.block_until_ready(out)

    # one downsample: 16 -> 8 spatial; channels = 2 * z_channels
    assert out.shape == (batch, 2 * z_channels, spatial // 2, spatial // 2), out.shape
    assert bool(jnp.all(jnp.isfinite(out)))
    print("KERNEL_OK")
</pallas_src>

<mosaic_0001>
module attributes {stable_mosaic.version = 11 : i64} {
  func.func @_conv3x3_row_kernel(%arg0: i32, %arg1: i32, %arg2: memref<1x1x18x128xbf16, #tpu.memory_space<vmem>>, %arg3: memref<1x1x18x128xbf16, #tpu.memory_space<vmem>>, %arg4: memref<1x1x18x128xbf16, #tpu.memory_space<vmem>>, %arg5: memref<3x3x128x128xbf16, #tpu.memory_space<vmem>>, %arg6: memref<1x128xf32, #tpu.memory_space<vmem>>, %arg7: memref<1x1x16x128xbf16, #tpu.memory_space<vmem>>) attributes {dimension_semantics = [#tpu.dimension_semantics<parallel>, #tpu.dimension_semantics<parallel>], iteration_bounds = array<i64: 2, 16>, scalar_prefetch = 0 : i64, scratch_operands = 0 : i64, tpu.core_type = #tpu.core_type<tc>, window_params = [{transform_indices = @transform_0, window_bounds = array<i64: 1, 1, 18, 128>}, {transform_indices = @transform_1, window_bounds = array<i64: 1, 1, 18, 128>}, {transform_indices = @transform_2, window_bounds = array<i64: 1, 1, 18, 128>}, {pipeline_mode = #tpu.pipeline_mode<synchronous>, transform_indices = @transform_3, window_bounds = array<i64: 3, 3, 128, 128>}, {pipeline_mode = #tpu.pipeline_mode<synchronous>, transform_indices = @transform_4, window_bounds = array<i64: 1, 128>}, {transform_indices = @transform_5, window_bounds = array<i64: 1, 1, 16, 128>}]} {
    %c0 = arith.constant 0 : index
    %c0_0 = arith.constant 0 : index
    %0 = vector.load %arg6[%c0, %c0_0] : memref<1x128xf32, #tpu.memory_space<vmem>>, vector<1x128xf32>
    %1 = vector.shape_cast %0 : vector<1x128xf32> to vector<1x128xf32>
    %2 = vector.broadcast %1 : vector<1x128xf32> to vector<16x128xf32>
    %c0_1 = arith.constant 0 : index
    %c0_2 = arith.constant 0 : index
    %c0_3 = arith.constant 0 : index
    %c0_4 = arith.constant 0 : index
    %3 = vector.load %arg2[%c0_1, %c0_2, %c0_3, %c0_4] : memref<1x1x18x128xbf16, #tpu.memory_space<vmem>>, vector<1x1x16x128xbf16>
    %4 = vector.shape_cast %3 : vector<1x1x16x128xbf16> to vector<16x128xbf16>
    %c0_5 = arith.constant 0 : index
    %c0_6 = arith.constant 0 : index
    %c0_7 = arith.constant 0 : index
    %c0_8 = arith.constant 0 : index
    %5 = vector.load %arg5[%c0_5, %c0_6, %c0_7, %c0_8] : memref<3x3x128x128xbf16, #tpu.memory_space<vmem>>, vector<1x1x128x128xbf16>
    %6 = vector.shape_cast %5 : vector<1x1x128x128xbf16> to vector<128x128xbf16>
    %cst = arith.constant dense<0.000000e+00> : vector<16x128xf32>
    %7 = tpu.matmul %4, %6, %cst {dimension_numbers = #tpu.dot_dimension_numbers<[1], [0], [0], [1], [0, 0, 1, 1], [], []>} : vector<16x128xbf16>, vector<128x128xbf16>, vector<16x128xf32> -> vector<16x128xf32>
    %8 = arith.addf %2, %7 : vector<16x128xf32>
    %c0_9 = arith.constant 0 : index
    %c0_10 = arith.constant 0 : index
    %c1 = arith.constant 1 : index
    %c0_11 = arith.constant 0 : index
    %9 = vector.load %arg2[%c0_9, %c0_10, %c1, %c0_11] : memref<1x1x18x128xbf16, #tpu.memory_space<vmem>>, vector<1x1x16x128xbf16>
    %10 = vector.shape_cast %9 : vector<1x1x16x128xbf16> to vector<16x128xbf16>
    %c0_12 = arith.constant 0 : index
    %c1_13 = arith.constant 1 : index
    %c0_14 = arith.constant 0 : index
    %c0_15 = arith.constant 0 : index
    %11 = vector.load %arg5[%c0_12, %c1_13, %c0_14, %c0_15] : memref<3x3x128x128xbf16, #tpu.memory_space<vmem>>, vector<1x1x128x128xbf16>
    %12 = vector.shape_cast %11 : vector<1x1x128x128xbf16> to vector<128x128xbf16>
    %cst_16 = arith.constant dense<0.000000e+00> : vector<16x128xf32>
    %13 = tpu.matmul %10, %12, %cst_16 {dimension_numbers = #tpu.dot_dimension_numbers<[1], [0], [0], [1], [0, 0, 1, 1], [], []>} : vector<16x128xbf16>, vector<128x128xbf16>, vector<16x128xf32> -> vector<16x128xf32>
    %14 = arith.addf %8, %13 : vector<16x128xf32>
    %c0_17 = arith.constant 0 : index
    %c0_18 = arith.constant 0 : index
    %c2 = arith.constant 2 : index
    %c0_19 = arith.constant 0 : index
    %15 = vector.load %arg2[%c0_17, %c0_18, %c2, %c0_19] : memref<1x1x18x128xbf16, #tpu.memory_space<vmem>>, vector<1x1x16x128xbf16>
    %16 = vector.shape_cast %15 : vector<1x1x16x128xbf16> to vector<16x128xbf16>
    %c0_20 = arith.constant 0 : index
    %c2_21 = arith.constant 2 : index
    %c0_22 = arith.constant 0 : index
    %c0_23 = arith.constant 0 : index
    %17 = vector.load %arg5[%c0_20, %c2_21, %c0_22, %c0_23] : memref<3x3x128x128xbf16, #tpu.memory_space<vmem>>, vector<1x1x128x128xbf16>
    %18 = vector.shape_cast %17 : vector<1x1x128x128xbf16> to vector<128x128xbf16>
    %cst_24 = arith.constant dense<0.000000e+00> : vector<16x128xf32>
    %19 = tpu.matmul %16, %18, %cst_24 {dimension_numbers = #tpu.dot_dimension_numbers<[1], [0], [0], [1], [0, 0, 1, 1], [], []>} : vector<16x128xbf16>, vector<128x128xbf16>, vector<16x128xf32> -> vector<16x128xf32>
    %20 = arith.addf %14, %19 : vector<16x128xf32>
    %c0_25 = arith.constant 0 : index
    %c0_26 = arith.constant 0 : index
    %c0_27 = arith.constant 0 : index
    %c0_28 = arith.constant 0 : index
    %21 = vector.load %arg3[%c0_25, %c0_26, %c0_27, %c0_28] : memref<1x1x18x128xbf16, #tpu.memory_space<vmem>>, vector<1x1x16x128xbf16>
    %22 = vector.shape_cast %21 : vector<1x1x16x128xbf16> to vector<16x128xbf16>
    %c1_29 = arith.constant 1 : index
    %c0_30 = arith.constant 0 : index
    %c0_31 = arith.constant 0 : index
    %c0_32 = arith.constant 0 : index
    %23 = vector.load %arg5[%c1_29, %c0_30, %c0_31, %c0_32] : memref<3x3x128x128xbf16, #tpu.memory_space<vmem>>, vector<1x1x128x128xbf16>
    %24 = vector.shape_cast %23 : vector<1x1x128x128xbf16> to vector<128x128xbf16>
    %cst_33 = arith.constant dense<0.000000e+00> : vector<16x128xf32>
    %25 = tpu.matmul %22, %24, %cst_33 {dimension_numbers = #tpu.dot_dimension_numbers<[1], [0], [0], [1], [0, 0, 1, 1], [], []>} : vector<16x128xbf16>, vector<128x128xbf16>, vector<16x128xf32> -> vector<16x128xf32>
    %26 = arith.addf %20, %25 : vector<16x128xf32>
    %c0_34 = arith.constant 0 : index
    %c0_35 = arith.constant 0 : index
    %c1_36 = arith.constant 1 : index
    %c0_37 = arith.constant 0 : index
    %27 = vector.load %arg3[%c0_34, %c0_35, %c1_36, %c0_37] : memref<1x1x18x128xbf16, #tpu.memory_space<vmem>>, vector<1x1x16x128xbf16>
    %28 = vector.shape_cast %27 : vector<1x1x16x128xbf16> to vector<16x128xbf16>
    %c1_38 = arith.constant 1 : index
    %c1_39 = arith.constant 1 : index
    %c0_40 = arith.constant 0 : index
    %c0_41 = arith.constant 0 : index
    %29 = vector.load %arg5[%c1_38, %c1_39, %c0_40, %c0_41] : memref<3x3x128x128xbf16, #tpu.memory_space<vmem>>, vector<1x1x128x128xbf16>
    %30 = vector.shape_cast %29 : vector<1x1x128x128xbf16> to vector<128x128xbf16>
    %cst_42 = arith.constant dense<0.000000e+00> : vector<16x128xf32>
    %31 = tpu.matmul %28, %30, %cst_42 {dimension_numbers = #tpu.dot_dimension_numbers<[1], [0], [0], [1], [0, 0, 1, 1], [], []>} : vector<16x128xbf16>, vector<128x128xbf16>, vector<16x128xf32> -> vector<16x128xf32>
    %32 = arith.addf %26, %31 : vector<16x128xf32>
    %c0_43 = arith.constant 0 : index
    %c0_44 = arith.constant 0 : index
    %c2_45 = arith.constant 2 : index
    %c0_46 = arith.constant 0 : index
    %33 = vector.load %arg3[%c0_43, %c0_44, %c2_45, %c0_46] : memref<1x1x18x128xbf16, #tpu.memory_space<vmem>>, vector<1x1x16x128xbf16>
    %34 = vector.shape_cast %33 : vector<1x1x16x128xbf16> to vector<16x128xbf16>
    %c1_47 = arith.constant 1 : index
    %c2_48 = arith.constant 2 : index
    %c0_49 = arith.constant 0 : index
    %c0_50 = arith.constant 0 : index
    %35 = vector.load %arg5[%c1_47, %c2_48, %c0_49, %c0_50] : memref<3x3x128x128xbf16, #tpu.memory_space<vmem>>, vector<1x1x128x128xbf16>
    %36 = vector.shape_cast %35 : vector<1x1x128x128xbf16> to vector<128x128xbf16>
    %cst_51 = arith.constant dense<0.000000e+00> : vector<16x128xf32>
    %37 = tpu.matmul %34, %36, %cst_51 {dimension_numbers = #tpu.dot_dimension_numbers<[1], [0], [0], [1], [0, 0, 1, 1], [], []>} : vector<16x128xbf16>, vector<128x128xbf16>, vector<16x128xf32> -> vector<16x128xf32>
    %38 = arith.addf %32, %37 : vector<16x128xf32>
    %c0_52 = arith.constant 0 : index
    %c0_53 = arith.constant 0 : index
    %c0_54 = arith.constant 0 : index
    %c0_55 = arith.constant 0 : index
    %39 = vector.load %arg4[%c0_52, %c0_53, %c0_54, %c0_55] : memref<1x1x18x128xbf16, #tpu.memory_space<vmem>>, vector<1x1x16x128xbf16>
    %40 = vector.shape_cast %39 : vector<1x1x16x128xbf16> to vector<16x128xbf16>
    %c2_56 = arith.constant 2 : index
    %c0_57 = arith.constant 0 : index
    %c0_58 = arith.constant 0 : index
    %c0_59 = arith.constant 0 : index
    %41 = vector.load %arg5[%c2_56, %c0_57, %c0_58, %c0_59] : memref<3x3x128x128xbf16, #tpu.memory_space<vmem>>, vector<1x1x128x128xbf16>
    %42 = vector.shape_cast %41 : vector<1x1x128x128xbf16> to vector<128x128xbf16>
    %cst_60 = arith.constant dense<0.000000e+00> : vector<16x128xf32>
    %43 = tpu.matmul %40, %42, %cst_60 {dimension_numbers = #tpu.dot_dimension_numbers<[1], [0], [0], [1], [0, 0, 1, 1], [], []>} : vector<16x128xbf16>, vector<128x128xbf16>, vector<16x128xf32> -> vector<16x128xf32>
    %44 = arith.addf %38, %43 : vector<16x128xf32>
    %c0_61 = arith.constant 0 : index
    %c0_62 = arith.constant 0 : index
    %c1_63 = arith.constant 1 : index
    %c0_64 = arith.constant 0 : index
    %45 = vector.load %arg4[%c0_61, %c0_62, %c1_63, %c0_64] : memref<1x1x18x128xbf16, #tpu.memory_space<vmem>>, vector<1x1x16x128xbf16>
    %46 = vector.shape_cast %45 : vector<1x1x16x128xbf16> to vector<16x128xbf16>
    %c2_65 = arith.constant 2 : index
    %c1_66 = arith.constant 1 : index
    %c0_67 = arith.constant 0 : index
    %c0_68 = arith.constant 0 : index
    %47 = vector.load %arg5[%c2_65, %c1_66, %c0_67, %c0_68] : memref<3x3x128x128xbf16, #tpu.memory_space<vmem>>, vector<1x1x128x128xbf16>
    %48 = vector.shape_cast %47 : vector<1x1x128x128xbf16> to vector<128x128xbf16>
    %cst_69 = arith.constant dense<0.000000e+00> : vector<16x128xf32>
    %49 = tpu.matmul %46, %48, %cst_69 {dimension_numbers = #tpu.dot_dimension_numbers<[1], [0], [0], [1], [0, 0, 1, 1], [], []>} : vector<16x128xbf16>, vector<128x128xbf16>, vector<16x128xf32> -> vector<16x128xf32>
    %50 = arith.addf %44, %49 : vector<16x128xf32>
    %c0_70 = arith.constant 0 : index
    %c0_71 = arith.constant 0 : index
    %c2_72 = arith.constant 2 : index
    %c0_73 = arith.constant 0 : index
    %51 = vector.load %arg4[%c0_70, %c0_71, %c2_72, %c0_73] : memref<1x1x18x128xbf16, #tpu.memory_space<vmem>>, vector<1x1x16x128xbf16>
    %52 = vector.shape_cast %51 : vector<1x1x16x128xbf16> to vector<16x128xbf16>
    %c2_74 = arith.constant 2 : index
    %c2_75 = arith.constant 2 : index
    %c0_76 = arith.constant 0 : index
    %c0_77 = arith.constant 0 : index
    %53 = vector.load %arg5[%c2_74, %c2_75, %c0_76, %c0_77] : memref<3x3x128x128xbf16, #tpu.memory_space<vmem>>, vector<1x1x128x128xbf16>
    %54 = vector.shape_cast %53 : vector<1x1x128x128xbf16> to vector<128x128xbf16>
    %cst_78 = arith.constant dense<0.000000e+00> : vector<16x128xf32>
    %55 = tpu.matmul %52, %54, %cst_78 {dimension_numbers = #tpu.dot_dimension_numbers<[1], [0], [0], [1], [0, 0, 1, 1], [], []>} : vector<16x128xbf16>, vector<128x128xbf16>, vector<16x128xf32> -> vector<16x128xf32>
    %56 = arith.addf %50, %55 : vector<16x128xf32>
    %57 = arith.truncf %56 : vector<16x128xf32> to vector<16x128xbf16>
    %c0_79 = arith.constant 0 : index
    %c0_80 = arith.constant 0 : index
    %c0_81 = arith.constant 0 : index
    %c0_82 = arith.constant 0 : index
    %58 = vector.load %arg7[%c0_79, %c0_80, %c0_81, %c0_82] : memref<1x1x16x128xbf16, #tpu.memory_space<vmem>>, vector<1x1x16x128xbf16>
    %59 = vector.shape_cast %58 : vector<1x1x16x128xbf16> to vector<16x128xbf16>
    %60 = vector.shape_cast %57 : vector<16x128xbf16> to vector<1x1x16x128xbf16>
    tpu.vector_store %arg7[%c0_79, %c0_80, %c0_81, %c0_82], %60 {strides = array<i32>} : memref<1x1x16x128xbf16, #tpu.memory_space<vmem>>, vector<1x1x16x128xbf16>,
    return
  }
  func.func @transform_0(%arg0: i32, %arg1: i32) -> (i32, i32, i32, i32) {
    %c0_i32 = arith.constant 0 : i32
    %0 = arith.addi %arg1, %c0_i32 : i32
    %c0_i32_0 = arith.constant 0 : i32
    %c0_i32_1 = arith.constant 0 : i32
    %c0_i32_2 = arith.constant 0 : i32
    return %arg0, %0, %c0_i32_0, %c0_i32_1 : i32, i32, i32, i32
  }
  func.func @transform_1(%arg0: i32, %arg1: i32) -> (i32, i32, i32, i32) {
    %c1_i32 = arith.constant 1 : i32
    %0 = arith.addi %arg1, %c1_i32 : i32
    %c0_i32 = arith.constant 0 : i32
    %c0_i32_0 = arith.constant 0 : i32
    %c0_i32_1 = arith.constant 0 : i32
    return %arg0, %0, %c0_i32, %c0_i32_0 : i32, i32, i32, i32
  }
  func.func @transform_2(%arg0: i32, %arg1: i32) -> (i32, i32, i32, i32) {
    %c2_i32 = arith.constant 2 : i32
    %0 = arith.addi %arg1, %c2_i32 : i32
    %c0_i32 = arith.constant 0 : i32
    %c0_i32_0 = arith.constant 0 : i32
    %c0_i32_1 = arith.constant 0 : i32
    return %arg0, %0, %c0_i32, %c0_i32_0 : i32, i32, i32, i32
  }
  func.func @transform_3(%arg0: i32, %arg1: i32) -> (i32, i32, i32, i32) {
    %c0_i32 = arith.constant 0 : i32
    %c0_i32_0 = arith.constant 0 : i32
    %c0_i32_1 = arith.constant 0 : i32
    %c0_i32_2 = arith.constant 0 : i32
    %c0_i32_3 = arith.constant 0 : i32
    return %c0_i32, %c0_i32_0, %c0_i32_1, %c0_i32_2 : i32, i32, i32, i32
  }
  func.func @transform_4(%arg0: i32, %arg1: i32) -> (i32, i32) {
    %c0_i32 = arith.constant 0 : i32
    %c0_i32_0 = arith.constant 0 : i32
    %c0_i32_1 = arith.constant 0 : i32
    return %c0_i32, %c0_i32_0 : i32, i32
  }
  func.func @transform_5(%arg0: i32, %arg1: i32) -> (i32, i32, i32, i32) {
    %c0_i32 = arith.constant 0 : i32
    %c0_i32_0 = arith.constant 0 : i32
    %c0_i32_1 = arith.constant 0 : i32
    return %arg0, %arg1, %c0_i32, %c0_i32_0 : i32, i32, i32, i32
  }
}

module attributes {stable_mosaic.version = 11 : i64} {
  func.func @_bn_stats_kernel(%arg0: i32, %arg1: memref<256x128xbf16, #tpu.memory_space<vmem>>, %arg2: memref<1x128xf32, #tpu.memory_space<vmem>>, %arg3: memref<1x128xf32, #tpu.memory_space<vmem>>) attributes {dimension_semantics = [#tpu.dimension_semantics<arbitrary>], iteration_bounds = array<i64: 2>, scalar_prefetch = 0 : i64, scratch_operands = 0 : i64, tpu.core_type = #tpu.core_type<tc>, window_params = [{transform_indices = @transform_0, window_bounds = array<i64: 256, 128>}, {pipeline_mode = #tpu.pipeline_mode<synchronous>, transform_indices = @transform_1, window_bounds = array<i64: 1, 128>}, {pipeline_mode = #tpu.pipeline_mode<synchronous>, transform_indices = @transform_2, window_bounds = array<i64: 1, 128>}]} {
    %c0_i32 = arith.constant 0 : i32
    %0 = arith.cmpi eq, %arg0, %c0_i32 : i32
    %1 = arith.extui %0 : i1 to i32
    %c0_i32_0 = arith.constant 0 : i32
    %2 = arith.cmpi ne, %1, %c0_i32_0 : i32
    scf.if %2 {
      %cst_11 = arith.constant 0.000000e+00 : f32
      %16 = vector.broadcast %cst_11 : f32 to vector<1x128xf32>
      %c0_12 = arith.constant 0 : index
      %c0_13 = arith.constant 0 : index
      %17 = vector.load %arg2[%c0_12, %c0_13] : memref<1x128xf32, #tpu.memory_space<vmem>>, vector<1x128xf32>
      tpu.vector_store %arg2[%c0_12, %c0_13], %16 {strides = array<i32>} : memref<1x128xf32, #tpu.memory_space<vmem>>, vector<1x128xf32>,
      %cst_14 = arith.constant 0.000000e+00 : f32
      %18 = vector.broadcast %cst_14 : f32 to vector<1x128xf32>
      %c0_15 = arith.constant 0 : index
      %c0_16 = arith.constant 0 : index
      %19 = vector.load %arg3[%c0_15, %c0_16] : memref<1x128xf32, #tpu.memory_space<vmem>>, vector<1x128xf32>
      tpu.vector_store %arg3[%c0_15, %c0_16], %18 {strides = array<i32>} : memref<1x128xf32, #tpu.memory_space<vmem>>, vector<1x128xf32>,
    } else {
    }
    %c0 = arith.constant 0 : index
    %c0_1 = arith.constant 0 : index
    %3 = vector.load %arg1[%c0, %c0_1] : memref<256x128xbf16, #tpu.memory_space<vmem>>, vector<256x128xbf16>
    %4 = arith.extf %3 : vector<256x128xbf16> to vector<256x128xf32>
    %c0_2 = arith.constant 0 : index
    %c0_3 = arith.constant 0 : index
    %5 = vector.load %arg2[%c0_2, %c0_3] : memref<1x128xf32, #tpu.memory_space<vmem>>, vector<1x128xf32>
    %cst = arith.constant dense<0.000000e+00> : vector<128xf32>
    %6 = vector.multi_reduction <add>, %4, %cst [0] : vector<256x128xf32> to vector<128xf32>
    %7 = vector.shape_cast %6 : vector<128xf32> to vector<1x128xf32>
    %8 = arith.addf %5, %7 : vector<1x128xf32>
    %c0_4 = arith.constant 0 : index
    %c0_5 = arith.constant 0 : index
    %9 = vector.load %arg2[%c0_4, %c0_5] : memref<1x128xf32, #tpu.memory_space<vmem>>, vector<1x128xf32>
    tpu.vector_store %arg2[%c0_4, %c0_5], %8 {strides = array<i32>} : memref<1x128xf32, #tpu.memory_space<vmem>>, vector<1x128xf32>,
    %c0_6 = arith.constant 0 : index
    %c0_7 = arith.constant 0 : index
    %10 = vector.load %arg3[%c0_6, %c0_7] : memref<1x128xf32, #tpu.memory_space<vmem>>, vector<1x128xf32>
    %11 = arith.mulf %4, %4 : vector<256x128xf32>
    %cst_8 = arith.constant dense<0.000000e+00> : vector<128xf32>
    %12 = vector.multi_reduction <add>, %11, %cst_8 [0] : vector<256x128xf32> to vector<128xf32>
    %13 = vector.shape_cast %12 : vector<128xf32> to vector<1x128xf32>
    %14 = arith.addf %10, %13 : vector<1x128xf32>
    %c0_9 = arith.constant 0 : index
    %c0_10 = arith.constant 0 : index
    %15 = vector.load %arg3[%c0_9, %c0_10] : memref<1x128xf32, #tpu.memory_space<vmem>>, vector<1x128xf32>
    tpu.vector_store %arg3[%c0_9, %c0_10], %14 {strides = array<i32>} : memref<1x128xf32, #tpu.memory_space<vmem>>, vector<1x128xf32>,
    return
  }
  func.func @transform_0(%arg0: i32) -> (i32, i32) {
    %c0_i32 = arith.constant 0 : i32
    %c0_i32_0 = arith.constant 0 : i32
    return %arg0, %c0_i32 : i32, i32
  }
  func.func @transform_1(%arg0: i32) -> (i32, i32) {
    %c0_i32 = arith.constant 0 : i32
    %c0_i32_0 = arith.constant 0 : i32
    %c0_i32_1 = arith.constant 0 : i32
    return %c0_i32, %c0_i32_0 : i32, i32
  }
  func.func @transform_2(%arg0: i32) -> (i32, i32) {
    %c0_i32 = arith.constant 0 : i32
    %c0_i32_0 = arith.constant 0 : i32
    %c0_i32_1 = arith.constant 0 : i32
    return %c0_i32, %c0_i32_0 : i32, i32
  }
}

module attributes {stable_mosaic.version = 11 : i64} {
  func.func @_bn_apply_silu_kernel(%arg0: i32, %arg1: memref<256x128xbf16, #tpu.memory_space<vmem>>, %arg2: memref<1x128xf32, #tpu.memory_space<vmem>>, %arg3: memref<1x128xf32, #tpu.memory_space<vmem>>, %arg4: memref<256x128xbf16, #tpu.memory_space<vmem>>) attributes {dimension_semantics = [#tpu.dimension_semantics<parallel>], iteration_bounds = array<i64: 2>, scalar_prefetch = 0 : i64, scratch_operands = 0 : i64, tpu.core_type = #tpu.core_type<tc>, window_params = [{transform_indices = @transform_0, window_bounds = array<i64: 256, 128>}, {pipeline_mode = #tpu.pipeline_mode<synchronous>, transform_indices = @transform_1, window_bounds = array<i64: 1, 128>}, {pipeline_mode = #tpu.pipeline_mode<synchronous>, transform_indices = @transform_2, window_bounds = array<i64: 1, 128>}, {transform_indices = @transform_3, window_bounds = array<i64: 256, 128>}]} {
    %c0 = arith.constant 0 : index
    %c0_0 = arith.constant 0 : index
    %0 = vector.load %arg1[%c0, %c0_0] : memref<256x128xbf16, #tpu.memory_space<vmem>>, vector<256x128xbf16>
    %1 = arith.extf %0 : vector<256x128xbf16> to vector<256x128xf32>
    %c0_1 = arith.constant 0 : index
    %c0_2 = arith.constant 0 : index
    %2 = vector.load %arg2[%c0_1, %c0_2] : memref<1x128xf32, #tpu.memory_space<vmem>>, vector<1x128xf32>
    %3 = vector.broadcast %2 : vector<1x128xf32> to vector<256x128xf32>
    %4 = arith.mulf %1, %3 : vector<256x128xf32>
    %c0_3 = arith.constant 0 : index
    %c0_4 = arith.constant 0 : index
    %5 = vector.load %arg3[%c0_3, %c0_4] : memref<1x128xf32, #tpu.memory_space<vmem>>, vector<1x128xf32>
    %6 = vector.broadcast %5 : vector<1x128xf32> to vector<256x128xf32>
    %7 = arith.addf %4, %6 : vector<256x128xf32>
    %cst = arith.constant 0.000000e+00 : f32
    %8 = vector.broadcast %cst : f32 to vector<256x128xf32>
    %9 = arith.subf %8, %7 : vector<256x128xf32>
    %10 = math.exp %9 : vector<256x128xf32>
    %cst_5 = arith.constant 1.000000e+00 : f32
    %11 = vector.broadcast %cst_5 : f32 to vector<256x128xf32>
    %12 = arith.addf %11, %10 : vector<256x128xf32>
    %13 = tpu.reciprocal %12 {approx = true} : vector<256x128xf32> -> vector<256x128xf32>
    %14 = arith.mulf %7, %13 : vector<256x128xf32>
    %15 = arith.truncf %14 : vector<256x128xf32> to vector<256x128xbf16>
    %c0_6 = arith.constant 0 : index
    %c0_7 = arith.constant 0 : index
    %16 = vector.load %arg4[%c0_6, %c0_7] : memref<256x128xbf16, #tpu.memory_space<vmem>>, vector<256x128xbf16>
    tpu.vector_store %arg4[%c0_6, %c0_7], %15 {strides = array<i32>} : memref<256x128xbf16, #tpu.memory_space<vmem>>, vector<256x128xbf16>,
    return
  }
  func.func @transform_0(%arg0: i32) -> (i32, i32) {
    %c0_i32 = arith.constant 0 : i32
    %c0_i32_0 = arith.constant 0 : i32
    return %arg0, %c0_i32 : i32, i32
  }
  func.func @transform_1(%arg0: i32) -> (i32, i32) {
    %c0_i32 = arith.constant 0 : i32
    %c0_i32_0 = arith.constant 0 : i32
    %c0_i32_1 = arith.constant 0 : i32
    return %c0_i32, %c0_i32_0 : i32, i32
  }
  func.func @transform_2(%arg0: i32) -> (i32, i32) {
    %c0_i32 = arith.constant 0 : i32
    %c0_i32_0 = arith.constant 0 : i32
    %c0_i32_1 = arith.constant 0 : i32
    return %c0_i32, %c0_i32_0 : i32, i32
  }
  func.func @transform_3(%arg0: i32) -> (i32, i32) {
    %c0_i32 = arith.constant 0 : i32
    %c0_i32_0 = arith.constant 0 : i32
    return %arg0, %c0_i32 : i32, i32
  }
}

module attributes {stable_mosaic.version = 11 : i64} {
  func.func @_bn_stats_kernel(%arg0: i32, %arg1: memref<256x128xbf16, #tpu.memory_space<vmem>>, %arg2: memref<1x128xf32, #tpu.memory_space<vmem>>, %arg3: memref<1x128xf32, #tpu.memory_space<vmem>>) attributes {dimension_semantics = [#tpu.dimension_semantics<arbitrary>], iteration_bounds = array<i64: 1>, scalar_prefetch = 0 : i64, scratch_operands = 0 : i64, tpu.core_type = #tpu.core_type<tc>, window_params = [{transform_indices = @transform_0, window_bounds = array<i64: 256, 128>}, {pipeline_mode = #tpu.pipeline_mode<synchronous>, transform_indices = @transform_1, window_bounds = array<i64: 1, 128>}, {pipeline_mode = #tpu.pipeline_mode<synchronous>, transform_indices = @transform_2, window_bounds = array<i64: 1, 128>}]} {
    %c0_i32 = arith.constant 0 : i32
    %0 = arith.cmpi eq, %arg0, %c0_i32 : i32
    %1 = arith.extui %0 : i1 to i32
    %c0_i32_0 = arith.constant 0 : i32
    %2 = arith.cmpi ne, %1, %c0_i32_0 : i32
    scf.if %2 {
      %cst_11 = arith.constant 0.000000e+00 : f32
      %16 = vector.broadcast %cst_11 : f32 to vector<1x128xf32>
      %c0_12 = arith.constant 0 : index
      %c0_13 = arith.constant 0 : index
      %17 = vector.load %arg2[%c0_12, %c0_13] : memref<1x128xf32, #tpu.memory_space<vmem>>, vector<1x128xf32>
      tpu.vector_store %arg2[%c0_12, %c0_13], %16 {strides = array<i32>} : memref<1x128xf32, #tpu.memory_space<vmem>>, vector<1x128xf32>,
      %cst_14 = arith.constant 0.000000e+00 : f32
      %18 = vector.broadcast %cst_14 : f32 to vector<1x128xf32>
      %c0_15 = arith.constant 0 : index
      %c0_16 = arith.constant 0 : index
      %19 = vector.load %arg3[%c0_15, %c0_16] : memref<1x128xf32, #tpu.memory_space<vmem>>, vector<1x128xf32>
      tpu.vector_store %arg3[%c0_15, %c0_16], %18 {strides = array<i32>} : memref<1x128xf32, #tpu.memory_space<vmem>>, vector<1x128xf32>,
    } else {
    }
    %c0 = arith.constant 0 : index
    %c0_1 = arith.constant 0 : index
    %3 = vector.load %arg1[%c0, %c0_1] : memref<256x128xbf16, #tpu.memory_space<vmem>>, vector<256x128xbf16>
    %4 = arith.extf %3 : vector<256x128xbf16> to vector<256x128xf32>
    %c0_2 = arith.constant 0 : index
    %c0_3 = arith.constant 0 : index
    %5 = vector.load %arg2[%c0_2, %c0_3] : memref<1x128xf32, #tpu.memory_space<vmem>>, vector<1x128xf32>
    %cst = arith.constant dense<0.000000e+00> : vector<128xf32>
    %6 = vector.multi_reduction <add>, %4, %cst [0] : vector<256x128xf32> to vector<128xf32>
    %7 = vector.shape_cast %6 : vector<128xf32> to vector<1x128xf32>
    %8 = arith.addf %5, %7 : vector<1x128xf32>
    %c0_4 = arith.constant 0 : index
    %c0_5 = arith.constant 0 : index
    %9 = vector.load %arg2[%c0_4, %c0_5] : memref<1x128xf32, #tpu.memory_space<vmem>>, vector<1x128xf32>
    tpu.vector_store %arg2[%c0_4, %c0_5], %8 {strides = array<i32>} : memref<1x128xf32, #tpu.memory_space<vmem>>, vector<1x128xf32>,
    %c0_6 = arith.constant 0 : index
    %c0_7 = arith.constant 0 : index
    %10 = vector.load %arg3[%c0_6, %c0_7] : memref<1x128xf32, #tpu.memory_space<vmem>>, vector<1x128xf32>
    %11 = arith.mulf %4, %4 : vector<256x128xf32>
    %cst_8 = arith.constant dense<0.000000e+00> : vector<128xf32>
    %12 = vector.multi_reduction <add>, %11, %cst_8 [0] : vector<256x128xf32> to vector<128xf32>
    %13 = vector.shape_cast %12 : vector<128xf32> to vector<1x128xf32>
    %14 = arith.addf %10, %13 : vector<1x128xf32>
    %c0_9 = arith.constant 0 : index
    %c0_10 = arith.constant 0 : index
    %15 = vector.load %arg3[%c0_9, %c0_10] : memref<1x128xf32, #tpu.memory_space<vmem>>, vector<1x128xf32>
    tpu.vector_store %arg3[%c0_9, %c0_10], %14 {strides = array<i32>} : memref<1x128xf32, #tpu.memory_space<vmem>>, vector<1x128xf32>,
    return
  }
  func.func @transform_0(%arg0: i32) -> (i32, i32) {
    %c0_i32 = arith.constant 0 : i32
    %c0_i32_0 = arith.constant 0 : i32
    return %arg0, %c0_i32 : i32, i32
  }
  func.func @transform_1(%arg0: i32) -> (i32, i32) {
    %c0_i32 = arith.constant 0 : i32
    %c0_i32_0 = arith.constant 0 : i32
    %c0_i32_1 = arith.constant 0 : i32
    return %c0_i32, %c0_i32_0 : i32, i32
  }
  func.func @transform_2(%arg0: i32) -> (i32, i32) {
    %c0_i32 = arith.constant 0 : i32
    %c0_i32_0 = arith.constant 0 : i32
    %c0_i32_1 = arith.constant 0 : i32
    return %c0_i32, %c0_i32_0 : i32, i32
  }
}

module attributes {stable_mosaic.version = 11 : i64} {
  func.func @_matmul_bias_kernel(%arg0: i32, %arg1: i32, %arg2: memref<256x1152xbf16, #tpu.memory_space<vmem>>, %arg3: memref<1152x128xbf16, #tpu.memory_space<vmem>>, %arg4: memref<1x128xf32, #tpu.memory_space<vmem>>, %arg5: memref<256x128xbf16, #tpu.memory_space<vmem>>, %arg6: memref<256x128xf32, #tpu.memory_space<vmem>>) attributes {dimension_semantics = [#tpu.dimension_semantics<parallel>, #tpu.dimension_semantics<arbitrary>], iteration_bounds = array<i64: 1, 1>, scalar_prefetch = 0 : i64, scratch_operands = 1 : i64, tpu.core_type = #tpu.core_type<tc>, window_params = [{transform_indices = @transform_0, window_bounds = array<i64: 256, 1152>}, {transform_indices = @transform_1, window_bounds = array<i64: 1152, 128>}, {pipeline_mode = #tpu.pipeline_mode<synchronous>, transform_indices = @transform_2, window_bounds = array<i64: 1, 128>}, {transform_indices = @transform_3, window_bounds = array<i64: 256, 128>}]} {
    %c0_i32 = arith.constant 0 : i32
    %0 = arith.cmpi eq, %arg1, %c0_i32 : i32
    %1 = arith.extui %0 : i1 to i32
    %c0_i32_0 = arith.constant 0 : i32
    %2 = arith.cmpi ne, %1, %c0_i32_0 : i32
    scf.if %2 {
      %c0_10 = arith.constant 0 : index
      %c0_11 = arith.constant 0 : index
      %12 = vector.load %arg4[%c0_10, %c0_11] : memref<1x128xf32, #tpu.memory_space<vmem>>, vector<1x128xf32>
      %13 = vector.shape_cast %12 : vector<1x128xf32> to vector<1x128xf32>
      %14 = vector.broadcast %13 : vector<1x128xf32> to vector<256x128xf32>
      %c0_12 = arith.constant 0 : index
      %c0_13 = arith.constant 0 : index
      %15 = vector.load %arg6[%c0_12, %c0_13] : memref<256x128xf32, #tpu.memory_space<vmem>>, vector<256x128xf32>
      tpu.vector_store %arg6[%c0_12, %c0_13], %14 {strides = array<i32>} : memref<256x128xf32, #tpu.memory_space<vmem>>, vector<256x128xf32>,
    } else {
    }
    %c0 = arith.constant 0 : index
    %c0_1 = arith.constant 0 : index
    %3 = vector.load %arg6[%c0, %c0_1] : memref<256x128xf32, #tpu.memory_space<vmem>>, vector<256x128xf32>
    %c0_2 = arith.constant 0 : index
    %c0_3 = arith.constant 0 : index
    %4 = vector.load %arg2[%c0_2, %c0_3] : memref<256x1152xbf16, #tpu.memory_space<vmem>>, vector<256x1152xbf16>
    %c0_4 = arith.constant 0 : index
    %c0_5 = arith.constant 0 : index
    %5 = vector.load %arg3[%c0_4, %c0_5] : memref<1152x128xbf16, #tpu.memory_space<vmem>>, vector<1152x128xbf16>
    %cst = arith.constant dense<0.000000e+00> : vector<256x128xf32>
    %6 = tpu.matmul %4, %5, %cst {dimension_numbers = #tpu.dot_dimension_numbers<[1], [0], [0], [1], [0, 0, 1, 1], [], []>} : vector<256x1152xbf16>, vector<1152x128xbf16>, vector<256x128xf32> -> vector<256x128xf32>
    %7 = arith.addf %3, %6 : vector<256x128xf32>
    %c0_6 = arith.constant 0 : index
    %c0_7 = arith.constant 0 : index
    %8 = vector.load %arg6[%c0_6, %c0_7] : memref<256x128xf32, #tpu.memory_space<vmem>>, vector<256x128xf32>
    tpu.vector_store %arg6[%c0_6, %c0_7], %7 {strides = array<i32>} : memref<256x128xf32, #tpu.memory_space<vmem>>, vector<256x128xf32>,
    %c0_i32_8 = arith.constant 0 : i32
    %9 = arith.cmpi eq, %arg1, %c0_i32_8 : i32
    %10 = arith.extui %9 : i1 to i32
    %c0_i32_9 = arith.constant 0 : i32
    %11 = arith.cmpi ne, %10, %c0_i32_9 : i32
    scf.if %11 {
      %c0_10 = arith.constant 0 : index
      %c0_11 = arith.constant 0 : index
      %12 = vector.load %arg6[%c0_10, %c0_11] : memref<256x128xf32, #tpu.memory_space<vmem>>, vector<256x128xf32>
      %13 = arith.truncf %12 : vector<256x128xf32> to vector<256x128xbf16>
      %c0_12 = arith.constant 0 : index
      %c0_13 = arith.constant 0 : index
      %14 = vector.load %arg5[%c0_12, %c0_13] : memref<256x128xbf16, #tpu.memory_space<vmem>>, vector<256x128xbf16>
      tpu.vector_store %arg5[%c0_12, %c0_13], %13 {strides = array<i32>} : memref<256x128xbf16, #tpu.memory_space<vmem>>, vector<256x128xbf16>,
    } else {
    }
    return
  }
  func.func @transform_0(%arg0: i32, %arg1: i32) -> (i32, i32) {
    %c0_i32 = arith.constant 0 : i32
    return %arg0, %arg1 : i32, i32
  }
  func.func @transform_1(%arg0: i32, %arg1: i32) -> (i32, i32) {
    %c0_i32 = arith.constant 0 : i32
    %c0_i32_0 = arith.constant 0 : i32
    return %arg1, %c0_i32 : i32, i32
  }
  func.func @transform_2(%arg0: i32, %arg1: i32) -> (i32, i32) {
    %c0_i32 = arith.constant 0 : i32
    %c0_i32_0 = arith.constant 0 : i32
    %c0_i32_1 = arith.constant 0 : i32
    return %c0_i32, %c0_i32_0 : i32, i32
  }
  func.func @transform_3(%arg0: i32, %arg1: i32) -> (i32, i32) {
    %c0_i32 = arith.constant 0 : i32
    %c0_i32_0 = arith.constant 0 : i32
    return %arg0, %c0_i32 : i32, i32
  }
}

module attributes {stable_mosaic.version = 11 : i64} {
  func.func @_conv3x3_row_kernel(%arg0: i32, %arg1: i32, %arg2: memref<1x1x10x128xbf16, #tpu.memory_space<vmem>>, %arg3: memref<1x1x10x128xbf16, #tpu.memory_space<vmem>>, %arg4: memref<1x1x10x128xbf16, #tpu.memory_space<vmem>>, %arg5: memref<3x3x128x128xbf16, #tpu.memory_space<vmem>>, %arg6: memref<1x128xf32, #tpu.memory_space<vmem>>, %arg7: memref<1x1x8x128xbf16, #tpu.memory_space<vmem>>) attributes {dimension_semantics = [#tpu.dimension_semantics<parallel>, #tpu.dimension_semantics<parallel>], iteration_bounds = array<i64: 2, 8>, scalar_prefetch = 0 : i64, scratch_operands = 0 : i64, tpu.core_type = #tpu.core_type<tc>, window_params = [{transform_indices = @transform_0, window_bounds = array<i64: 1, 1, 10, 128>}, {transform_indices = @transform_1, window_bounds = array<i64: 1, 1, 10, 128>}, {transform_indices = @transform_2, window_bounds = array<i64: 1, 1, 10, 128>}, {pipeline_mode = #tpu.pipeline_mode<synchronous>, transform_indices = @transform_3, window_bounds = array<i64: 3, 3, 128, 128>}, {pipeline_mode = #tpu.pipeline_mode<synchronous>, transform_indices = @transform_4, window_bounds = array<i64: 1, 128>}, {transform_indices = @transform_5, window_bounds = array<i64: 1, 1, 8, 128>}]} {
    %c0 = arith.constant 0 : index
    %c0_0 = arith.constant 0 : index
    %0 = vector.load %arg6[%c0, %c0_0] : memref<1x128xf32, #tpu.memory_space<vmem>>, vector<1x128xf32>
    %1 = vector.shape_cast %0 : vector<1x128xf32> to vector<1x128xf32>
    %2 = vector.broadcast %1 : vector<1x128xf32> to vector<8x128xf32>
    %c0_1 = arith.constant 0 : index
    %c0_2 = arith.constant 0 : index
    %c0_3 = arith.constant 0 : index
    %c0_4 = arith.constant 0 : index
    %3 = vector.load %arg2[%c0_1, %c0_2, %c0_3, %c0_4] : memref<1x1x10x128xbf16, #tpu.memory_space<vmem>>, vector<1x1x8x128xbf16>
    %4 = vector.shape_cast %3 : vector<1x1x8x128xbf16> to vector<8x128xbf16>
    %c0_5 = arith.constant 0 : index
    %c0_6 = arith.constant 0 : index
    %c0_7 = arith.constant 0 : index
    %c0_8 = arith.constant 0 : index
    %5 = vector.load %arg5[%c0_5, %c0_6, %c0_7, %c0_8] : memref<3x3x128x128xbf16, #tpu.memory_space<vmem>>, vector<1x1x128x128xbf16>
    %6 = vector.shape_cast %5 : vector<1x1x128x128xbf16> to vector<128x128xbf16>
    %cst = arith.constant dense<0.000000e+00> : vector<8x128xf32>
    %7 = tpu.matmul %4, %6, %cst {dimension_numbers = #tpu.dot_dimension_numbers<[1], [0], [0], [1], [0, 0, 1, 1], [], []>} : vector<8x128xbf16>, vector<128x128xbf16>, vector<8x128xf32> -> vector<8x128xf32>
    %8 = arith.addf %2, %7 : vector<8x128xf32>
    %c0_9 = arith.constant 0 : index
    %c0_10 = arith.constant 0 : index
    %c1 = arith.constant 1 : index
    %c0_11 = arith.constant 0 : index
    %9 = vector.load %arg2[%c0_9, %c0_10, %c1, %c0_11] : memref<1x1x10x128xbf16, #tpu.memory_space<vmem>>, vector<1x1x8x128xbf16>
    %10 = vector.shape_cast %9 : vector<1x1x8x128xbf16> to vector<8x128xbf16>
    %c0_12 = arith.constant 0 : index
    %c1_13 = arith.constant 1 : index
    %c0_14 = arith.constant 0 : index
    %c0_15 = arith.constant 0 : index
    %11 = vector.load %arg5[%c0_12, %c1_13, %c0_14, %c0_15] : memref<3x3x128x128xbf16, #tpu.memory_space<vmem>>, vector<1x1x128x128xbf16>
    %12 = vector.shape_cast %11 : vector<1x1x128x128xbf16> to vector<128x128xbf16>
    %cst_16 = arith.constant dense<0.000000e+00> : vector<8x128xf32>
    %13 = tpu.matmul %10, %12, %cst_16 {dimension_numbers = #tpu.dot_dimension_numbers<[1], [0], [0], [1], [0, 0, 1, 1], [], []>} : vector<8x128xbf16>, vector<128x128xbf16>, vector<8x128xf32> -> vector<8x128xf32>
    %14 = arith.addf %8, %13 : vector<8x128xf32>
    %c0_17 = arith.constant 0 : index
    %c0_18 = arith.constant 0 : index
    %c2 = arith.constant 2 : index
    %c0_19 = arith.constant 0 : index
    %15 = vector.load %arg2[%c0_17, %c0_18, %c2, %c0_19] : memref<1x1x10x128xbf16, #tpu.memory_space<vmem>>, vector<1x1x8x128xbf16>
    %16 = vector.shape_cast %15 : vector<1x1x8x128xbf16> to vector<8x128xbf16>
    %c0_20 = arith.constant 0 : index
    %c2_21 = arith.constant 2 : index
    %c0_22 = arith.constant 0 : index
    %c0_23 = arith.constant 0 : index
    %17 = vector.load %arg5[%c0_20, %c2_21, %c0_22, %c0_23] : memref<3x3x128x128xbf16, #tpu.memory_space<vmem>>, vector<1x1x128x128xbf16>
    %18 = vector.shape_cast %17 : vector<1x1x128x128xbf16> to vector<128x128xbf16>
    %cst_24 = arith.constant dense<0.000000e+00> : vector<8x128xf32>
    %19 = tpu.matmul %16, %18, %cst_24 {dimension_numbers = #tpu.dot_dimension_numbers<[1], [0], [0], [1], [0, 0, 1, 1], [], []>} : vector<8x128xbf16>, vector<128x128xbf16>, vector<8x128xf32> -> vector<8x128xf32>
    %20 = arith.addf %14, %19 : vector<8x128xf32>
    %c0_25 = arith.constant 0 : index
    %c0_26 = arith.constant 0 : index
    %c0_27 = arith.constant 0 : index
    %c0_28 = arith.constant 0 : index
    %21 = vector.load %arg3[%c0_25, %c0_26, %c0_27, %c0_28] : memref<1x1x10x128xbf16, #tpu.memory_space<vmem>>, vector<1x1x8x128xbf16>
    %22 = vector.shape_cast %21 : vector<1x1x8x128xbf16> to vector<8x128xbf16>
    %c1_29 = arith.constant 1 : index
    %c0_30 = arith.constant 0 : index
    %c0_31 = arith.constant 0 : index
    %c0_32 = arith.constant 0 : index
    %23 = vector.load %arg5[%c1_29, %c0_30, %c0_31, %c0_32] : memref<3x3x128x128xbf16, #tpu.memory_space<vmem>>, vector<1x1x128x128xbf16>
    %24 = vector.shape_cast %23 : vector<1x1x128x128xbf16> to vector<128x128xbf16>
    %cst_33 = arith.constant dense<0.000000e+00> : vector<8x128xf32>
    %25 = tpu.matmul %22, %24, %cst_33 {dimension_numbers = #tpu.dot_dimension_numbers<[1], [0], [0], [1], [0, 0, 1, 1], [], []>} : vector<8x128xbf16>, vector<128x128xbf16>, vector<8x128xf32> -> vector<8x128xf32>
    %26 = arith.addf %20, %25 : vector<8x128xf32>
    %c0_34 = arith.constant 0 : index
    %c0_35 = arith.constant 0 : index
    %c1_36 = arith.constant 1 : index
    %c0_37 = arith.constant 0 : index
    %27 = vector.load %arg3[%c0_34, %c0_35, %c1_36, %c0_37] : memref<1x1x10x128xbf16, #tpu.memory_space<vmem>>, vector<1x1x8x128xbf16>
    %28 = vector.shape_cast %27 : vector<1x1x8x128xbf16> to vector<8x128xbf16>
    %c1_38 = arith.constant 1 : index
    %c1_39 = arith.constant 1 : index
    %c0_40 = arith.constant 0 : index
    %c0_41 = arith.constant 0 : index
    %29 = vector.load %arg5[%c1_38, %c1_39, %c0_40, %c0_41] : memref<3x3x128x128xbf16, #tpu.memory_space<vmem>>, vector<1x1x128x128xbf16>
    %30 = vector.shape_cast %29 : vector<1x1x128x128xbf16> to vector<128x128xbf16>
    %cst_42 = arith.constant dense<0.000000e+00> : vector<8x128xf32>
    %31 = tpu.matmul %28, %30, %cst_42 {dimension_numbers = #tpu.dot_dimension_numbers<[1], [0], [0], [1], [0, 0, 1, 1], [], []>} : vector<8x128xbf16>, vector<128x128xbf16>, vector<8x128xf32> -> vector<8x128xf32>
    %32 = arith.addf %26, %31 : vector<8x128xf32>
    %c0_43 = arith.constant 0 : index
    %c0_44 = arith.constant 0 : index
    %c2_45 = arith.constant 2 : index
    %c0_46 = arith.constant 0 : index
    %33 = vector.load %arg3[%c0_43, %c0_44, %c2_45, %c0_46] : memref<1x1x10x128xbf16, #tpu.memory_space<vmem>>, vector<1x1x8x128xbf16>
    %34 = vector.shape_cast %33 : vector<1x1x8x128xbf16> to vector<8x128xbf16>
    %c1_47 = arith.constant 1 : index
    %c2_48 = arith.constant 2 : index
    %c0_49 = arith.constant 0 : index
    %c0_50 = arith.constant 0 : index
    %35 = vector.load %arg5[%c1_47, %c2_48, %c0_49, %c0_50] : memref<3x3x128x128xbf16, #tpu.memory_space<vmem>>, vector<1x1x128x128xbf16>
    %36 = vector.shape_cast %35 : vector<1x1x128x128xbf16> to vector<128x128xbf16>
    %cst_51 = arith.constant dense<0.000000e+00> : vector<8x128xf32>
    %37 = tpu.matmul %34, %36, %cst_51 {dimension_numbers = #tpu.dot_dimension_numbers<[1], [0], [0], [1], [0, 0, 1, 1], [], []>} : vector<8x128xbf16>, vector<128x128xbf16>, vector<8x128xf32> -> vector<8x128xf32>
    %38 = arith.addf %32, %37 : vector<8x128xf32>
    %c0_52 = arith.constant 0 : index
    %c0_53 = arith.constant 0 : index
    %c0_54 = arith.constant 0 : index
    %c0_55 = arith.constant 0 : index
    %39 = vector.load %arg4[%c0_52, %c0_53, %c0_54, %c0_55] : memref<1x1x10x128xbf16, #tpu.memory_space<vmem>>, vector<1x1x8x128xbf16>
    %40 = vector.shape_cast %39 : vector<1x1x8x128xbf16> to vector<8x128xbf16>
    %c2_56 = arith.constant 2 : index
    %c0_57 = arith.constant 0 : index
    %c0_58 = arith.constant 0 : index
    %c0_59 = arith.constant 0 : index
    %41 = vector.load %arg5[%c2_56, %c0_57, %c0_58, %c0_59] : memref<3x3x128x128xbf16, #tpu.memory_space<vmem>>, vector<1x1x128x128xbf16>
    %42 = vector.shape_cast %41 : vector<1x1x128x128xbf16> to vector<128x128xbf16>
    %cst_60 = arith.constant dense<0.000000e+00> : vector<8x128xf32>
    %43 = tpu.matmul %40, %42, %cst_60 {dimension_numbers = #tpu.dot_dimension_numbers<[1], [0], [0], [1], [0, 0, 1, 1], [], []>} : vector<8x128xbf16>, vector<128x128xbf16>, vector<8x128xf32> -> vector<8x128xf32>
    %44 = arith.addf %38, %43 : vector<8x128xf32>
    %c0_61 = arith.constant 0 : index
    %c0_62 = arith.constant 0 : index
    %c1_63 = arith.constant 1 : index
    %c0_64 = arith.constant 0 : index
    %45 = vector.load %arg4[%c0_61, %c0_62, %c1_63, %c0_64] : memref<1x1x10x128xbf16, #tpu.memory_space<vmem>>, vector<1x1x8x128xbf16>
    %46 = vector.shape_cast %45 : vector<1x1x8x128xbf16> to vector<8x128xbf16>
    %c2_65 = arith.constant 2 : index
    %c1_66 = arith.constant 1 : index
    %c0_67 = arith.constant 0 : index
    %c0_68 = arith.constant 0 : index
    %47 = vector.load %arg5[%c2_65, %c1_66, %c0_67, %c0_68] : memref<3x3x128x128xbf16, #tpu.memory_space<vmem>>, vector<1x1x128x128xbf16>
    %48 = vector.shape_cast %47 : vector<1x1x128x128xbf16> to vector<128x128xbf16>
    %cst_69 = arith.constant dense<0.000000e+00> : vector<8x128xf32>
    %49 = tpu.matmul %46, %48, %cst_69 {dimension_numbers = #tpu.dot_dimension_numbers<[1], [0], [0], [1], [0, 0, 1, 1], [], []>} : vector<8x128xbf16>, vector<128x128xbf16>, vector<8x128xf32> -> vector<8x128xf32>
    %50 = arith.addf %44, %49 : vector<8x128xf32>
    %c0_70 = arith.constant 0 : index
    %c0_71 = arith.constant 0 : index
    %c2_72 = arith.constant 2 : index
    %c0_73 = arith.constant 0 : index
    %51 = vector.load %arg4[%c0_70, %c0_71, %c2_72, %c0_73] : memref<1x1x10x128xbf16, #tpu.memory_space<vmem>>, vector<1x1x8x128xbf16>
    %52 = vector.shape_cast %51 : vector<1x1x8x128xbf16> to vector<8x128xbf16>
    %c2_74 = arith.constant 2 : index
    %c2_75 = arith.constant 2 : index
    %c0_76 = arith.constant 0 : index
    %c0_77 = arith.constant 0 : index
    %53 = vector.load %arg5[%c2_74, %c2_75, %c0_76, %c0_77] : memref<3x3x128x128xbf16, #tpu.memory_space<vmem>>, vector<1x1x128x128xbf16>
    %54 = vector.shape_cast %53 : vector<1x1x128x128xbf16> to vector<128x128xbf16>
    %cst_78 = arith.constant dense<0.000000e+00> : vector<8x128xf32>
    %55 = tpu.matmul %52, %54, %cst_78 {dimension_numbers = #tpu.dot_dimension_numbers<[1], [0], [0], [1], [0, 0, 1, 1], [], []>} : vector<8x128xbf16>, vector<128x128xbf16>, vector<8x128xf32> -> vector<8x128xf32>
    %56 = arith.addf %50, %55 : vector<8x128xf32>
    %57 = arith.truncf %56 : vector<8x128xf32> to vector<8x128xbf16>
    %c0_79 = arith.constant 0 : index
    %c0_80 = arith.constant 0 : index
    %c0_81 = arith.constant 0 : index
    %c0_82 = arith.constant 0 : index
    %58 = vector.load %arg7[%c0_79, %c0_80, %c0_81, %c0_82] : memref<1x1x8x128xbf16, #tpu.memory_space<vmem>>, vector<1x1x8x128xbf16>
    %59 = vector.shape_cast %58 : vector<1x1x8x128xbf16> to vector<8x128xbf16>
    %60 = vector.shape_cast %57 : vector<8x128xbf16> to vector<1x1x8x128xbf16>
    tpu.vector_store %arg7[%c0_79, %c0_80, %c0_81, %c0_82], %60 {strides = array<i32>} : memref<1x1x8x128xbf16, #tpu.memory_space<vmem>>, vector<1x1x8x128xbf16>,
    return
  }
  func.func @transform_0(%arg0: i32, %arg1: i32) -> (i32, i32, i32, i32) {
    %c0_i32 = arith.constant 0 : i32
    %0 = arith.addi %arg1, %c0_i32 : i32
    %c0_i32_0 = arith.constant 0 : i32
    %c0_i32_1 = arith.constant 0 : i32
    %c0_i32_2 = arith.constant 0 : i32
    return %arg0, %0, %c0_i32_0, %c0_i32_1 : i32, i32, i32, i32
  }
  func.func @transform_1(%arg0: i32, %arg1: i32) -> (i32, i32, i32, i32) {
    %c1_i32 = arith.constant 1 : i32
    %0 = arith.addi %arg1, %c1_i32 : i32
    %c0_i32 = arith.constant 0 : i32
    %c0_i32_0 = arith.constant 0 : i32
    %c0_i32_1 = arith.constant 0 : i32
    return %arg0, %0, %c0_i32, %c0_i32_0 : i32, i32, i32, i32
  }
  func.func @transform_2(%arg0: i32, %arg1: i32) -> (i32, i32, i32, i32) {
    %c2_i32 = arith.constant 2 : i32
    %0 = arith.addi %arg1, %c2_i32 : i32
    %c0_i32 = arith.constant 0 : i32
    %c0_i32_0 = arith.constant 0 : i32
    %c0_i32_1 = arith.constant 0 : i32
    return %arg0, %0, %c0_i32, %c0_i32_0 : i32, i32, i32, i32
  }
  func.func @transform_3(%arg0: i32, %arg1: i32) -> (i32, i32, i32, i32) {
    %c0_i32 = arith.constant 0 : i32
    %c0_i32_0 = arith.constant 0 : i32
    %c0_i32_1 = arith.constant 0 : i32
    %c0_i32_2 = arith.constant 0 : i32
    %c0_i32_3 = arith.constant 0 : i32
    return %c0_i32, %c0_i32_0, %c0_i32_1, %c0_i32_2 : i32, i32, i32, i32
  }
  func.func @transform_4(%arg0: i32, %arg1: i32) -> (i32, i32) {
    %c0_i32 = arith.constant 0 : i32
    %c0_i32_0 = arith.constant 0 : i32
    %c0_i32_1 = arith.constant 0 : i32
    return %c0_i32, %c0_i32_0 : i32, i32
  }
  func.func @transform_5(%arg0: i32, %arg1: i32) -> (i32, i32, i32, i32) {
    %c0_i32 = arith.constant 0 : i32
    %c0_i32_0 = arith.constant 0 : i32
    %c0_i32_1 = arith.constant 0 : i32
    return %arg0, %arg1, %c0_i32, %c0_i32_0 : i32, i32, i32, i32
  }
}

module attributes {stable_mosaic.version = 11 : i64} {
  func.func @_bn_apply_silu_kernel(%arg0: i32, %arg1: memref<256x128xbf16, #tpu.memory_space<vmem>>, %arg2: memref<1x128xf32, #tpu.memory_space<vmem>>, %arg3: memref<1x128xf32, #tpu.memory_space<vmem>>, %arg4: memref<256x128xbf16, #tpu.memory_space<vmem>>) attributes {dimension_semantics = [#tpu.dimension_semantics<parallel>], iteration_bounds = array<i64: 1>, scalar_prefetch = 0 : i64, scratch_operands = 0 : i64, tpu.core_type = #tpu.core_type<tc>, window_params = [{transform_indices = @transform_0, window_bounds = array<i64: 256, 128>}, {pipeline_mode = #tpu.pipeline_mode<synchronous>, transform_indices = @transform_1, window_bounds = array<i64: 1, 128>}, {pipeline_mode = #tpu.pipeline_mode<synchronous>, transform_indices = @transform_2, window_bounds = array<i64: 1, 128>}, {transform_indices = @transform_3, window_bounds = array<i64: 256, 128>}]} {
    %c0 = arith.constant 0 : index
    %c0_0 = arith.constant 0 : index
    %0 = vector.load %arg1[%c0, %c0_0] : memref<256x128xbf16, #tpu.memory_space<vmem>>, vector<256x128xbf16>
    %1 = arith.extf %0 : vector<256x128xbf16> to vector<256x128xf32>
    %c0_1 = arith.constant 0 : index
    %c0_2 = arith.constant 0 : index
    %2 = vector.load %arg2[%c0_1, %c0_2] : memref<1x128xf32, #tpu.memory_space<vmem>>, vector<1x128xf32>
    %3 = vector.broadcast %2 : vector<1x128xf32> to vector<256x128xf32>
    %4 = arith.mulf %1, %3 : vector<256x128xf32>
    %c0_3 = arith.constant 0 : index
    %c0_4 = arith.constant 0 : index
    %5 = vector.load %arg3[%c0_3, %c0_4] : memref<1x128xf32, #tpu.memory_space<vmem>>, vector<1x128xf32>
    %6 = vector.broadcast %5 : vector<1x128xf32> to vector<256x128xf32>
    %7 = arith.addf %4, %6 : vector<256x128xf32>
    %cst = arith.constant 0.000000e+00 : f32
    %8 = vector.broadcast %cst : f32 to vector<256x128xf32>
    %9 = arith.subf %8, %7 : vector<256x128xf32>
    %10 = math.exp %9 : vector<256x128xf32>
    %cst_5 = arith.constant 1.000000e+00 : f32
    %11 = vector.broadcast %cst_5 : f32 to vector<256x128xf32>
    %12 = arith.addf %11, %10 : vector<256x128xf32>
    %13 = tpu.reciprocal %12 {approx = true} : vector<256x128xf32> -> vector<256x128xf32>
    %14 = arith.mulf %7, %13 : vector<256x128xf32>
    %15 = arith.truncf %14 : vector<256x128xf32> to vector<256x128xbf16>
    %c0_6 = arith.constant 0 : index
    %c0_7 = arith.constant 0 : index
    %16 = vector.load %arg4[%c0_6, %c0_7] : memref<256x128xbf16, #tpu.memory_space<vmem>>, vector<256x128xbf16>
    tpu.vector_store %arg4[%c0_6, %c0_7], %15 {strides = array<i32>} : memref<256x128xbf16, #tpu.memory_space<vmem>>, vector<256x128xbf16>,
    return
  }
  func.func @transform_0(%arg0: i32) -> (i32, i32) {
    %c0_i32 = arith.constant 0 : i32
    %c0_i32_0 = arith.constant 0 : i32
    return %arg0, %c0_i32 : i32, i32
  }
  func.func @transform_1(%arg0: i32) -> (i32, i32) {
    %c0_i32 = arith.constant 0 : i32
    %c0_i32_0 = arith.constant 0 : i32
    %c0_i32_1 = arith.constant 0 : i32
    return %c0_i32, %c0_i32_0 : i32, i32
  }
  func.func @transform_2(%arg0: i32) -> (i32, i32) {
    %c0_i32 = arith.constant 0 : i32
    %c0_i32_0 = arith.constant 0 : i32
    %c0_i32_1 = arith.constant 0 : i32
    return %c0_i32, %c0_i32_0 : i32, i32
  }
  func.func @transform_3(%arg0: i32) -> (i32, i32) {
    %c0_i32 = arith.constant 0 : i32
    %c0_i32_0 = arith.constant 0 : i32
    return %arg0, %c0_i32 : i32, i32
  }
}

module attributes {stable_mosaic.version = 11 : i64} {
  func.func @_matmul_bias_kernel(%arg0: i32, %arg1: i32, %arg2: memref<256x128xbf16, #tpu.memory_space<vmem>>, %arg3: memref<128x128xbf16, #tpu.memory_space<vmem>>, %arg4: memref<1x128xf32, #tpu.memory_space<vmem>>, %arg5: memref<256x128xbf16, #tpu.memory_space<vmem>>, %arg6: memref<256x128xf32, #tpu.memory_space<vmem>>) attributes {dimension_semantics = [#tpu.dimension_semantics<parallel>, #tpu.dimension_semantics<arbitrary>], iteration_bounds = array<i64: 1, 1>, scalar_prefetch = 0 : i64, scratch_operands = 1 : i64, tpu.core_type = #tpu.core_type<tc>, window_params = [{transform_indices = @transform_0, window_bounds = array<i64: 256, 128>}, {transform_indices = @transform_1, window_bounds = array<i64: 128, 128>}, {pipeline_mode = #tpu.pipeline_mode<synchronous>, transform_indices = @transform_2, window_bounds = array<i64: 1, 128>}, {transform_indices = @transform_3, window_bounds = array<i64: 256, 128>}]} {
    %c0_i32 = arith.constant 0 : i32
    %0 = arith.cmpi eq, %arg1, %c0_i32 : i32
    %1 = arith.extui %0 : i1 to i32
    %c0_i32_0 = arith.constant 0 : i32
    %2 = arith.cmpi ne, %1, %c0_i32_0 : i32
    scf.if %2 {
      %c0_10 = arith.constant 0 : index
      %c0_11 = arith.constant 0 : index
      %12 = vector.load %arg4[%c0_10, %c0_11] : memref<1x128xf32, #tpu.memory_space<vmem>>, vector<1x128xf32>
      %13 = vector.shape_cast %12 : vector<1x128xf32> to vector<1x128xf32>
      %14 = vector.broadcast %13 : vector<1x128xf32> to vector<256x128xf32>
      %c0_12 = arith.constant 0 : index
      %c0_13 = arith.constant 0 : index
      %15 = vector.load %arg6[%c0_12, %c0_13] : memref<256x128xf32, #tpu.memory_space<vmem>>, vector<256x128xf32>
      tpu.vector_store %arg6[%c0_12, %c0_13], %14 {strides = array<i32>} : memref<256x128xf32, #tpu.memory_space<vmem>>, vector<256x128xf32>,
    } else {
    }
    %c0 = arith.constant 0 : index
    %c0_1 = arith.constant 0 : index
    %3 = vector.load %arg6[%c0, %c0_1] : memref<256x128xf32, #tpu.memory_space<vmem>>, vector<256x128xf32>
    %c0_2 = arith.constant 0 : index
    %c0_3 = arith.constant 0 : index
    %4 = vector.load %arg2[%c0_2, %c0_3] : memref<256x128xbf16, #tpu.memory_space<vmem>>, vector<256x128xbf16>
    %c0_4 = arith.constant 0 : index
    %c0_5 = arith.constant 0 : index
    %5 = vector.load %arg3[%c0_4, %c0_5] : memref<128x128xbf16, #tpu.memory_space<vmem>>, vector<128x128xbf16>
    %cst = arith.constant dense<0.000000e+00> : vector<256x128xf32>
    %6 = tpu.matmul %4, %5, %cst {dimension_numbers = #tpu.dot_dimension_numbers<[1], [0], [0], [1], [0, 0, 1, 1], [], []>} : vector<256x128xbf16>, vector<128x128xbf16>, vector<256x128xf32> -> vector<256x128xf32>
    %7 = arith.addf %3, %6 : vector<256x128xf32>
    %c0_6 = arith.constant 0 : index
    %c0_7 = arith.constant 0 : index
    %8 = vector.load %arg6[%c0_6, %c0_7] : memref<256x128xf32, #tpu.memory_space<vmem>>, vector<256x128xf32>
    tpu.vector_store %arg6[%c0_6, %c0_7], %7 {strides = array<i32>} : memref<256x128xf32, #tpu.memory_space<vmem>>, vector<256x128xf32>,
    %c0_i32_8 = arith.constant 0 : i32
    %9 = arith.cmpi eq, %arg1, %c0_i32_8 : i32
    %10 = arith.extui %9 : i1 to i32
    %c0_i32_9 = arith.constant 0 : i32
    %11 = arith.cmpi ne, %10, %c0_i32_9 : i32
    scf.if %11 {
      %c0_10 = arith.constant 0 : index
      %c0_11 = arith.constant 0 : index
      %12 = vector.load %arg6[%c0_10, %c0_11] : memref<256x128xf32, #tpu.memory_space<vmem>>, vector<256x128xf32>
      %13 = arith.truncf %12 : vector<256x128xf32> to vector<256x128xbf16>
      %c0_12 = arith.constant 0 : index
      %c0_13 = arith.constant 0 : index
      %14 = vector.load %arg5[%c0_12, %c0_13] : memref<256x128xbf16, #tpu.memory_space<vmem>>, vector<256x128xbf16>
      tpu.vector_store %arg5[%c0_12, %c0_13], %13 {strides = array<i32>} : memref<256x128xbf16, #tpu.memory_space<vmem>>, vector<256x128xbf16>,
    } else {
    }
    return
  }
  func.func @transform_0(%arg0: i32, %arg1: i32) -> (i32, i32) {
    %c0_i32 = arith.constant 0 : i32
    return %arg0, %arg1 : i32, i32
  }
  func.func @transform_1(%arg0: i32, %arg1: i32) -> (i32, i32) {
    %c0_i32 = arith.constant 0 : i32
    %c0_i32_0 = arith.constant 0 : i32
    return %arg1, %c0_i32 : i32, i32
  }
  func.func @transform_2(%arg0: i32, %arg1: i32) -> (i32, i32) {
    %c0_i32 = arith.constant 0 : i32
    %c0_i32_0 = arith.constant 0 : i32
    %c0_i32_1 = arith.constant 0 : i32
    return %c0_i32, %c0_i32_0 : i32, i32
  }
  func.func @transform_3(%arg0: i32, %arg1: i32) -> (i32, i32) {
    %c0_i32 = arith.constant 0 : i32
    %c0_i32_0 = arith.constant 0 : i32
    return %arg0, %c0_i32 : i32, i32
  }
}

</mosaic_0001>

<bundles_post_ra>
// kernel: encoder_forward.31
= control target key start
LH: loop header
LB: loop body
LE: loop exit
PB: predicated region body
PF: predicated region fallthrough
CT: control target
= control target key end

     0   :  { %s466_s9 = smov 0   ;;  %s516_s0 = inlined_call_operand.vmem [shape: bf16[512,128], index: 0, kind: input, shape index: {}]   ;;  %s517_s1 = inlined_call_operand.vmem [shape: f32[1,128], index: 1, kind: output, shape index: {0}]   ;;  %s518_s2 = inlined_call_operand.vmem [shape: f32[1,128], index: 2, kind: output, shape index: {1}]  }
   0x1 LB: > { %s345_s10 = sadd.s32 4294967295, %s448_s9   ;;  %p348_p0 = scmp.ge.s32.totalorder %s448_s9, 1  ;;  %s448_s9 = sphi %s466_s9, %s13_s9  }
   0x2   : > { %p106_p1 = scmp.lt.s32.totalorder %s448_s9, 3 }
   0x4   : > { %p107_p2 = pnand %p348_p0, %p106_p1 }
   0x5   : > { %s349_s11 = sshll.u32 (!%p107_p2), %s345_s10, 5  ;;  %p351_p4 = scmp.ne.s32.totalorder (!%p107_p2), %s345_s10, 0 }
   0x6   : > { %110 = sbr.rel (%p107_p2) target bundleno = 102 (0x66), region = 24  ;;  %p124_p3 = scmp.lt.s32.totalorder (!%p107_p2), %s349_s11, 63 }
   0xd   : > { %s520_s11 = smov (!%p124_p3, %s349_s11), 63  ;;  %132 = sbr.rel (%p351_p4) target bundleno = 20 (0x14), region = 28 }
   0xe   : > { %s350_s12 = sshll.u32 %s520_s11, 2  ;;  %v450_v0 = vmov (!%p351_p4), 0.0  }
   0xf   : > { %s477_s15 = scalar_lea.vmem %s516_s0, %s350_s12  ;;  %133 = vst [vmem:[%s517_s1] sm:$0x1] (!%p351_p4), %v450_v0  ;;  %134 = vst [vmem:[%s518_s2] sm:$0x1] (!%p351_p4), %v450_v0 }
  0x14 PF: > { %v355_v1 = vld [vmem:[%s477_s15] sm:$0xff]   ;;  %v418_v2 = vld [vmem:[%s477_s15 + $0x8] sm:$0xff]   ;;  %v419_v7 = vld [vmem:[%s477_s15 + $0x10] sm:$0xff]  }
  0x15   : > { %v356_v3 = vunpack.c.l.bf16 %v355_v1  ;;  %v357_v4 = vunpack.c.h.bf16 %v355_v1  ;;  %v360_v5 = vunpack.c.l.bf16 %v418_v2  ;;  %v361_v8 = vunpack.c.h.bf16 %v418_v2  ;;  %v420_v12 = vld [vmem:[%s477_s15 + $0x18] sm:$0xff]   ;;  %v421_v20 = vld [vmem:[%s477_s15 + $0x20] sm:$0xff]   ;;  %v422_v29 = vld [vmem:[%s477_s15 + $0x28] sm:$0xff]  }
  0x16   : > { %v364_v10 = vunpack.c.l.bf16 %v419_v7  ;;  %v365_v15 = vunpack.c.h.bf16 %v419_v7  ;;  %v368_v18 = vunpack.c.l.bf16 %v420_v12  ;;  %v369_v23 = vunpack.c.h.bf16 %v420_v12  ;;  %v423_v38 = vld [vmem:[%s477_s15 + $0x30] sm:$0xff]   ;;  %v424_v47 = vld [vmem:[%s477_s15 + $0x38] sm:$0xff]   ;;  %v425_v56 = vld [vmem:[%s477_s15 + $0x40] sm:$0xff]  }
  0x17   : > { %v200_v6 = vadd.f32 %v357_v4, %v356_v3  ;;  %v240_v13 = vmul.f32 %v356_v3, %v356_v3  ;;  %v241_v14 = vmul.f32 %v357_v4, %v357_v4  ;;  %v242_v17 = vmul.f32 %v360_v5, %v360_v5  ;;  %v426_v1 = vld [vmem:[%s477_s15 + $0x48] sm:$0xff]  }
  0x18   : > { %v243_v21 = vmul.f32 %v361_v8, %v361_v8  ;;  %v244_v25 = vmul.f32 %v364_v10, %v364_v10  ;;  %v372_v27 = vunpack.c.l.bf16 %v421_v20  ;;  %v245_v30 = vmul.f32 %v365_v15, %v365_v15 }
  0x19   : > { %v201_v9 = vadd.f32 %v360_v5, %v200_v6  ;;  %v272_v22 = vadd.f32 %v241_v14, %v240_v13  ;;  %v373_v32 = vunpack.c.h.bf16 %v421_v20  ;;  %v246_v34 = vmul.f32 %v368_v18, %v368_v18 }
  0x1a   : > { %v376_v36 = vunpack.c.l.bf16 %v422_v29  ;;  %v247_v39 = vmul.f32 %v369_v23, %v369_v23  ;;  %v377_v41 = vunpack.c.h.bf16 %v422_v29  ;;  %v248_v43 = vmul.f32 %v372_v27, %v372_v27 }
  0x1b   : > { %v202_v11 = vadd.f32 %v361_v8, %v201_v9  ;;  %v273_v26 = vadd.f32 %v272_v22, %v242_v17  ;;  %v380_v45 = vunpack.c.l.bf16 %v423_v38  ;;  %v249_v48 = vmul.f32 %v373_v32, %v373_v32 }
  0x1c   : > { %v381_v50 = vunpack.c.h.bf16 %v423_v38  ;;  %v250_v52 = vmul.f32 %v376_v36, %v376_v36  ;;  %v384_v54 = vunpack.c.l.bf16 %v424_v47  ;;  %v251_v57 = vmul.f32 %v377_v41, %v377_v41 }
  0x1d   : > { %v203_v16 = vadd.f32 %v364_v10, %v202_v11  ;;  %v274_v31 = vadd.f32 %v273_v26, %v243_v21  ;;  %v385_v59 = vunpack.c.h.bf16 %v424_v47  ;;  %v252_v61 = vmul.f32 %v380_v45, %v380_v45  ;;  %v427_v10 = vld [vmem:[%s477_s15 + $0x50] sm:$0xff]  }
  0x1e   : > { %v388_v63 = vunpack.c.l.bf16 %v425_v56  ;;  %v253_v2 = vmul.f32 %v381_v50, %v381_v50  ;;  %v389_v4 = vunpack.c.h.bf16 %v425_v56  ;;  %v254_v6 = vmul.f32 %v384_v54, %v384_v54 }
  0x1f   : > { %v204_v19 = vadd.f32 %v365_v15, %v203_v16  ;;  %v275_v35 = vadd.f32 %v274_v31, %v244_v25  ;;  %v392_v8 = vunpack.c.l.bf16 %v426_v1  ;;  %v255_v11 = vmul.f32 %v385_v59, %v385_v59 }
  0x20   : > { %v393_v13 = vunpack.c.h.bf16 %v426_v1  ;;  %v256_v15 = vmul.f32 %v388_v63, %v388_v63  ;;  %v396_v17 = vunpack.c.l.bf16 %v427_v10  ;;  %v257_v20 = vmul.f32 %v389_v4, %v389_v4 }
  0x21   : > { %v205_v24 = vadd.f32 %v368_v18, %v204_v19  ;;  %v276_v40 = vadd.f32 %v275_v35, %v245_v30  ;;  %v428_v19 = vld [vmem:[%s477_s15 + $0x58] sm:$0xff]   ;;  %v397_v22 = vunpack.c.h.bf16 %v427_v10 }
  0x22   : > { %v400_v26 = vunpack.c.l.bf16 %v428_v19  ;;  %v259_v29 = vmul.f32 %v393_v13, %v393_v13  ;;  %v401_v31 = vunpack.c.h.bf16 %v428_v19 }
  0x23   : > { %v206_v28 = vadd.f32 %v369_v23, %v205_v24  ;;  %v277_v44 = vadd.f32 %v276_v40, %v246_v34  ;;  %v258_v24 = vmul.f32 %v392_v8, %v392_v8  ;;  %v261_v38 = vmul.f32 %v397_v22, %v397_v22 }
  0x24   : > { %v263_v47 = vmul.f32 %v401_v31, %v401_v31 }
  0x25   : > { %v207_v33 = vadd.f32 %v372_v27, %v206_v28  ;;  %v278_v49 = vadd.f32 %v277_v44, %v247_v39  ;;  %v429_v28 = vld [vmem:[%s477_s15 + $0x60] sm:$0xff]  }
  0x26   : > { %v404_v35 = vunpack.c.l.bf16 %v429_v28  ;;  %v405_v40 = vunpack.c.h.bf16 %v429_v28  ;;  %v239_v28 = vld [vmem:[%s518_s2] sm:$0x1] }
  0x27   : > { %v208_v37 = vadd.f32 %v373_v32, %v207_v33  ;;  %v279_v53 = vadd.f32 %v278_v49, %v248_v43  ;;  %v260_v33 = vmul.f32 %v396_v17, %v396_v17 }
  0x28   : > { %v265_v56 = vmul.f32 %v405_v40, %v405_v40 }
  0x29   : > { %v209_v42 = vadd.f32 %v376_v36, %v208_v37  ;;  %v280_v58 = vadd.f32 %v279_v53, %v249_v48  ;;  %v430_v37 = vld [vmem:[%s477_s15 + $0x68] sm:$0xff]  }
  0x2a   : > { %v408_v44 = vunpack.c.l.bf16 %v430_v37  ;;  %v409_v49 = vunpack.c.h.bf16 %v430_v37 }
  0x2b   : > { %v210_v46 = vadd.f32 %v377_v41, %v209_v42  ;;  %v281_v62 = vadd.f32 %v280_v58, %v250_v52  ;;  %v262_v42 = vmul.f32 %v400_v26, %v400_v26 }
  0x2d   : > { %v211_v51 = vadd.f32 %v380_v45, %v210_v46  ;;  %v282_v3 = vadd.f32 %v281_v62, %v251_v57  ;;  %v431_v46 = vld [vmem:[%s477_s15 + $0x70] sm:$0xff]  }
  0x2e   : > { %v412_v53 = vunpack.c.l.bf16 %v431_v46  ;;  %v413_v58 = vunpack.c.h.bf16 %v431_v46 }
  0x2f   : > { %v212_v55 = vadd.f32 %v381_v50, %v211_v51  ;;  %v283_v7 = vadd.f32 %v282_v3, %v252_v61  ;;  %v264_v51 = vmul.f32 %v404_v35, %v404_v35 }
  0x31   : > { %v213_v60 = vadd.f32 %v384_v54, %v212_v55  ;;  %v284_v12 = vadd.f32 %v283_v7, %v253_v2  ;;  %v432_v55 = vld [vmem:[%s477_s15 + $0x78] sm:$0xff]   ;;  %v269_v7 = vmul.f32 %v413_v58, %v413_v58 }
  0x32   : > { %v416_v62 = vunpack.c.l.bf16 %v432_v55  ;;  %v417_v2 = vunpack.c.h.bf16 %v432_v55 }
  0x33   : > { %v214_v0 = vadd.f32 %v385_v59, %v213_v60  ;;  %v285_v16 = vadd.f32 %v284_v12, %v254_v6  ;;  %v266_v60 = vmul.f32 %v408_v44, %v408_v44 }
  0x34   : > { %v270_v10 = vmul.f32 %v416_v62, %v416_v62 }
  0x35   : > { %v215_v5 = vadd.f32 %v388_v63, %v214_v0  ;;  %v286_v21 = vadd.f32 %v285_v16, %v255_v11  ;;  %v267_v0 = vmul.f32 %v409_v49, %v409_v49 }
  0x37   : > { %v216_v9 = vadd.f32 %v389_v4, %v215_v5  ;;  %v287_v25 = vadd.f32 %v286_v21, %v256_v15  ;;  %v268_v4 = vmul.f32 %v412_v53, %v412_v53 }
  0x39   : > { %v217_v14 = vadd.f32 %v392_v8, %v216_v9  ;;  %v288_v30 = vadd.f32 %v287_v25, %v257_v20  ;;  %v199_v20 = vld [vmem:[%s517_s1] sm:$0x1] }
  0x3b   : > { %v218_v18 = vadd.f32 %v393_v13, %v217_v14  ;;  %v289_v34 = vadd.f32 %v288_v30, %v258_v24  ;;  %v271_v13 = vmul.f32 %v417_v2, %v417_v2 }
  0x3d   : > { %v219_v23 = vadd.f32 %v396_v17, %v218_v18  ;;  %v290_v39 = vadd.f32 %v289_v34, %v259_v29 }
  0x3f   : > { %v220_v27 = vadd.f32 %v397_v22, %v219_v23  ;;  %v291_v43 = vadd.f32 %v290_v39, %v260_v33 }
  0x41   : > { %v221_v32 = vadd.f32 %v400_v26, %v220_v27  ;;  %v292_v48 = vadd.f32 %v291_v43, %v261_v38 }
  0x43   : > { %v222_v36 = vadd.f32 %v401_v31, %v221_v32  ;;  %v293_v52 = vadd.f32 %v292_v48, %v262_v42 }
  0x45   : > { %v223_v41 = vadd.f32 %v404_v35, %v222_v36  ;;  %v294_v57 = vadd.f32 %v293_v52, %v263_v47 }
  0x47   : > { %v224_v45 = vadd.f32 %v405_v40, %v223_v41  ;;  %v295_v61 = vadd.f32 %v294_v57, %v264_v51 }
  0x49   : > { %v225_v50 = vadd.f32 %v408_v44, %v224_v45  ;;  %v296_v1 = vadd.f32 %v295_v61, %v265_v56 }
  0x4b   : > { %v226_v54 = vadd.f32 %v409_v49, %v225_v50  ;;  %v297_v5 = vadd.f32 %v296_v1, %v266_v60 }
  0x4d   : > { %v227_v59 = vadd.f32 %v412_v53, %v226_v54  ;;  %v298_v8 = vadd.f32 %v297_v5, %v267_v0 }
  0x4f   : > { %v228_v63 = vadd.f32 %v413_v58, %v227_v59  ;;  %v299_v11 = vadd.f32 %v298_v8, %v268_v4 }
  0x51   : > { %v229_v3 = vadd.f32 %v416_v62, %v228_v63  ;;  %v300_v14 = vadd.f32 %v299_v11, %v269_v7 }
  0x53   : > { %v230_v6 = vadd.f32 %v417_v2, %v229_v3  ;;  %v301_v16 = vadd.f32 %v300_v14, %v270_v10 }
  0x55   : > { %v231_v9 = vrot.slane %v230_v6, 4  ;;  %v302_v18 = vadd.f32 %v301_v16, %v271_v13 }
  0x57   : > { %v232_v12 = vadd.f32 %v231_v9, %v230_v6  ;;  %v303_v21 = vrot.slane %v302_v18, 4 }
  0x59   : > { %v233_v15 = vrot.slane %v232_v12, 2  ;;  %v304_v23 = vadd.f32 %v303_v21, %v302_v18 }
  0x5b   : > { %v234_v17 = vadd.f32 %v233_v15, %v232_v12  ;;  %v305_v25 = vrot.slane %v304_v23, 2 }
  0x5d   : > { %v235_v19 = vrot.slane %v234_v17, 1  ;;  %v306_v26 = vadd.f32 %v305_v25, %v304_v23 }
  0x5f   : > { %v236_v22 = vadd.f32 %v235_v19, %v234_v17  ;;  %v307_v27 = vrot.slane %v306_v26, 1 }
  0x61   : > { %v237_v24 = vadd.f32 %v236_v22, %v199_v20  ;;  %v308_v29 = vadd.f32 %v307_v27, %v306_v26 }
  0x63   : > { %238 = vst [vmem:[%s517_s1] sm:$0x1] %v237_v24  ;;  %v309_v30 = vadd.f32 %v308_v29, %v239_v28 }
  0x65   : > { %310 = vst [vmem:[%s518_s2] sm:$0x1] %v309_v30 }
  0x66 PF: > { %s13_s9 = sadd.s32 1, %s448_s9  }
  0x67   : > { %p10_p5 = scmp.ge.s32.totalorder %s13_s9, 4  }
  0x69   :  { %12 = sbr.rel (!%p10_p5) target bundleno = 1 (0x1), region = 62 }

// kernel: encoder_forward.32
= control target key start
LH: loop header
LB: loop body
LE: loop exit
PB: predicated region body
PF: predicated region fallthrough
CT: control target
= control target key end

     0   :  { %s1139_s12 = smov 0   ;;  %s1411_s0 = inlined_call_operand.vmem [shape: bf16[512,128], index: 0, kind: input, shape index: {}]   ;;  %s1412_s1 = inlined_call_operand.vmem [shape: f32[1,128], index: 1, kind: input, shape index: {}]   ;;  %s1413_s2 = inlined_call_operand.vmem [shape: f32[1,128], index: 2, kind: input, shape index: {}]   ;;  %s1414_s3 = inlined_call_operand.vmem [shape: bf16[512,128], index: 3, kind: output, shape index: {}]  }
   0x1 LB: > { %s724_s13 = sadd.s32 4294967295, %s1117_s12   ;;  %p728_p0 = scmp.ge.s32.totalorder %s1117_s12, 1  ;;  %s1117_s12 = sphi %s1139_s12, %s13_s12  }
   0x2   : > { %p138_p1 = scmp.lt.s32.totalorder %s1117_s12, 3 }
   0x4   : > { %p139_p2 = pnand %p728_p0, %p138_p1 }
   0x5   : > { %s729_s14 = sshll.u32 (!%p139_p2), %s724_s13, 5  ;;  %v1160_v0 = vld [vmem:[%s1412_s1] ss:$0 sm:$0xff] (!%p139_p2) }
   0x6   : > { %142 = sbr.rel (%p139_p2) target bundleno = 114 (0x72), region = 32  ;;  %p163_p3 = scmp.lt.s32.totalorder (!%p139_p2), %s729_s14, 63  ;;  %v1169_v9 = vld [vmem:[%s1413_s2] ss:$0 sm:$0xff] (!%p139_p2) }
   0xd   : > { %s1416_s14 = smov (!%p163_p3, %s729_s14), 63 }
   0xe   : > { %s730_s15 = sshll.u32 %s1416_s14, 2 }
   0xf   : > { %s1155_s18 = scalar_lea.vmem %s1411_s0, %s730_s15  ;;  %s1302_s25 = scalar_lea.vmem %s1414_s3, %s730_s15 }
  0x10   : > { %v802_v1 = vld [vmem:[%s1155_s18] sm:$0xff]   ;;  %v945_v2 = vld [vmem:[%s1155_s18 + $0x8] sm:$0xff]   ;;  %v946_v3 = vld [vmem:[%s1155_s18 + $0x10] sm:$0xff]  }
  0x11   : > { %v803_v4 = vunpack.c.l.bf16 %v802_v1  ;;  %v804_v5 = vunpack.c.h.bf16 %v802_v1  ;;  %v807_v6 = vunpack.c.l.bf16 %v945_v2  ;;  %v808_v7 = vunpack.c.h.bf16 %v945_v2  ;;  %v947_v8 = vld [vmem:[%s1155_s18 + $0x18] sm:$0xff]   ;;  %v948_v30 = vld [vmem:[%s1155_s18 + $0x20] sm:$0xff]   ;;  %v949_v39 = vld [vmem:[%s1155_s18 + $0x28] sm:$0xff]  }
  0x12   : > { %v811_v10 = vunpack.c.l.bf16 %v946_v3  ;;  %v812_v11 = vunpack.c.h.bf16 %v946_v3  ;;  %v815_v12 = vunpack.c.l.bf16 %v947_v8  ;;  %v816_v13 = vunpack.c.h.bf16 %v947_v8  ;;  %v950_v40 = vld [vmem:[%s1155_s18 + $0x30] sm:$0xff]  }
  0x13   : > { %v245_v14 = vmul.f32 %v803_v4, %v1160_v0  ;;  %v246_v15 = vmul.f32 %v804_v5, %v1160_v0  ;;  %v247_v16 = vmul.f32 %v807_v6, %v1160_v0  ;;  %v248_v17 = vmul.f32 %v808_v7, %v1160_v0  ;;  %v951_v4 = vld [vmem:[%s1155_s18 + $0x38] sm:$0xff]  }
  0x14   : > { %v249_v18 = vmul.f32 %v811_v10, %v1160_v0  ;;  %v250_v19 = vmul.f32 %v812_v11, %v1160_v0  ;;  %v251_v20 = vmul.f32 %v815_v12, %v1160_v0  ;;  %v252_v21 = vmul.f32 %v816_v13, %v1160_v0  ;;  %v952_v12 = vld [vmem:[%s1155_s18 + $0x40] sm:$0xff]  }
  0x15   : > { %v1180_v22 = vadd.f32 %v1169_v9, %v245_v14  ;;  %v1183_v23 = vadd.f32 %v1169_v9, %v246_v15  ;;  %v1186_v24 = vadd.f32 %v1169_v9, %v247_v16  ;;  %v1189_v25 = vadd.f32 %v1169_v9, %v248_v17 }
  0x16   : > { %v1192_v26 = vadd.f32 %v1169_v9, %v249_v18  ;;  %v1195_v27 = vadd.f32 %v1169_v9, %v250_v19  ;;  %v1198_v28 = vadd.f32 %v1169_v9, %v251_v20  ;;  %v1201_v29 = vadd.f32 %v1169_v9, %v252_v21 }
  0x17   : > { %v316_v31 = vsub.f32 0.0, %v1180_v22  ;;  %v317_v32 = vsub.f32 0.0, %v1183_v23  ;;  %v318_v33 = vsub.f32 0.0, %v1186_v24  ;;  %v319_v34 = vsub.f32 0.0, %v1189_v25 }
  0x18   : > { %v320_v35 = vsub.f32 0.0, %v1192_v26  ;;  %v321_v36 = vsub.f32 0.0, %v1195_v27  ;;  %v322_v37 = vsub.f32 0.0, %v1198_v28  ;;  %v323_v38 = vsub.f32 0.0, %v1201_v29 }
  0x19   : > { %v348_v41 = vmul.f32 1.442695, %v316_v31  ;;  %v350_v42 = vmul.f32 1.442695, %v317_v32  ;;  %v352_v43 = vmul.f32 1.442695, %v318_v33  ;;  %v819_v44 = vunpack.c.l.bf16 %v948_v30 }
  0x1a   : > { %v354_v45 = vmul.f32 1.442695, %v319_v34  ;;  %v356_v46 = vmul.f32 1.442695, %v320_v35  ;;  %v358_v47 = vmul.f32 1.442695, %v321_v36  ;;  %v820_v48 = vunpack.c.h.bf16 %v948_v30 }
  0x1b   : > { %983 = vpow2.f32 %v348_v41  ;;  %v360_v49 = vmul.f32 1.442695, %v322_v37  ;;  %v362_v50 = vmul.f32 1.442695, %v323_v38  ;;  %v253_v51 = vmul.f32 %v819_v44, %v1160_v0 }
  0x1c   : > { %985 = vpow2.f32 %v350_v42  ;;  %v254_v52 = vmul.f32 %v820_v48, %v1160_v0  ;;  %v823_v53 = vunpack.c.l.bf16 %v949_v39  ;;  %v824_v54 = vunpack.c.h.bf16 %v949_v39 }
  0x1d   : > { %987 = vpow2.f32 %v352_v43  ;;  %v1217_v55 = vadd.f32 %v1169_v9, %v253_v51  ;;  %v827_v56 = vunpack.c.l.bf16 %v950_v40  ;;  %v828_v57 = vunpack.c.h.bf16 %v950_v40 }
  0x1e   : > { %989 = vpow2.f32 %v354_v45  ;;  %v1220_v58 = vadd.f32 %v1169_v9, %v254_v52  ;;  %v255_v59 = vmul.f32 %v823_v53, %v1160_v0  ;;  %v256_v60 = vmul.f32 %v824_v54, %v1160_v0  ;;  %v953_v52 = vld [vmem:[%s1155_s18 + $0x48] sm:$0xff]  }
  0x1f   : > { %991 = vpow2.f32 %v356_v46  ;;  %v324_v61 = vsub.f32 0.0, %v1217_v55  ;;  %v257_v62 = vmul.f32 %v827_v56, %v1160_v0  ;;  %v258_v63 = vmul.f32 %v828_v57, %v1160_v0 }
  0x20   : > { %993 = vpow2.f32 %v358_v47  ;;  %v325_v1 = vsub.f32 0.0, %v1220_v58  ;;  %v1229_v2 = vadd.f32 %v1169_v9, %v255_v59  ;;  %v1232_v3 = vadd.f32 %v1169_v9, %v256_v60 }
  0x21   : > { %995 = vpow2.f32 %v360_v49  ;;  %v364_v5 = vmul.f32 1.442695, %v324_v61  ;;  %v1236_v6 = vadd.f32 %v1169_v9, %v257_v62  ;;  %v1239_v7 = vadd.f32 %v1169_v9, %v258_v63  ;;  %v954_v63 = vld [vmem:[%s1155_s18 + $0x50] sm:$0xff]  }
  0x22   : > { %997 = vpow2.f32 %v362_v50  ;;  %v366_v8 = vmul.f32 1.442695, %v325_v1  ;;  %v326_v10 = vsub.f32 0.0, %v1229_v2  ;;  %v327_v11 = vsub.f32 0.0, %v1232_v3 }
  0x23   : > { %999 = vpow2.f32 %v364_v5  ;;  %v328_v13 = vsub.f32 0.0, %v1236_v6  ;;  %v329_v14 = vsub.f32 0.0, %v1239_v7  ;;  %v831_v15 = vunpack.c.l.bf16 %v951_v4 }
  0x24   : > { %1001 = vpow2.f32 %v366_v8  ;;  %v368_v16 = vmul.f32 1.442695, %v326_v10  ;;  %v370_v17 = vmul.f32 1.442695, %v327_v11  ;;  %v832_v18 = vunpack.c.h.bf16 %v951_v4  ;;  %v1273_v10 = vld [vmem:[%s1155_s18 + $0x58] sm:$0xff]  }
  0x25   : > { %v984_v19 = vpop.eup %983  ;;  %v1246_v20 = vmul.f32 1.442695, %v328_v13  ;;  %v1248_v21 = vmul.f32 1.442695, %v329_v14  ;;  %v259_v30 = vmul.f32 %v831_v15, %v1160_v0  ;;  %v835_v31 = vunpack.c.l.bf16 %v952_v12 }
  0x26   : > { %v986_v32 = vpop.eup %985  ;;  %v412_v33 = vadd.f32 1.0, %v984_v19  ;;  %1003 = vpow2.f32 %v368_v16  ;;  %v260_v34 = vmul.f32 %v832_v18, %v1160_v0  ;;  %v836_v35 = vunpack.c.h.bf16 %v952_v12 }
  0x27   : > { %v988_v36 = vpop.eup %987  ;;  %v413_v37 = vadd.f32 1.0, %v986_v32  ;;  %1005 = vpow2.f32 %v370_v17  ;;  %v1253_v38 = vadd.f32 %v1169_v9, %v259_v30  ;;  %v261_v39 = vmul.f32 %v835_v31, %v1160_v0 }
  0x28   : > { %v990_v40 = vpop.eup %989  ;;  %1007 = vrcp.f32 %v412_v33  ;;  %v414_v41 = vadd.f32 1.0, %v988_v36  ;;  %v1257_v42 = vadd.f32 %v1169_v9, %v260_v34  ;;  %v262_v43 = vmul.f32 %v836_v35, %v1160_v0 }
  0x29   : > { %v992_v44 = vpop.eup %991  ;;  %1009 = vrcp.f32 %v413_v37  ;;  %v415_v45 = vadd.f32 1.0, %v990_v40  ;;  %v330_v46 = vsub.f32 0.0, %v1253_v38  ;;  %v1262_v47 = vadd.f32 %v1169_v9, %v261_v39 }
  0x2a   : > { %v994_v48 = vpop.eup %993  ;;  %1011 = vrcp.f32 %v414_v41  ;;  %v416_v49 = vadd.f32 1.0, %v992_v44  ;;  %v331_v50 = vsub.f32 0.0, %v1257_v42  ;;  %v1266_v51 = vadd.f32 %v1169_v9, %v262_v43 }
  0x2b   : > { %v996_v53 = vpop.eup %995  ;;  %1013 = vrcp.f32 %v415_v45  ;;  %v417_v54 = vadd.f32 1.0, %v994_v48  ;;  %v376_v56 = vmul.f32 1.442695, %v330_v46  ;;  %v332_v57 = vsub.f32 0.0, %v1262_v47 }
  0x2c   : > { %v998_v59 = vpop.eup %997  ;;  %1015 = vrcp.f32 %v416_v49  ;;  %v418_v60 = vadd.f32 1.0, %v996_v53  ;;  %v378_v61 = vmul.f32 1.442695, %v331_v50  ;;  %v333_v62 = vsub.f32 0.0, %v1266_v51 }
  0x2d   : > { %v1000_v1 = vpop.eup %999  ;;  %1017 = vrcp.f32 %v417_v54  ;;  %v419_v4 = vadd.f32 1.0, %v998_v59  ;;  %v380_v5 = vmul.f32 1.442695, %v332_v57  ;;  %v839_v8 = vunpack.c.l.bf16 %v953_v52 }
  0x2e   : > { %v1002_v11 = vpop.eup %1001  ;;  %1019 = vrcp.f32 %v418_v60  ;;  %v420_v12 = vadd.f32 1.0, %v1000_v1  ;;  %v382_v13 = vmul.f32 1.442695, %v333_v62  ;;  %v840_v14 = vunpack.c.h.bf16 %v953_v52 }
  0x2f   : > { %1021 = vrcp.f32 %v419_v4  ;;  %v421_v15 = vadd.f32 1.0, %v1002_v11  ;;  %v263_v16 = vmul.f32 %v839_v8, %v1160_v0  ;;  %v843_v17 = vunpack.c.l.bf16 %v954_v63  ;;  %v956_v11 = vld [vmem:[%s1155_s18 + $0x60] sm:$0xff]  }
  0x30   : > { %v1004_v18 = vpop.eup %1003  ;;  %1023 = vrcp.f32 %v420_v12  ;;  %v264_v19 = vmul.f32 %v840_v14, %v1160_v0  ;;  %v844_v30 = vunpack.c.h.bf16 %v954_v63  ;;  %v847_v31 = vunpack.c.l.bf16 %v1273_v10 }
  0x31   : > { %v1006_v32 = vpop.eup %1005  ;;  %1025 = vrcp.f32 %v421_v15  ;;  %v422_v33 = vadd.f32 1.0, %v1004_v18  ;;  %v1279_v34 = vadd.f32 %v1169_v9, %v263_v16  ;;  %v265_v35 = vmul.f32 %v843_v17, %v1160_v0 }
  0x32   : > { %v1008_v36 = vpop.eup %1007  ;;  %v423_v37 = vadd.f32 1.0, %v1006_v32  ;;  %1027 = vpow2.f32 %v1246_v20  ;;  %v1284_v39 = vadd.f32 %v1169_v9, %v264_v19  ;;  %v266_v40 = vmul.f32 %v844_v30, %v1160_v0  ;;  %v957_v32 = vld [vmem:[%s1155_s18 + $0x68] sm:$0xff]  }
  0x33   : > { %v1010_v41 = vpop.eup %1009  ;;  %v476_v43 = vmul.f32 %v1008_v36, %v1180_v22  ;;  %1029 = vrcp.f32 %v422_v33  ;;  %v334_v44 = vsub.f32 0.0, %v1279_v34  ;;  %v1290_v45 = vadd.f32 %v1169_v9, %v265_v35 }
  0x34   : > { %v1012_v46 = vpop.eup %1011  ;;  %v477_v48 = vmul.f32 %v1010_v41, %v1183_v23  ;;  %1031 = vrcp.f32 %v423_v37  ;;  %v335_v20 = vsub.f32 0.0, %v1284_v39  ;;  %v1295_v49 = vadd.f32 %v1169_v9, %v266_v40 }
  0x35   : > { %v1014_v50 = vpop.eup %1013  ;;  %v478_v22 = vmul.f32 %v1012_v46, %v1186_v24  ;;  %1033 = vpow2.f32 %v1248_v21  ;;  %v384_v52 = vmul.f32 1.442695, %v334_v44  ;;  %v336_v23 = vsub.f32 0.0, %v1290_v45 }
  0x36   : > { %v1016_v53 = vpop.eup %1015  ;;  %v868_v54 = vpack.c.bf16 %v477_v48, %v476_v43  ;;  %v479_v57 = vmul.f32 %v1014_v50, %v1189_v25  ;;  %1035 = vpow2.f32 %v376_v56  ;;  %v386_v59 = vmul.f32 1.442695, %v335_v20 }
  0x37   : > { %v1018_v60 = vpop.eup %1017  ;;  %v480_v62 = vmul.f32 %v1016_v53, %v1192_v26  ;;  %1037 = vpow2.f32 %v378_v61  ;;  %v337_v63 = vsub.f32 0.0, %v1295_v49  ;;  %v388_v24 = vmul.f32 1.442695, %v336_v23 }
  0x38   : > { %v1020_v1 = vpop.eup %1019  ;;  %869 = vst [vmem:[%s1302_s25] sm:$0xff] %v868_v54   ;;  %v873_v21 = vpack.c.bf16 %v479_v57, %v478_v22  ;;  %v481_v4 = vmul.f32 %v1018_v60, %v1195_v27  ;;  %1039 = vpow2.f32 %v380_v5  ;;  %v848_v8 = vunpack.c.h.bf16 %v1273_v10 }
  0x39   : > { %v1022_v25 = vpop.eup %1021  ;;  %v482_v56 = vmul.f32 %v1020_v1, %v1198_v28  ;;  %1041 = vpow2.f32 %v382_v13  ;;  %v390_v26 = vmul.f32 1.442695, %v337_v63  ;;  %v267_v61 = vmul.f32 %v847_v31, %v1160_v0 }
  0x3a   : > { %v1024_v12 = vpop.eup %1023  ;;  %960 = vst [vmem:[%s1302_s25 + $0x8] sm:$0xff] %v873_v21   ;;  %v878_v14 = vpack.c.bf16 %v481_v4, %v480_v62  ;;  %v483_v15 = vmul.f32 %v1022_v25, %v1201_v29  ;;  %1043 = vpow2.f32 %v384_v52  ;;  %v268_v27 = vmul.f32 %v848_v8, %v1160_v0 }
  0x3b   : > { %v1026_v5 = vpop.eup %1025  ;;  %v484_v10 = vmul.f32 %v1024_v12, %v1217_v55  ;;  %1045 = vpow2.f32 %v386_v59  ;;  %v1321_v28 = vadd.f32 %v1169_v9, %v267_v61  ;;  %v851_v13 = vunpack.c.l.bf16 %v956_v11 }
  0x3c   : > { %v1028_v16 = vpop.eup %1027  ;;  %961 = vst [vmem:[%s1302_s25 + $0x10] sm:$0xff] %v878_v14   ;;  %v883_v17 = vpack.c.bf16 %v483_v15, %v482_v56  ;;  %v485_v18 = vmul.f32 %v1026_v5, %v1220_v58  ;;  %1047 = vpow2.f32 %v388_v24  ;;  %v1326_v29 = vadd.f32 %v1169_v9, %v268_v27  ;;  %v958_v24 = vld [vmem:[%s1155_s18 + $0x70] sm:$0xff]   ;;  %v959_v27 = vld [vmem:[%s1155_s18 + $0x78] sm:$0xff]  }
  0x3d   : > { %v1030_v19 = vpop.eup %1029  ;;  %v424_v30 = vadd.f32 1.0, %v1028_v16  ;;  %1049 = vpow2.f32 %v390_v26  ;;  %v338_v55 = vsub.f32 0.0, %v1321_v28  ;;  %v852_v31 = vunpack.c.h.bf16 %v956_v11 }
  0x3e   : > { %v1032_v33 = vpop.eup %1031  ;;  %962 = vst [vmem:[%s1302_s25 + $0x18] sm:$0xff] %v883_v17   ;;  %v888_v35 = vpack.c.bf16 %v485_v18, %v484_v10  ;;  %v486_v36 = vmul.f32 %v1030_v19, %v1229_v2  ;;  %v339_v37 = vsub.f32 0.0, %v1326_v29  ;;  %v269_v58 = vmul.f32 %v851_v13, %v1160_v0 }
  0x3f   : > { %v1034_v40 = vpop.eup %1033  ;;  %v487_v41 = vmul.f32 %v1032_v33, %v1232_v3  ;;  %1051 = vrcp.f32 %v424_v30  ;;  %v392_v43 = vmul.f32 1.442695, %v338_v55  ;;  %v270_v44 = vmul.f32 %v852_v31, %v1160_v0 }
  0x40   : > { %v1036_v46 = vpop.eup %1035  ;;  %963 = vst [vmem:[%s1302_s25 + $0x20] sm:$0xff] %v888_v35   ;;  %v425_v48 = vadd.f32 1.0, %v1034_v40  ;;  %v1338_v20 = vadd.f32 %v1169_v9, %v269_v58  ;;  %v855_v50 = vunpack.c.l.bf16 %v957_v32  ;;  %v856_v57 = vunpack.c.h.bf16 %v957_v32 }
  0x41   : > { %v1038_v2 = vpop.eup %1037  ;;  %v893_v22 = vpack.c.bf16 %v487_v41, %v486_v36  ;;  %v426_v52 = vadd.f32 1.0, %v1036_v46  ;;  %1053 = vpow2.f32 %v392_v43  ;;  %v1341_v23 = vadd.f32 %v1169_v9, %v270_v44 }
  0x42   : > { %v1040_v3 = vpop.eup %1039  ;;  %1055 = vrcp.f32 %v425_v48  ;;  %v427_v53 = vadd.f32 1.0, %v1038_v2  ;;  %v340_v54 = vsub.f32 0.0, %v1338_v20  ;;  %v394_v62 = vmul.f32 1.442695, %v339_v37 }
  0x43   : > { %v1042_v59 = vpop.eup %1041  ;;  %964 = vst [vmem:[%s1302_s25 + $0x28] sm:$0xff] %v893_v22   ;;  %1057 = vrcp.f32 %v426_v52  ;;  %v428_v60 = vadd.f32 1.0, %v1040_v3  ;;  %v271_v63 = vmul.f32 %v855_v50, %v1160_v0  ;;  %v341_v4 = vsub.f32 0.0, %v1341_v23 }
  0x44   : > { %v1044_v1 = vpop.eup %1043  ;;  %1059 = vrcp.f32 %v427_v53  ;;  %v429_v21 = vadd.f32 1.0, %v1042_v59  ;;  %v272_v8 = vmul.f32 %v856_v57, %v1160_v0  ;;  %v396_v56 = vmul.f32 1.442695, %v340_v54 }
  0x45   : > { %v1046_v11 = vpop.eup %1045  ;;  %1061 = vrcp.f32 %v428_v60  ;;  %v430_v25 = vadd.f32 1.0, %v1044_v1  ;;  %v1350_v26 = vadd.f32 %v1169_v9, %v271_v63  ;;  %v859_v15 = vunpack.c.l.bf16 %v958_v24 }
  0x46   : > { %v1048_v61 = vpop.eup %1047  ;;  %1063 = vrcp.f32 %v429_v21  ;;  %v431_v12 = vadd.f32 1.0, %v1046_v11  ;;  %v1353_v14 = vadd.f32 %v1169_v9, %v272_v8  ;;  %v860_v16 = vunpack.c.h.bf16 %v958_v24 }
  0x47   : > { %v1050_v5 = vpop.eup %1049  ;;  %1065 = vrcp.f32 %v430_v25  ;;  %v432_v10 = vadd.f32 1.0, %v1048_v61  ;;  %v342_v13 = vsub.f32 0.0, %v1350_v26  ;;  %v273_v19 = vmul.f32 %v859_v15, %v1160_v0 }
  0x48   : > { %1067 = vrcp.f32 %v431_v12  ;;  %v433_v17 = vadd.f32 1.0, %v1050_v5  ;;  %v343_v18 = vsub.f32 0.0, %v1353_v14  ;;  %v398_v55 = vmul.f32 1.442695, %v341_v4 }
  0x49   : > { %v1052_v30 = vpop.eup %1051  ;;  %1069 = vrcp.f32 %v432_v10  ;;  %v274_v31 = vmul.f32 %v860_v16, %v1160_v0  ;;  %v863_v32 = vunpack.c.l.bf16 %v959_v27  ;;  %v400_v35 = vmul.f32 1.442695, %v342_v13 }
  0x4a   : > { %v488_v33 = vmul.f32 %v1052_v30, %v1236_v6  ;;  %1071 = vrcp.f32 %v433_v17  ;;  %v1362_v36 = vadd.f32 %v1169_v9, %v273_v19  ;;  %v864_v40 = vunpack.c.h.bf16 %v959_v27 }
  0x4b   : > { %v1054_v37 = vpop.eup %1053  ;;  %1073 = vpow2.f32 %v394_v62  ;;  %v1365_v58 = vadd.f32 %v1169_v9, %v274_v31  ;;  %v275_v41 = vmul.f32 %v863_v32, %v1160_v0  ;;  %v402_v44 = vmul.f32 1.442695, %v343_v18 }
  0x4c   : > { %v1056_v43 = vpop.eup %1055  ;;  %1075 = vpow2.f32 %v396_v56  ;;  %v344_v46 = vsub.f32 0.0, %v1362_v36  ;;  %v276_v2 = vmul.f32 %v864_v40, %v1160_v0  ;;  %v434_v3 = vadd.f32 1.0, %v1054_v37 }
  0x4d   : > { %v1058_v48 = vpop.eup %1057  ;;  %v489_v6 = vmul.f32 %v1056_v43, %v1239_v7  ;;  %1077 = vpow2.f32 %v398_v55  ;;  %v345_v50 = vsub.f32 0.0, %v1365_v58  ;;  %v1374_v54 = vadd.f32 %v1169_v9, %v275_v41 }
  0x4e   : > { %v1060_v22 = vpop.eup %1059  ;;  %v490_v52 = vmul.f32 %v1058_v48, %v1253_v38  ;;  %v404_v53 = vmul.f32 1.442695, %v344_v46  ;;  %1079 = vpow2.f32 %v400_v35  ;;  %v1379_v0 = vadd.f32 %v1169_v9, %v276_v2 }
  0x4f   : > { %v1062_v57 = vpop.eup %1061  ;;  %v898_v59 = vpack.c.bf16 %v489_v6, %v488_v33  ;;  %v491_v60 = vmul.f32 %v1060_v22, %v1257_v42  ;;  %v406_v7 = vmul.f32 1.442695, %v345_v50  ;;  %1081 = vpow2.f32 %v402_v44 }
  0x50   : > { %v1064_v62 = vpop.eup %1063  ;;  %v492_v63 = vmul.f32 %v1062_v57, %v1262_v47  ;;  %v346_v38 = vsub.f32 0.0, %v1374_v54  ;;  %1083 = vpow2.f32 %v404_v53  ;;  %v347_v8 = vsub.f32 0.0, %v1379_v0 }
  0x51   : > { %v1066_v24 = vpop.eup %1065  ;;  %965 = vst [vmem:[%s1302_s25 + $0x30] sm:$0xff] %v898_v59   ;;  %v903_v1 = vpack.c.bf16 %v491_v60, %v490_v52  ;;  %v493_v21 = vmul.f32 %v1064_v62, %v1266_v51  ;;  %1085 = vpow2.f32 %v406_v7 }
  0x52   : > { %v1068_v42 = vpop.eup %1067  ;;  %v494_v4 = vmul.f32 %v1066_v24, %v1279_v34  ;;  %v408_v47 = vmul.f32 1.442695, %v346_v38  ;;  %1087 = vrcp.f32 %v434_v3  ;;  %v410_v51 = vmul.f32 1.442695, %v347_v8 }
  0x53   : > { %v1070_v11 = vpop.eup %1069  ;;  %966 = vst [vmem:[%s1302_s25 + $0x38] sm:$0xff] %v903_v1   ;;  %v908_v9 = vpack.c.bf16 %v493_v21, %v492_v63  ;;  %v495_v25 = vmul.f32 %v1068_v42, %v1284_v39 }
  0x54   : > { %v1072_v56 = vpop.eup %1071  ;;  %v496_v61 = vmul.f32 %v1070_v11, %v1290_v45  ;;  %1089 = vpow2.f32 %v408_v47 }
  0x55   : > { %v1074_v12 = vpop.eup %1073  ;;  %967 = vst [vmem:[%s1302_s25 + $0x40] sm:$0xff] %v908_v9   ;;  %v913_v34 = vpack.c.bf16 %v495_v25, %v494_v4  ;;  %v497_v15 = vmul.f32 %v1072_v56, %v1295_v49  ;;  %1091 = vpow2.f32 %v410_v51 }
  0x56   : > { %v1076_v27 = vpop.eup %1075  ;;  %v435_v5 = vadd.f32 1.0, %v1074_v12 }
  0x57   : > { %v1078_v10 = vpop.eup %1077  ;;  %968 = vst [vmem:[%s1302_s25 + $0x48] sm:$0xff] %v913_v34   ;;  %v918_v13 = vpack.c.bf16 %v497_v15, %v496_v61  ;;  %v436_v16 = vadd.f32 1.0, %v1076_v27 }
  0x58   : > { %1093 = vrcp.f32 %v435_v5  ;;  %v437_v39 = vadd.f32 1.0, %v1078_v10  ;;  %v1080_v17 = vpop.eup %1079 }
  0x59   : > { %969 = vst [vmem:[%s1302_s25 + $0x50] sm:$0xff] %v918_v13   ;;  %1095 = vrcp.f32 %v436_v16  ;;  %v1082_v45 = vpop.eup %1081  ;;  %v438_v18 = vadd.f32 1.0, %v1080_v17 }
  0x5a   : > { %1097 = vrcp.f32 %v437_v39  ;;  %v1084_v19 = vpop.eup %1083  ;;  %v439_v30 = vadd.f32 1.0, %v1082_v45 }
  0x5b   : > { %v1086_v55 = vpop.eup %1085  ;;  %1099 = vrcp.f32 %v438_v18  ;;  %v440_v49 = vadd.f32 1.0, %v1084_v19 }
  0x5c   : > { %v1088_v31 = vpop.eup %1087  ;;  %1101 = vrcp.f32 %v439_v30  ;;  %v441_v32 = vadd.f32 1.0, %v1086_v55 }
  0x5d   : > { %1103 = vrcp.f32 %v440_v49  ;;  %v498_v40 = vmul.f32 %v1088_v31, %v1321_v28 }
  0x5e   : > { %v1090_v33 = vpop.eup %1089  ;;  %1105 = vrcp.f32 %v441_v32 }
  0x5f   : > { %v442_v35 = vadd.f32 1.0, %v1090_v33  ;;  %v1092_v37 = vpop.eup %1091 }
  0x60   : > { %v443_v41 = vadd.f32 1.0, %v1092_v37 }
  0x61   : > { %1107 = vrcp.f32 %v442_v35 }
  0x62   : > { %v1094_v43 = vpop.eup %1093  ;;  %1109 = vrcp.f32 %v443_v41 }
  0x63   : > { %v1096_v44 = vpop.eup %1095  ;;  %v499_v46 = vmul.f32 %v1094_v43, %v1326_v29 }
  0x64   : > { %v1098_v48 = vpop.eup %1097  ;;  %v500_v6 = vmul.f32 %v1096_v44, %v1338_v20 }
  0x65   : > { %v923_v50 = vpack.c.bf16 %v499_v46, %v498_v40  ;;  %v501_v2 = vmul.f32 %v1098_v48, %v1341_v23  ;;  %v1100_v22 = vpop.eup %1099 }
  0x66   : > { %v1102_v52 = vpop.eup %1101  ;;  %v502_v3 = vmul.f32 %v1100_v22, %v1350_v26 }
  0x67   : > { %970 = vst [vmem:[%s1302_s25 + $0x58] sm:$0xff] %v923_v50   ;;  %v928_v28 = vpack.c.bf16 %v501_v2, %v500_v6  ;;  %v1104_v53 = vpop.eup %1103  ;;  %v503_v57 = vmul.f32 %v1102_v52, %v1353_v14 }
  0x68   : > { %v1106_v29 = vpop.eup %1105  ;;  %v504_v59 = vmul.f32 %v1104_v53, %v1362_v36 }
  0x69   : > { %971 = vst [vmem:[%s1302_s25 + $0x60] sm:$0xff] %v928_v28   ;;  %v933_v20 = vpack.c.bf16 %v503_v57, %v502_v3  ;;  %v505_v60 = vmul.f32 %v1106_v29, %v1365_v58 }
  0x6b   : > { %v1108_v7 = vpop.eup %1107  ;;  %972 = vst [vmem:[%s1302_s25 + $0x68] sm:$0xff] %v933_v20   ;;  %v938_v23 = vpack.c.bf16 %v505_v60, %v504_v59 }
  0x6c   : > { %v506_v62 = vmul.f32 %v1108_v7, %v1374_v54  ;;  %v1110_v63 = vpop.eup %1109 }
  0x6d   : > { %973 = vst [vmem:[%s1302_s25 + $0x70] sm:$0xff] %v938_v23   ;;  %v507_v26 = vmul.f32 %v1110_v63, %v1379_v0 }
  0x6f   : > { %v943_v38 = vpack.c.bf16 %v507_v26, %v506_v62 }
  0x71   : > { %974 = vst [vmem:[%s1302_s25 + $0x78] sm:$0xff] %v943_v38  }
  0x72 PF: > { %s13_s12 = sadd.s32 1, %s1117_s12  }
  0x73   : > { %p10_p4 = scmp.ge.s32.totalorder %s13_s12, 4  }
  0x75   :  { %12 = sbr.rel (!%p10_p4) target bundleno = 1 (0x1), region = 62 }

// kernel: encoder_forward.30
= control target key start
LH: loop header
LB: loop body
LE: loop exit
PB: predicated region body
PF: predicated region fallthrough
CT: control target
= control target key end

     0   :  { %s2321_s18 = smov 0   ;;  %s2323_s19 = smov 0   ;;  %s2757_s0 = inlined_call_operand.vmem [shape: bf16[2,18,18,128], index: 0, kind: input, shape index: {}, may-alias: {0,1,2}]   ;;  %s2758_s1 = inlined_call_operand.vmem [shape: bf16[2,18,18,128], index: 1, kind: input, shape index: {}, may-alias: {0,1,2}]   ;;  %s2759_s2 = inlined_call_operand.vmem [shape: bf16[2,18,18,128], index: 2, kind: input, shape index: {}, may-alias: {0,1,2}]   ;;  %s2760_s3 = inlined_call_operand.vmem [shape: bf16[3,3,128,128], index: 3, kind: input, shape index: {}]   ;;  %s2761_s4 = inlined_call_operand.vmem [shape: f32[1,128], index: 4, kind: input, shape index: {}]   ;;  %s2762_s5 = inlined_call_operand.vmem [shape: bf16[2,16,16,128], index: 5, kind: output, shape index: {}]  }
   0x1   :  { %s2325_s20 = smov 0   ;;  %s2327_s21 = smov 0  }
   0x2   :  { %s2329_s22 = smov 0  }
   0x3 LB: > { %s24_s23 = sadd.s32 1, %s2279_s20  ;;  %s27_s24 = sadd.s32 1, %s2283_s21  ;;  %s2287_s22 = sphi %s2329_s22, %s15_s22   ;;  %s2283_s21 = sphi %s2327_s21, %s2766_s21   ;;  %s2279_s20 = sphi %s2325_s20, %s2765_s20   ;;  %s2275_s19 = sphi %s2323_s19, %s2764_s19   ;;  %s2271_s18 = sphi %s2321_s18, %s2763_s18  }
   0x4   : > { %p25_p0 = scmp.ge.s32.totalorder %s24_s23, 16  ;;  %p1595_p1 = scmp.ge.s32.totalorder %s2287_s22, 1 }
   0x5   : > { %p247_p2 = scmp.lt.s32.totalorder %s2287_s22, 33 }
   0x6   : > { %s2768_s23 = smov (%p25_p0, %s24_s23), 0  ;;  %s2770_s24 = smov (!%p25_p0, %s27_s24), %s2283_s21 }
   0x7   : > { %p248_p3 = pnand %p1595_p1, %p247_p2  ;;  %p29_p4 = scmp.ge.s32.totalorder %s2770_s24, 2 }
   0x8   : > { %v2165_v0 = vld [vmem:[%s2760_s3] sm:$0xff] (!%p248_p3)   ;;  %v2289_v1 = vmov (!%p248_p3), 0.0   ;;  %v2167_v3 = vld [vmem:[%s2760_s3 + $0x8] sm:$0xff] (!%p248_p3)   ;;  %vm2290_vm0 = vmmov (!%p248_p3), 0   ;;  %p303_p5 = scmp.lt.s32.totalorder (!%p248_p3), %s2275_s19, 1  ;;  %p305_p6 = scmp.lt.s32.totalorder (!%p248_p3), %s2271_s18, 17 }
   0x9   : > { %s2772_s24 = smov (%p29_p4, %s2770_s24), 0  ;;  %251 = sbr.rel (%p248_p3) target bundleno = 390 (0x186), region = 40 }
   0xa   : > { %1907 = vmatprep.subr.bf16.mxu1 (!%p248_p3), %v2289_v1  ;;  %1987 = vmatprep.subr.bf16.mxu0 (!%p248_p3), %v2289_v1  ;;  %v2166_v2 = vld [vmem:[%s2760_s3 + $0x100] sm:$0xff] (!%p248_p3)   ;;  %v2168_v4 = vld [vmem:[%s2760_s3 + $0x108] sm:$0xff] (!%p248_p3)   ;;  %v2169_v5 = vld [vmem:[%s2760_s3 + $0x10] sm:$0xff] (!%p248_p3)   ;;  %s312_s15 = sadd.s32 (!%p248_p3), 1, %s2271_s18  ;;  %vm494_vm1 = vsmask.f32 (!%p248_p3), 7424 }
   0xb   : > { %1908 = vmatpush3.bf16.msra.mxu1 (!%p248_p3), %v2165_v0  ;;  %1923 = vmatprep.mubr.msk.bf16.mxu1 (!%p248_p3), %vm2290_vm0, %v2289_v1  ;;  %v2170_v6 = vld [vmem:[%s2760_s3 + $0x110] sm:$0xff] (!%p248_p3)   ;;  %p315_p7 = scmp.lt.s32.totalorder (!%p248_p3), %s312_s15, 17  ;;  %v2171_v7 = vld [vmem:[%s2760_s3 + $0x18] sm:$0xff] (!%p248_p3)   ;;  %v2173_v9 = vld [vmem:[%s2760_s3 + $0x20] sm:$0xff] (!%p248_p3)   ;;  %s323_s25 = sadd.s32 (!%p248_p3), 2, %s2271_s18  ;;  %vm620_vm2 = vcmask (!%p248_p3), 1046528  }
   0xc   : > { %1988 = vmatpush3.bf16.msra.mxu0 (!%p248_p3), %v2166_v2  ;;  %1909 = vmatprep.subr.bf16.mxu1 (!%p248_p3), %v2289_v1  ;;  %v2172_v8 = vld [vmem:[%s2760_s3 + $0x118] sm:$0xff] (!%p248_p3)   ;;  %v2174_v10 = vld [vmem:[%s2760_s3 + $0x120] sm:$0xff] (!%p248_p3)   ;;  %v2175_v11 = vld [vmem:[%s2760_s3 + $0x28] sm:$0xff] (!%p248_p3)   ;;  %p326_p8 = scmp.lt.s32.totalorder (!%p248_p3), %s323_s25, 17  ;;  %p336_p9 = scmp.lt.s32.totalorder (!%p248_p3), %s2271_s18, 15 }
   0xd   : > { %1989 = vmatprep.subr.bf16.mxu0 (!%p248_p3), %v2289_v1  ;;  %2003 = vmatprep.mubr.msk.bf16.mxu0 (!%p248_p3), %vm2290_vm0, %v2289_v1  ;;  %v2176_v12 = vld [vmem:[%s2760_s3 + $0x128] sm:$0xff] (!%p248_p3)   ;;  %v2177_v17 = vld [vmem:[%s2760_s3 + $0x30] sm:$0xff] (!%p248_p3)   ;;  %v2179_v23 = vld [vmem:[%s2760_s3 + $0x38] sm:$0xff] (!%p248_p3)  }
   0xe   : > { %v2178_v18 = vld [vmem:[%s2760_s3 + $0x130] sm:$0xff] (!%p248_p3)   ;;  %v2180_v24 = vld [vmem:[%s2760_s3 + $0x138] sm:$0xff] (!%p248_p3)   ;;  %v2182_v28 = vld [vmem:[%s2760_s3 + $0x40] sm:$0xff] (!%p248_p3)  }
   0xf   : > { %1910 = vmatpush3.bf16.msra.mxu1 (!%p248_p3), %v2167_v3  ;;  %v2185_v30 = vld [vmem:[%s2760_s3 + $0x140] sm:$0xff] (!%p248_p3)   ;;  %v2186_v31 = vld [vmem:[%s2760_s3 + $0x48] sm:$0xff] (!%p248_p3)   ;;  %v2188_v33 = vld [vmem:[%s2760_s3 + $0x50] sm:$0xff] (!%p248_p3)  }
  0x10   : > { %s2774_s19 = smov (!%p303_p5, %s2275_s19), 1  ;;  %1990 = vmatpush3.bf16.msra.mxu0 %v2168_v4  ;;  %1911 = vmatprep.subr.bf16.mxu1 %v2289_v1  ;;  %s2776_s15 = smov (!%p315_p7, %s312_s15), 17  ;;  %v2187_v32 = vld [vmem:[%s2760_s3 + $0x148] sm:$0xff]   ;;  %v2189_v34 = vld [vmem:[%s2760_s3 + $0x150] sm:$0xff]   ;;  %v2190_v35 = vld [vmem:[%s2760_s3 + $0x58] sm:$0xff]  }
  0x11   : > { %s306_s8 = scalar_select %p305_p6, %s2271_s18, 17  ;;  %1991 = vmatprep.subr.bf16.mxu0 %v2289_v1  ;;  %v2191_v36 = vld [vmem:[%s2760_s3 + $0x158] sm:$0xff]   ;;  %v2192_v39 = vld [vmem:[%s2760_s3 + $0x60] sm:$0xff]   ;;  %v2194_v43 = vld [vmem:[%s2760_s3 + $0x68] sm:$0xff]  }
  0x12   : > { %s2385_s11 = smul.u32 54, %s2774_s19  ;;  %s2778_s25 = smov (!%p326_p8, %s323_s25), 17  ;;  %v2193_v41 = vld [vmem:[%s2760_s3 + $0x160] sm:$0xff]   ;;  %v2195_v45 = vld [vmem:[%s2760_s3 + $0x168] sm:$0xff]   ;;  %v2196_v47 = vld [vmem:[%s2760_s3 + $0x70] sm:$0xff]  }
  0x13   : > { %s2119_s14 = smul.u32 3, %s306_s8  ;;  %1912 = vmatpush3.bf16.msra.mxu1 %v2169_v5  ;;  %v2197_v51 = vld [vmem:[%s2760_s3 + $0x170] sm:$0xff]   ;;  %v2198_v54 = vld [vmem:[%s2760_s3 + $0x78] sm:$0xff]   ;;  %v2202_v60 = vld [vmem:[%s2760_s3 + $0x80] sm:$0xff]   ;;  %s2780_s18 = smov (!%p336_p9, %s2271_s18), 15 }
  0x14   : > { %1992 = vmatpush3.bf16.msra.mxu0 %v2170_v6  ;;  %1913 = vmatprep.subr.bf16.mxu1 %v2289_v1  ;;  %s2121_s6 = smul.u32 3, %s2776_s15  ;;  %v2199_v57 = vld [vmem:[%s2760_s3 + $0x178] sm:$0xff]   ;;  %v2204_v62 = vld [vmem:[%s2760_s3 + $0x180] sm:$0xff]   ;;  %v2205_v63 = vld [vmem:[%s2760_s3 + $0x88] sm:$0xff]  }
  0x15   : > { %s309_s16 = sadd.s32 %s2385_s11, %s2119_s14  ;;  %1993 = vmatprep.subr.bf16.mxu0 %v2289_v1  ;;  %v2206_v0 = vld [vmem:[%s2760_s3 + $0x188] sm:$0xff]   ;;  %v2207_v2 = vld [vmem:[%s2760_s3 + $0x90] sm:$0xff]   ;;  %v2209_v6 = vld [vmem:[%s2760_s3 + $0x98] sm:$0xff]  }
  0x16   : > { %s1596_s28 = sshll.u32 %s309_s16, 2  ;;  %s319_s13 = sadd.s32 %s2121_s6, %s2385_s11  ;;  %v2208_v3 = vld [vmem:[%s2760_s3 + $0x190] sm:$0xff]  }
  0x17   : > { %1914 = vmatpush3.bf16.msra.mxu1 %v2171_v7  ;;  %s2412_s12 = scalar_lea.vmem %s2757_s0, %s1596_s28  ;;  %s1597_s15 = sshll.u32 %s319_s13, 2 }
  0x18   : > { %1994 = vmatpush3.bf16.msra.mxu0 %v2172_v8  ;;  %1915 = vmatprep.subr.bf16.mxu1 %v2289_v1  ;;  %s2425_s29 = scalar_lea.vmem %s2758_s1, %s1597_s15  ;;  %v2181_v27 = vld [vmem:[%s2412_s12] sm:$0xff]   ;;  %s2122_s15 = smul.u32 3, %s2778_s25  ;;  %v2507_v42 = vld [vmem:[%s2412_s12 + $0x8] ss:$0 sps:$4 sm:$0x11]  }
  0x19   : > { %1995 = vmatprep.subr.bf16.mxu0 %v2289_v1  ;;  %v832_v13 = vld [vmem:[%s2425_s29] sm:$0xf]  ;;  %v2430_v14 = vld [vmem:[%s2425_s29 + $0x4] sm:$0xf]  ;;  %v503_v50 = vshll.u32 %v2507_v42, 16  ;;  %s1600_s28 = sshll.u32 %s2774_s19, 5 }
  0x1a   : > { %v1704_v15 = vcombine.low %v832_v13, %v2430_v14  ;;  %v2435_v16 = vld [vmem:[%s2425_s29 + $0x8] ss:$0 sps:$4 sm:$0x11]   ;;  %v466_v37 = vld [vmem:[%s2412_s12] sm:$0xf]  ;;  %s330_s25 = sadd.s32 %s2122_s15, %s2385_s11 }
  0x1b   : > { %1916 = vmatpush3.bf16.msra.mxu1 %v2173_v9  ;;  %v868_v21 = vshll.u32 %v2435_v16, 16  ;;  %v2494_v38 = vld [vmem:[%s2412_s12 + $0x4] sm:$0xf]  ;;  %s1598_s9 = sshll.u32 %s330_s25, 2  ;;  %v964_v46 = vld [vmem:[%s2425_s29] sm:$0xe] }
  0x1c   : > { %1996 = vmatpush3.bf16.msra.mxu0 %v2174_v10  ;;  %1917 = vmatprep.subr.bf16.mxu1 %v2289_v1  ;;  %v863_v19 = vshll.u32 %v1704_v15, 16  ;;  %v861_v20 = vshrl.u32 %v1704_v15, 16  ;;  %v1628_v40 = vcombine.low %v466_v37, %v2494_v38  ;;  %s2526_s16 = scalar_lea.vmem %s2759_s2, %s1598_s9  ;;  %v1730_v52 = vcombine.low %v964_v46, %v2430_v14  ;;  %v2210_v9 = vld [vmem:[%s2760_s3 + $0x198] sm:$0xff]   ;;  %v2211_v13 = vld [vmem:[%s2760_s3 + $0xa0] sm:$0xff]   ;;  %v2231_v46 = vld [vmem:[%s2760_s3 + $0xe8] sm:$0xff]  }
  0x1d   : > { %1997 = vmatprep.subr.bf16.mxu0 %v2289_v1  ;;  %v870_v26 = vrot.slane %v868_v21, 1  ;;  %v986_v53 = vrot.slane %v2435_v16, 1  ;;  %v505_v56 = vrot.slane %v503_v50, 1  ;;  %v1196_v4 = vld [vmem:[%s2526_s16] sm:$0xf]  ;;  %v2235_v50 = vld [vmem:[%s2760_s3 + $0xf8] sm:$0xff]  }
  0x1e   : > { %v865_v22 = vrot.slane %v863_v19, 1  ;;  %v498_v44 = vshll.u32 %v1628_v40, 16  ;;  %v496_v48 = vshrl.u32 %v1628_v40, 16  ;;  %v985_v58 = vrot.slane %v1730_v52, 1  ;;  %v1197_v5 = vld [vmem:[%s2526_s16 + $0x4] sm:$0xf] }
  0x1f   : > { %1918 = vmatpush3.bf16.msra.mxu1 %v2175_v11  ;;  %v1780_v7 = vcombine.low %v1196_v4, %v1197_v5  ;;  %v2239_v8 = vld [vmem:[%s2526_s16 + $0x8] ss:$0 sps:$4 sm:$0x11]   ;;  %v2212_v16 = vld [vmem:[%s2760_s3 + $0x1a0] sm:$0xff]   ;;  %v2225_v40 = vld [vmem:[%s2760_s3 + $0xd0] sm:$0xff]  }
  0x20   : > { %1998 = vmatpush3.bf16.msra.mxu0 %v2176_v12  ;;  %1919 = vmatprep.subr.bf16.mxu1 %v2289_v1  ;;  %v866_v25 = vor.u32 %v865_v22, %v861_v20  ;;  %v500_v49 = vrot.slane %v498_v44, 1  ;;  %v987_v61 = vsel %vm620_vm2, %v985_v58, %v986_v53  ;;  %v1232_v12 = vshll.u32 %v2239_v8, 16  ;;  %v1328_v19 = vld [vmem:[%s2526_s16] sm:$0xe]  ;;  %v2213_v20 = vld [vmem:[%s2760_s3 + $0xa8] sm:$0xff]  }
  0x21   : > { %1999 = vmatprep.subr.bf16.mxu0 %v2289_v1  ;;  %v1225_v10 = vshrl.u32 %v1780_v7, 16  ;;  %v1227_v11 = vshll.u32 %v1780_v7, 16  ;;  %v1806_v21 = vcombine.low %v1328_v19, %v1197_v5  ;;  %v1350_v22 = vrot.slane %v2239_v8, 1  ;;  %v2222_v37 = vld [vmem:[%s2760_s3 + $0x1c0] sm:$0xff]   ;;  %v2245_v58 = vld [vmem:[%s2760_s3 + $0x228] sm:$0xff]  }
  0x22   : > { %v871_v29 = vsel %vm494_vm1, %v866_v25, %v870_v26  ;;  %v501_v55 = vor.u32 %v500_v49, %v496_v48  ;;  %v1234_v15 = vrot.slane %v1232_v12, 1  ;;  %v2215_v26 = vld [vmem:[%s2760_s3 + $0xb0] sm:$0xff]   ;;  %v2229_v44 = vld [vmem:[%s2760_s3 + $0xe0] sm:$0xff]  }
  0x23   : > { %1920 = vmatpush3.bf16.msra.mxu1 %v2177_v17  ;;  %v1229_v14 = vrot.slane %v1227_v11, 1  ;;  %v1349_v25 = vrot.slane %v1806_v21, 1  ;;  %v2233_v48 = vld [vmem:[%s2760_s3 + $0xf0] sm:$0xff]   ;;  %v2237_v52 = vld [vmem:[%s2425_s29] sm:$0xff]  }
  0x24   : > { %2000 = vmatpush3.bf16.msra.mxu0 %v2178_v18  ;;  %1921 = vmatprep.subr.bf16.mxu1 %v2289_v1  ;;  %v506_v59 = vsel %vm494_vm1, %v501_v55, %v505_v56  ;;  %v2234_v49 = vld [vmem:[%s2760_s3 + $0x1f0] sm:$0xff]   ;;  %v2240_v53 = vld [vmem:[%s2760_s3 + $0x200] sm:$0xff]   ;;  %v2243_v56 = vld [vmem:[%s2760_s3 + $0x218] sm:$0xff]  }
  0x25   : > { %2001 = vmatprep.subr.bf16.mxu0 %v2289_v1  ;;  %v1230_v17 = vor.u32 %v1229_v14, %v1225_v10  ;;  %v2242_v55 = vld [vmem:[%s2760_s3 + $0x210] sm:$0xff]  }
  0x27   : > { %1922 = vmatpush3.bf16.msra.mxu1 %v2179_v23  ;;  %v2593_v18 = vsel %vm494_vm1, %v1230_v17, %v1234_v15  ;;  %v2214_v23 = vld [vmem:[%s2760_s3 + $0x1a8] sm:$0xff]  }
  0x28   : > { %2002 = vmatpush3.bf16.msra.mxu0 %v2180_v24  ;;  %1927 = vmatprep.subr.bf16.mxu1 %v2289_v1  ;;  %v599_v24 = vld [vmem:[%s2412_s12] sm:$0xe]  ;;  %s1599_s12 = sshll.u32 %s2780_s18, 1 }
  0x29   : > { %2007 = vmatprep.subr.bf16.mxu0 %v2289_v1  ;;  %s340_s6 = sadd.s32 %s1600_s28, %s1599_s12 }
  0x2a   : > { %1924 = vmatmul.mubr.bf16.vlgmr.msra.gmra.mrb[0].mxu1 %v2181_v27  ;;  %v1654_v27 = vcombine.low %v599_v24, %v2494_v38  ;;  %v2223_v38 = vld [vmem:[%s2760_s3 + $0xc8] sm:$0xff]   ;;  %s1601_s7 = sshll.u32 %s340_s6, 2 }
  0x2b   : > { %1928 = vmatpush3.bf16.msra.mxu1 %v2182_v28  ;;  %2004 = vmatmul.mubr.bf16.vlgmr.msra.gmra.mrb[0].mxu0 %v871_v29  ;;  %v2610_v28 = vsel %vm620_vm2, %v1349_v25, %v1350_v22  ;;  %v2216_v29 = vld [vmem:[%s2760_s3 + $0x1b0] sm:$0xff]   ;;  %s342_s9 = scalar_lea.vmem %s2762_s5, %s1601_s7 }
  0x2c   : > { %2008 = vmatpush3.bf16.msra.mxu0 %v2185_v30  ;;  %1929 = vmatprep.subr.bf16.mxu1 %v2289_v1  ;;  %v2217_v30 = vld [vmem:[%s2760_s3 + $0xb8] sm:$0xff]  }
  0x2d   : > { %2009 = vmatprep.subr.bf16.mxu0 %v2289_v1  ;;  %1943 = vmatprep.mubr.msk.bf16.mxu1 %vm2290_vm0, %v2289_v1 }
  0x2e   : > { %2023 = vmatprep.mubr.msk.bf16.mxu0 %vm2290_vm0, %v2289_v1 }
  0x2f   : > { %1930 = vmatpush3.bf16.msra.mxu1 %v2186_v31  ;;  %v621_v31 = vrot.slane %v1654_v27, 1 }
  0x30   : > { %2010 = vmatpush3.bf16.msra.mxu0 %v2187_v32  ;;  %1931 = vmatprep.subr.bf16.mxu1 %v2289_v1  ;;  %v622_v32 = vrot.slane %v2507_v42, 1  ;;  %v2227_v42 = vld [vmem:[%s2760_s3 + $0xd8] sm:$0xff]  }
  0x31   : > { %2011 = vmatprep.subr.bf16.mxu0 %v2289_v1 }
  0x33   : > { %1932 = vmatpush3.bf16.msra.mxu1 %v2188_v33  ;;  %v2218_v33 = vld [vmem:[%s2760_s3 + $0x1b8] sm:$0xff]  }
  0x34   : > { %2012 = vmatpush3.bf16.msra.mxu0 %v2189_v34  ;;  %1933 = vmatprep.subr.bf16.mxu1 %v2289_v1  ;;  %v623_v34 = vsel %vm620_vm2, %v621_v31, %v622_v32 }
  0x35   : > { %2013 = vmatprep.subr.bf16.mxu0 %v2289_v1 }
  0x37   : > { %1934 = vmatpush3.bf16.msra.mxu1 %v2190_v35  ;;  %v2220_v35 = vld [vmem:[%s2760_s3 + $0xc0] sm:$0xff]  }
  0x38   : > { %2014 = vmatpush3.bf16.msra.mxu0 %v2191_v36  ;;  %1935 = vmatprep.subr.bf16.mxu1 %v2289_v1  ;;  %v2221_v36 = vld [vmem:[%s2526_s16] sm:$0xff]  }
  0x39   : > { %2015 = vmatprep.subr.bf16.mxu0 %v2289_v1 }
  0x3b   : > { %1936 = vmatpush3.bf16.msra.mxu1 %v2192_v39  ;;  %v2224_v39 = vld [vmem:[%s2760_s3 + $0x1c8] sm:$0xff]  }
  0x3c   : > { %2016 = vmatpush3.bf16.msra.mxu0 %v2193_v41  ;;  %1937 = vmatprep.subr.bf16.mxu1 %v2289_v1  ;;  %v2226_v41 = vld [vmem:[%s2760_s3 + $0x1d0] sm:$0xff]  }
  0x3d   : > { %2017 = vmatprep.subr.bf16.mxu0 %v2289_v1 }
  0x3f   : > { %1938 = vmatpush3.bf16.msra.mxu1 %v2194_v43  ;;  %v2228_v43 = vld [vmem:[%s2760_s3 + $0x1d8] sm:$0xff]  }
  0x40   : > { %2018 = vmatpush3.bf16.msra.mxu0 %v2195_v45  ;;  %1939 = vmatprep.subr.bf16.mxu1 %v2289_v1  ;;  %v2230_v45 = vld [vmem:[%s2760_s3 + $0x1e0] sm:$0xff]  }
  0x41   : > { %2019 = vmatprep.subr.bf16.mxu0 %v2289_v1 }
  0x43   : > { %1940 = vmatpush3.bf16.msra.mxu1 %v2196_v47  ;;  %v2232_v47 = vld [vmem:[%s2760_s3 + $0x1e8] sm:$0xff]  }
  0x44   : > { %2020 = vmatpush3.bf16.msra.mxu0 %v2197_v51  ;;  %1941 = vmatprep.subr.bf16.mxu1 %v2289_v1  ;;  %v2236_v51 = vld [vmem:[%s2760_s3 + $0x1f8] sm:$0xff]  }
  0x45   : > { %2021 = vmatprep.subr.bf16.mxu0 %v2289_v1 }
  0x47   : > { %1942 = vmatpush3.bf16.msra.mxu1 %v2198_v54  ;;  %v2241_v54 = vld [vmem:[%s2760_s3 + $0x208] sm:$0xff]  }
  0x48   : > { %2022 = vmatpush3.bf16.msra.mxu0 %v2199_v57  ;;  %1947 = vmatprep.subr.bf16.mxu1 %v2289_v1  ;;  %v2244_v57 = vld [vmem:[%s2760_s3 + $0x220] sm:$0xff]  }
  0x49   : > { %2027 = vmatprep.subr.bf16.mxu0 %v2289_v1 }
  0x4a   : > { %1944 = vmatmul.mubr.bf16.vlgmr.msra.gmra.mrb[0].mxu1 %v506_v59  ;;  %v2246_v59 = vld [vmem:[%s2760_s3 + $0x230] sm:$0xff]  }
  0x4b   : > { %1948 = vmatpush3.bf16.msra.mxu1 %v2202_v60  ;;  %2024 = vmatmul.mubr.bf16.vlgmr.msra.gmra.mrb[0].mxu0 %v987_v61  ;;  %v2247_v60 = vld [vmem:[%s2760_s3 + $0x238] sm:$0xff]  }
  0x4c   : > { %2028 = vmatpush3.bf16.msra.mxu0 %v2204_v62  ;;  %1949 = vmatprep.subr.bf16.mxu1 %v2289_v1 }
  0x4d   : > { %2029 = vmatprep.subr.bf16.mxu0 %v2289_v1  ;;  %1963 = vmatprep.mubr.msk.bf16.mxu1 %vm2290_vm0, %v2289_v1 }
  0x4e   : > { %2043 = vmatprep.mubr.msk.bf16.mxu0 %vm2290_vm0, %v2289_v1 }
  0x4f   : > { %1950 = vmatpush3.bf16.msra.mxu1 %v2205_v63 }
  0x50   : > { %2030 = vmatpush3.bf16.msra.mxu0 %v2206_v0  ;;  %1951 = vmatprep.subr.bf16.mxu1 %v2289_v1 }
  0x51   : > { %2031 = vmatprep.subr.bf16.mxu0 %v2289_v1 }
  0x53   : > { %1952 = vmatpush3.bf16.msra.mxu1 %v2207_v2  ;;  %v1602_v2 = vld [vmem:[%s2761_s4] ss:$0 sm:$0xff] }
  0x54   : > { %2032 = vmatpush3.bf16.msra.mxu0 %v2208_v3  ;;  %1953 = vmatprep.subr.bf16.mxu1 %v2289_v1 }
  0x55   : > { %2033 = vmatprep.subr.bf16.mxu0 %v2289_v1 }
  0x57   : > { %1954 = vmatpush3.bf16.msra.mxu1 %v2209_v6 }
  0x58   : > { %2034 = vmatpush3.bf16.msra.mxu0 %v2210_v9  ;;  %1955 = vmatprep.subr.bf16.mxu1 %v2289_v1 }
  0x59   : > { %2035 = vmatprep.subr.bf16.mxu0 %v2289_v1 }
  0x5b   : > { %1956 = vmatpush3.bf16.msra.mxu1 %v2211_v13 }
  0x5c   : > { %2036 = vmatpush3.bf16.msra.mxu0 %v2212_v16  ;;  %1957 = vmatprep.subr.bf16.mxu1 %v2289_v1 }
  0x5d   : > { %2037 = vmatprep.subr.bf16.mxu0 %v2289_v1 }
  0x5f   : > { %1958 = vmatpush3.bf16.msra.mxu1 %v2213_v20 }
  0x60   : > { %2038 = vmatpush3.bf16.msra.mxu0 %v2214_v23  ;;  %1959 = vmatprep.subr.bf16.mxu1 %v2289_v1 }
  0x61   : > { %2039 = vmatprep.subr.bf16.mxu0 %v2289_v1 }
  0x63   : > { %1960 = vmatpush3.bf16.msra.mxu1 %v2215_v26 }
  0x64   : > { %2040 = vmatpush3.bf16.msra.mxu0 %v2216_v29  ;;  %1961 = vmatprep.subr.bf16.mxu1 %v2289_v1 }
  0x65   : > { %2041 = vmatprep.subr.bf16.mxu0 %v2289_v1 }
  0x67   : > { %1962 = vmatpush3.bf16.msra.mxu1 %v2217_v30 }
  0x68   : > { %2042 = vmatpush3.bf16.msra.mxu0 %v2218_v33  ;;  %1967 = vmatprep.subr.bf16.mxu1 %v2289_v1 }
  0x69   : > { %2047 = vmatprep.subr.bf16.mxu0 %v2289_v1 }
  0x6a   : > { %1964 = vmatmul.mubr.bf16.vlgmr.msra.gmra.mrb[0].mxu1 %v623_v34 }
  0x6b   : > { %1968 = vmatpush3.bf16.msra.mxu1 %v2220_v35  ;;  %2044 = vmatmul.mubr.bf16.vlgmr.msra.gmra.mrb[0].mxu0 %v2221_v36 }
  0x6c   : > { %2048 = vmatpush3.bf16.msra.mxu0 %v2222_v37  ;;  %1969 = vmatprep.subr.bf16.mxu1 %v2289_v1 }
  0x6d   : > { %2049 = vmatprep.subr.bf16.mxu0 %v2289_v1  ;;  %1983 = vmatprep.mubr.msk.bf16.mxu1 %vm2290_vm0, %v2289_v1 }
  0x6e   : > { %2063 = vmatprep.mubr.msk.bf16.mxu0 %vm2290_vm0, %v2289_v1 }
  0x6f   : > { %1970 = vmatpush3.bf16.msra.mxu1 %v2223_v38 }
  0x70   : > { %2050 = vmatpush3.bf16.msra.mxu0 %v2224_v39  ;;  %1971 = vmatprep.subr.bf16.mxu1 %v2289_v1 }
  0x71   : > { %2051 = vmatprep.subr.bf16.mxu0 %v2289_v1 }
  0x73   : > { %1972 = vmatpush3.bf16.msra.mxu1 %v2225_v40 }
  0x74   : > { %2052 = vmatpush3.bf16.msra.mxu0 %v2226_v41  ;;  %1973 = vmatprep.subr.bf16.mxu1 %v2289_v1 }
  0x75   : > { %2053 = vmatprep.subr.bf16.mxu0 %v2289_v1 }
  0x77   : > { %1974 = vmatpush3.bf16.msra.mxu1 %v2227_v42 }
  0x78   : > { %2054 = vmatpush3.bf16.msra.mxu0 %v2228_v43  ;;  %1975 = vmatprep.subr.bf16.mxu1 %v2289_v1 }
  0x79   : > { %2055 = vmatprep.subr.bf16.mxu0 %v2289_v1 }
  0x7b   : > { %1976 = vmatpush3.bf16.msra.mxu1 %v2229_v44 }
  0x7c   : > { %2056 = vmatpush3.bf16.msra.mxu0 %v2230_v45  ;;  %1977 = vmatprep.subr.bf16.mxu1 %v2289_v1 }
  0x7d   : > { %2057 = vmatprep.subr.bf16.mxu0 %v2289_v1 }
  0x7f   : > { %1978 = vmatpush3.bf16.msra.mxu1 %v2231_v46 }
  0x80   : > { %2058 = vmatpush3.bf16.msra.mxu0 %v2232_v47  ;;  %1979 = vmatprep.subr.bf16.mxu1 %v2289_v1 }
  0x81   : > { %2059 = vmatprep.subr.bf16.mxu0 %v2289_v1 }
  0x83   : > { %1980 = vmatpush3.bf16.msra.mxu1 %v2233_v48 }
  0x84   : > { %2060 = vmatpush3.bf16.msra.mxu0 %v2234_v49  ;;  %1981 = vmatprep.subr.bf16.mxu1 %v2289_v1 }
  0x85   : > { %2061 = vmatprep.subr.bf16.mxu0 %v2289_v1 }
  0x87   : > { %1982 = vmatpush3.bf16.msra.mxu1 %v2235_v50 }
  0x88   : > { %2062 = vmatpush3.bf16.msra.mxu0 %v2236_v51 }
  0x89   : > { %2067 = vmatprep.subr.bf16.mxu0 %v2289_v1 }
  0x8a   : > { %1984 = vmatmul.mubr.bf16.vlgmr.msra.gmra.mrb[0].mxu1 %v2237_v52 }
  0x8b   : > { %2064 = vmatmul.mubr.bf16.vlgmr.msra.gmra.mrb[0].mxu0 %v2593_v18 }
  0x8c   : > { %2068 = vmatpush3.bf16.msra.mxu0 %v2240_v53  ;;  %2083 = vmatprep.mubr.msk.bf16.mxu0 %vm2290_vm0, %v2289_v1 }
  0x8d   : > { %2069 = vmatprep.subr.bf16.mxu0 %v2289_v1 }
  0x90   : > { %2070 = vmatpush3.bf16.msra.mxu0 %v2241_v54 }
  0x91   : > { %2071 = vmatprep.subr.bf16.mxu0 %v2289_v1 }
  0x94   : > { %2072 = vmatpush3.bf16.msra.mxu0 %v2242_v55 }
  0x95   : > { %2073 = vmatprep.subr.bf16.mxu0 %v2289_v1 }
  0x98   : > { %2074 = vmatpush3.bf16.msra.mxu0 %v2243_v56 }
  0x99   : > { %2075 = vmatprep.subr.bf16.mxu0 %v2289_v1 }
  0x9c   : > { %2076 = vmatpush3.bf16.msra.mxu0 %v2244_v57 }
  0x9d   : > { %2077 = vmatprep.subr.bf16.mxu0 %v2289_v1 }
  0xa0   : > { %2078 = vmatpush3.bf16.msra.mxu0 %v2245_v58 }
  0xa1   : > { %2079 = vmatprep.subr.bf16.mxu0 %v2289_v1 }
  0xa4   : > { %2080 = vmatpush3.bf16.msra.mxu0 %v2246_v59 }
  0xa5   : > { %2081 = vmatprep.subr.bf16.mxu0 %v2289_v1 }
  0xa8   : > { %2082 = vmatpush3.bf16.msra.mxu0 %v2247_v60 }
  0xab   : > { %2084 = vmatmul.mubr.bf16.vlgmr.msra.gmra.mrb[0].mxu0 %v2610_v28 }
 0x15d   : > { %v823_v61 = vpop.f32.mrb[0].mxu1 }
 0x15e   : > { %v1985_v62 = vpop.f32.mrb[1].mxu1  ;;  %v2087_v3 = vadd.f32 %v1602_v2, %v823_v61 }
 0x15f   : > { %v826_v63 = vpop.f32.mrb[2].mxu1 }
 0x160   : > { %v1986_v0 = vpop.f32.mrb[3].mxu1  ;;  %v2089_v5 = vadd.f32 %v1602_v2, %v826_v63 }
 0x17e   : > { %v1435_v4 = vpop.f32.mrb[0].mxu0 }
 0x17f   : > { %v2088_v1 = vadd.f32 %v2087_v3, %v1435_v4  ;;  %v2085_v6 = vpop.f32.mrb[1].mxu0 }
 0x180   : > { %v1438_v7 = vpop.f32.mrb[2].mxu0 }
 0x181   : > { %v2090_v8 = vadd.f32 %v2089_v5, %v1438_v7  ;;  %v2086_v9 = vpop.f32.mrb[3].mxu0 }
 0x183   : > { %v1824_v10 = vpack.c.bf16 %v2090_v8, %v2088_v1 }
 0x185   : > { %1825 = vst [vmem:[%s342_s9] sm:$0xff] %v1824_v10  }
 0x186 PF: > { %s15_s22 = sadd.s32 1, %s2287_s22   ;;  %s2763_s18 = smov %s2279_s20 }
 0x187   : > { %p12_p10 = scmp.ge.s32.totalorder %s15_s22, 34   ;;  %s2764_s19 = smov %s2283_s21 }
 0x188   : > { %s2765_s20 = smov %s2768_s23  ;;  %s2766_s21 = smov %s2772_s24 }
 0x189   :  { %14 = sbr.rel (!%p12_p10) target bundleno = 3 (0x3), region = 84 }

// kernel: encoder_forward.38
= control target key start
LH: loop header
LB: loop body
LE: loop exit
PB: predicated region body
PF: predicated region fallthrough
CT: control target
= control target key end

     0   :  { %v280_v0 = vmov 0.0   ;;  %s362_s1 = inlined_call_operand.vmem [shape: f32[1,128], index: 1, kind: output, shape index: {0}]   ;;  %s363_s2 = inlined_call_operand.vmem [shape: f32[1,128], index: 2, kind: output, shape index: {1}]   ;;  %s364_s0 = inlined_call_operand.vmem [shape: bf16[256,128], index: 0, kind: input, shape index: {}]  }
   0x1   :  { %14 = vst [vmem:[%s362_s1] sm:$0x1] %v280_v0  ;;  %15 = vst [vmem:[%s363_s2] sm:$0x1] %v280_v0  ;;  %v201_v1 = vld [vmem:[%s364_s0] sm:$0xff]   ;;  %v264_v2 = vld [vmem:[%s364_s0 + $0x8] sm:$0xff]  }
   0x2   :  { %v202_v3 = vunpack.c.l.bf16 %v201_v1  ;;  %v203_v4 = vunpack.c.h.bf16 %v201_v1  ;;  %v206_v5 = vunpack.c.l.bf16 %v264_v2  ;;  %v265_v7 = vld [vmem:[%s364_s0 + $0x10] sm:$0xff]   ;;  %v207_v8 = vunpack.c.h.bf16 %v264_v2  ;;  %v266_v12 = vld [vmem:[%s364_s0 + $0x18] sm:$0xff]   ;;  %v267_v20 = vld [vmem:[%s364_s0 + $0x20] sm:$0xff]  }
   0x3   :  { %v210_v10 = vunpack.c.l.bf16 %v265_v7  ;;  %v211_v15 = vunpack.c.h.bf16 %v265_v7  ;;  %v214_v18 = vunpack.c.l.bf16 %v266_v12  ;;  %v215_v23 = vunpack.c.h.bf16 %v266_v12  ;;  %v268_v29 = vld [vmem:[%s364_s0 + $0x28] sm:$0xff]   ;;  %v269_v38 = vld [vmem:[%s364_s0 + $0x30] sm:$0xff]   ;;  %v270_v47 = vld [vmem:[%s364_s0 + $0x38] sm:$0xff]  }
   0x4   :  { %v81_v6 = vadd.f32 %v203_v4, %v202_v3  ;;  %v121_v13 = vmul.f32 %v202_v3, %v202_v3  ;;  %v122_v14 = vmul.f32 %v203_v4, %v203_v4  ;;  %v123_v17 = vmul.f32 %v206_v5, %v206_v5  ;;  %v271_v56 = vld [vmem:[%s364_s0 + $0x40] sm:$0xff]   ;;  %v272_v1 = vld [vmem:[%s364_s0 + $0x48] sm:$0xff]  }
   0x5   :  { %v124_v21 = vmul.f32 %v207_v8, %v207_v8  ;;  %v125_v25 = vmul.f32 %v210_v10, %v210_v10  ;;  %v218_v27 = vunpack.c.l.bf16 %v267_v20  ;;  %v126_v30 = vmul.f32 %v211_v15, %v211_v15 }
   0x6   :  { %v82_v9 = vadd.f32 %v206_v5, %v81_v6  ;;  %v153_v22 = vadd.f32 %v122_v14, %v121_v13  ;;  %v219_v32 = vunpack.c.h.bf16 %v267_v20  ;;  %v127_v34 = vmul.f32 %v214_v18, %v214_v18 }
   0x7   :  { %v222_v36 = vunpack.c.l.bf16 %v268_v29  ;;  %v128_v39 = vmul.f32 %v215_v23, %v215_v23  ;;  %v223_v41 = vunpack.c.h.bf16 %v268_v29  ;;  %v129_v43 = vmul.f32 %v218_v27, %v218_v27 }
   0x8   :  { %v83_v11 = vadd.f32 %v207_v8, %v82_v9  ;;  %v154_v26 = vadd.f32 %v153_v22, %v123_v17  ;;  %v226_v45 = vunpack.c.l.bf16 %v269_v38  ;;  %v130_v48 = vmul.f32 %v219_v32, %v219_v32 }
   0x9   :  { %v227_v50 = vunpack.c.h.bf16 %v269_v38  ;;  %v131_v52 = vmul.f32 %v222_v36, %v222_v36  ;;  %v230_v54 = vunpack.c.l.bf16 %v270_v47  ;;  %v132_v57 = vmul.f32 %v223_v41, %v223_v41 }
   0xa   :  { %v84_v16 = vadd.f32 %v210_v10, %v83_v11  ;;  %v155_v31 = vadd.f32 %v154_v26, %v124_v21  ;;  %v231_v59 = vunpack.c.h.bf16 %v270_v47  ;;  %v133_v61 = vmul.f32 %v226_v45, %v226_v45  ;;  %v273_v10 = vld [vmem:[%s364_s0 + $0x50] sm:$0xff]  }
   0xb   :  { %v234_v63 = vunpack.c.l.bf16 %v271_v56  ;;  %v134_v2 = vmul.f32 %v227_v50, %v227_v50  ;;  %v235_v4 = vunpack.c.h.bf16 %v271_v56  ;;  %v135_v6 = vmul.f32 %v230_v54, %v230_v54 }
   0xc   :  { %v85_v19 = vadd.f32 %v211_v15, %v84_v16  ;;  %v156_v35 = vadd.f32 %v155_v31, %v125_v25  ;;  %v238_v8 = vunpack.c.l.bf16 %v272_v1  ;;  %v136_v11 = vmul.f32 %v231_v59, %v231_v59 }
   0xd   :  { %v239_v13 = vunpack.c.h.bf16 %v272_v1  ;;  %v137_v15 = vmul.f32 %v234_v63, %v234_v63  ;;  %v242_v17 = vunpack.c.l.bf16 %v273_v10  ;;  %v138_v20 = vmul.f32 %v235_v4, %v235_v4 }
   0xe   :  { %v86_v24 = vadd.f32 %v214_v18, %v85_v19  ;;  %v157_v40 = vadd.f32 %v156_v35, %v126_v30  ;;  %v274_v19 = vld [vmem:[%s364_s0 + $0x58] sm:$0xff]   ;;  %v243_v22 = vunpack.c.h.bf16 %v273_v10 }
   0xf   :  { %v246_v26 = vunpack.c.l.bf16 %v274_v19  ;;  %v140_v29 = vmul.f32 %v239_v13, %v239_v13  ;;  %v247_v31 = vunpack.c.h.bf16 %v274_v19 }
  0x10   :  { %v87_v28 = vadd.f32 %v215_v23, %v86_v24  ;;  %v158_v44 = vadd.f32 %v157_v40, %v127_v34  ;;  %v139_v24 = vmul.f32 %v238_v8, %v238_v8  ;;  %v142_v38 = vmul.f32 %v243_v22, %v243_v22 }
  0x11   :  { %v144_v47 = vmul.f32 %v247_v31, %v247_v31 }
  0x12   :  { %v88_v33 = vadd.f32 %v218_v27, %v87_v28  ;;  %v159_v49 = vadd.f32 %v158_v44, %v128_v39  ;;  %v275_v28 = vld [vmem:[%s364_s0 + $0x60] sm:$0xff]  }
  0x13   :  { %v250_v35 = vunpack.c.l.bf16 %v275_v28  ;;  %v251_v40 = vunpack.c.h.bf16 %v275_v28  ;;  %v120_v28 = vld [vmem:[%s363_s2] sm:$0x1] }
  0x14   :  { %v89_v37 = vadd.f32 %v219_v32, %v88_v33  ;;  %v160_v53 = vadd.f32 %v159_v49, %v129_v43  ;;  %v141_v33 = vmul.f32 %v242_v17, %v242_v17 }
  0x15   :  { %v146_v56 = vmul.f32 %v251_v40, %v251_v40 }
  0x16   :  { %v90_v42 = vadd.f32 %v222_v36, %v89_v37  ;;  %v161_v58 = vadd.f32 %v160_v53, %v130_v48  ;;  %v276_v37 = vld [vmem:[%s364_s0 + $0x68] sm:$0xff]  }
  0x17   :  { %v254_v44 = vunpack.c.l.bf16 %v276_v37  ;;  %v255_v49 = vunpack.c.h.bf16 %v276_v37 }
  0x18   :  { %v91_v46 = vadd.f32 %v223_v41, %v90_v42  ;;  %v162_v62 = vadd.f32 %v161_v58, %v131_v52  ;;  %v143_v42 = vmul.f32 %v246_v26, %v246_v26 }
  0x1a   :  { %v92_v51 = vadd.f32 %v226_v45, %v91_v46  ;;  %v163_v3 = vadd.f32 %v162_v62, %v132_v57  ;;  %v277_v46 = vld [vmem:[%s364_s0 + $0x70] sm:$0xff]  }
  0x1b   :  { %v258_v53 = vunpack.c.l.bf16 %v277_v46  ;;  %v259_v58 = vunpack.c.h.bf16 %v277_v46 }
  0x1c   :  { %v93_v55 = vadd.f32 %v227_v50, %v92_v51  ;;  %v164_v7 = vadd.f32 %v163_v3, %v133_v61  ;;  %v145_v51 = vmul.f32 %v250_v35, %v250_v35 }
  0x1e   :  { %v94_v60 = vadd.f32 %v230_v54, %v93_v55  ;;  %v165_v12 = vadd.f32 %v164_v7, %v134_v2  ;;  %v278_v55 = vld [vmem:[%s364_s0 + $0x78] sm:$0xff]   ;;  %v150_v7 = vmul.f32 %v259_v58, %v259_v58 }
  0x1f   :  { %v262_v62 = vunpack.c.l.bf16 %v278_v55  ;;  %v263_v2 = vunpack.c.h.bf16 %v278_v55 }
  0x20   :  { %v95_v0 = vadd.f32 %v231_v59, %v94_v60  ;;  %v166_v16 = vadd.f32 %v165_v12, %v135_v6  ;;  %v147_v60 = vmul.f32 %v254_v44, %v254_v44 }
  0x21   :  { %v151_v10 = vmul.f32 %v262_v62, %v262_v62 }
  0x22   :  { %v96_v5 = vadd.f32 %v234_v63, %v95_v0  ;;  %v167_v21 = vadd.f32 %v166_v16, %v136_v11  ;;  %v148_v0 = vmul.f32 %v255_v49, %v255_v49 }
  0x24   :  { %v97_v9 = vadd.f32 %v235_v4, %v96_v5  ;;  %v168_v25 = vadd.f32 %v167_v21, %v137_v15  ;;  %v149_v4 = vmul.f32 %v258_v53, %v258_v53 }
  0x26   :  { %v98_v14 = vadd.f32 %v238_v8, %v97_v9  ;;  %v169_v30 = vadd.f32 %v168_v25, %v138_v20  ;;  %v80_v20 = vld [vmem:[%s362_s1] sm:$0x1] }
  0x28   :  { %v99_v18 = vadd.f32 %v239_v13, %v98_v14  ;;  %v170_v34 = vadd.f32 %v169_v30, %v139_v24  ;;  %v152_v13 = vmul.f32 %v263_v2, %v263_v2 }
  0x2a   :  { %v100_v23 = vadd.f32 %v242_v17, %v99_v18  ;;  %v171_v39 = vadd.f32 %v170_v34, %v140_v29 }
  0x2c   :  { %v101_v27 = vadd.f32 %v243_v22, %v100_v23  ;;  %v172_v43 = vadd.f32 %v171_v39, %v141_v33 }
  0x2e   :  { %v102_v32 = vadd.f32 %v246_v26, %v101_v27  ;;  %v173_v48 = vadd.f32 %v172_v43, %v142_v38 }
  0x30   :  { %v103_v36 = vadd.f32 %v247_v31, %v102_v32  ;;  %v174_v52 = vadd.f32 %v173_v48, %v143_v42 }
  0x32   :  { %v104_v41 = vadd.f32 %v250_v35, %v103_v36  ;;  %v175_v57 = vadd.f32 %v174_v52, %v144_v47 }
  0x34   :  { %v105_v45 = vadd.f32 %v251_v40, %v104_v41  ;;  %v176_v61 = vadd.f32 %v175_v57, %v145_v51 }
  0x36   :  { %v106_v50 = vadd.f32 %v254_v44, %v105_v45  ;;  %v177_v1 = vadd.f32 %v176_v61, %v146_v56 }
  0x38   :  { %v107_v54 = vadd.f32 %v255_v49, %v106_v50  ;;  %v178_v5 = vadd.f32 %v177_v1, %v147_v60 }
  0x3a   :  { %v108_v59 = vadd.f32 %v258_v53, %v107_v54  ;;  %v179_v8 = vadd.f32 %v178_v5, %v148_v0 }
  0x3c   :  { %v109_v63 = vadd.f32 %v259_v58, %v108_v59  ;;  %v180_v11 = vadd.f32 %v179_v8, %v149_v4 }
  0x3e   :  { %v110_v3 = vadd.f32 %v262_v62, %v109_v63  ;;  %v181_v14 = vadd.f32 %v180_v11, %v150_v7 }
  0x40   :  { %v111_v6 = vadd.f32 %v263_v2, %v110_v3  ;;  %v182_v16 = vadd.f32 %v181_v14, %v151_v10 }
  0x42   :  { %v112_v9 = vrot.slane %v111_v6, 4  ;;  %v183_v18 = vadd.f32 %v182_v16, %v152_v13 }
  0x44   :  { %v113_v12 = vadd.f32 %v112_v9, %v111_v6  ;;  %v184_v21 = vrot.slane %v183_v18, 4 }
  0x46   :  { %v114_v15 = vrot.slane %v113_v12, 2  ;;  %v185_v23 = vadd.f32 %v184_v21, %v183_v18 }
  0x48   :  { %v115_v17 = vadd.f32 %v114_v15, %v113_v12  ;;  %v186_v25 = vrot.slane %v185_v23, 2 }
  0x4a   :  { %v116_v19 = vrot.slane %v115_v17, 1  ;;  %v187_v26 = vadd.f32 %v186_v25, %v185_v23 }
  0x4c   :  { %v117_v22 = vadd.f32 %v116_v19, %v115_v17  ;;  %v188_v27 = vrot.slane %v187_v26, 1 }
  0x4e   :  { %v118_v24 = vadd.f32 %v117_v22, %v80_v20  ;;  %v189_v29 = vadd.f32 %v188_v27, %v187_v26 }
  0x50   :  { %119 = vst [vmem:[%s362_s1] sm:$0x1] %v118_v24  ;;  %v190_v30 = vadd.f32 %v189_v29, %v120_v28 }
  0x52   :  { %191 = vst [vmem:[%s363_s2] sm:$0x1] %v190_v30 }

// kernel: encoder_forward.39
= control target key start
LH: loop header
LB: loop body
LE: loop exit
PB: predicated region body
PF: predicated region fallthrough
CT: control target
= control target key end

     0   :  { %s1208_s0 = inlined_call_operand.vmem [shape: bf16[256,128], index: 0, kind: input, shape index: {}]   ;;  %s1209_s1 = inlined_call_operand.vmem [shape: f32[1,128], index: 1, kind: input, shape index: {}]   ;;  %s1210_s2 = inlined_call_operand.vmem [shape: f32[1,128], index: 2, kind: input, shape index: {}]   ;;  %s1211_s3 = inlined_call_operand.vmem [shape: bf16[256,128], index: 3, kind: output, shape index: {}]  }
   0x1   :  { %v579_v0 = vld [vmem:[%s1208_s0] sm:$0xff]   ;;  %v722_v4 = vld [vmem:[%s1208_s0 + $0x8] sm:$0xff]   ;;  %v723_v5 = vld [vmem:[%s1208_s0 + $0x10] sm:$0xff]  }
   0x2   :  { %v906_v1 = vld [vmem:[%s1209_s1] ss:$0 sm:$0xff]  ;;  %v580_v2 = vunpack.c.l.bf16 %v579_v0  ;;  %v581_v3 = vunpack.c.h.bf16 %v579_v0  ;;  %v724_v6 = vld [vmem:[%s1208_s0 + $0x18] sm:$0xff]   ;;  %v584_v8 = vunpack.c.l.bf16 %v722_v4  ;;  %v585_v9 = vunpack.c.h.bf16 %v722_v4  ;;  %v726_v37 = vld [vmem:[%s1208_s0 + $0x28] sm:$0xff]  }
   0x3   :  { %v920_v7 = vld [vmem:[%s1210_s2] ss:$0 sm:$0xff]  ;;  %v588_v10 = vunpack.c.l.bf16 %v723_v5  ;;  %v589_v11 = vunpack.c.h.bf16 %v723_v5  ;;  %v592_v14 = vunpack.c.l.bf16 %v724_v6  ;;  %v593_v15 = vunpack.c.h.bf16 %v724_v6  ;;  %v727_v38 = vld [vmem:[%s1208_s0 + $0x30] sm:$0xff]  }
   0x4   :  { %v85_v12 = vmul.f32 %v580_v2, %v906_v1  ;;  %v86_v13 = vmul.f32 %v581_v3, %v906_v1  ;;  %v87_v16 = vmul.f32 %v584_v8, %v906_v1  ;;  %v88_v17 = vmul.f32 %v585_v9, %v906_v1  ;;  %v725_v32 = vld [vmem:[%s1208_s0 + $0x20] sm:$0xff]   ;;  %v728_v2 = vld [vmem:[%s1208_s0 + $0x38] sm:$0xff]  }
   0x5   :  { %v89_v18 = vmul.f32 %v588_v10, %v906_v1  ;;  %v90_v19 = vmul.f32 %v589_v11, %v906_v1  ;;  %v91_v22 = vmul.f32 %v592_v14, %v906_v1  ;;  %v92_v23 = vmul.f32 %v593_v15, %v906_v1  ;;  %v729_v14 = vld [vmem:[%s1208_s0 + $0x40] sm:$0xff]  }
   0x6   :  { %v929_v20 = vadd.f32 %v920_v7, %v85_v12  ;;  %v932_v21 = vadd.f32 %v920_v7, %v86_v13  ;;  %v937_v24 = vadd.f32 %v920_v7, %v87_v16  ;;  %v940_v25 = vadd.f32 %v920_v7, %v88_v17 }
   0x7   :  { %v943_v26 = vadd.f32 %v920_v7, %v89_v18  ;;  %v946_v27 = vadd.f32 %v920_v7, %v90_v19  ;;  %v951_v30 = vadd.f32 %v920_v7, %v91_v22  ;;  %v954_v31 = vadd.f32 %v920_v7, %v92_v23 }
   0x8   :  { %v156_v28 = vsub.f32 0.0, %v929_v20  ;;  %v157_v29 = vsub.f32 0.0, %v932_v21  ;;  %v158_v33 = vsub.f32 0.0, %v937_v24  ;;  %v159_v34 = vsub.f32 0.0, %v940_v25 }
   0x9   :  { %v160_v35 = vsub.f32 0.0, %v943_v26  ;;  %v161_v36 = vsub.f32 0.0, %v946_v27  ;;  %v162_v41 = vsub.f32 0.0, %v951_v30  ;;  %v163_v42 = vsub.f32 0.0, %v954_v31 }
   0xa   :  { %v188_v39 = vmul.f32 1.442695, %v156_v28  ;;  %v190_v40 = vmul.f32 1.442695, %v157_v29  ;;  %v192_v43 = vmul.f32 1.442695, %v158_v33  ;;  %v596_v46 = vunpack.c.l.bf16 %v725_v32 }
   0xb   :  { %v194_v44 = vmul.f32 1.442695, %v159_v34  ;;  %v196_v45 = vmul.f32 1.442695, %v160_v35  ;;  %v198_v47 = vmul.f32 1.442695, %v161_v36  ;;  %v597_v50 = vunpack.c.h.bf16 %v725_v32 }
   0xc   :  { %752 = vpow2.f32 %v188_v39  ;;  %v200_v48 = vmul.f32 1.442695, %v162_v41  ;;  %v202_v49 = vmul.f32 1.442695, %v163_v42  ;;  %v93_v51 = vmul.f32 %v596_v46, %v906_v1 }
   0xd   :  { %754 = vpow2.f32 %v190_v40  ;;  %v600_v52 = vunpack.c.l.bf16 %v726_v37  ;;  %v601_v53 = vunpack.c.h.bf16 %v726_v37  ;;  %v604_v54 = vunpack.c.l.bf16 %v727_v38 }
   0xe   :  { %756 = vpow2.f32 %v192_v43  ;;  %v605_v55 = vunpack.c.h.bf16 %v727_v38  ;;  %v94_v56 = vmul.f32 %v597_v50, %v906_v1  ;;  %v974_v57 = vadd.f32 %v920_v7, %v93_v51  ;;  %v730_v51 = vld [vmem:[%s1208_s0 + $0x48] sm:$0xff]  }
   0xf   :  { %758 = vpow2.f32 %v194_v44  ;;  %v95_v58 = vmul.f32 %v600_v52, %v906_v1  ;;  %v96_v59 = vmul.f32 %v601_v53, %v906_v1  ;;  %v97_v60 = vmul.f32 %v604_v54, %v906_v1 }
  0x10   :  { %760 = vpow2.f32 %v196_v45  ;;  %v98_v61 = vmul.f32 %v605_v55, %v906_v1  ;;  %v981_v62 = vadd.f32 %v920_v7, %v94_v56  ;;  %v164_v63 = vsub.f32 0.0, %v974_v57  ;;  %v731_v56 = vld [vmem:[%s1208_s0 + $0x50] sm:$0xff]  }
  0x11   :  { %762 = vpow2.f32 %v198_v47  ;;  %v985_v0 = vadd.f32 %v920_v7, %v95_v58  ;;  %v991_v3 = vadd.f32 %v920_v7, %v96_v59  ;;  %v994_v4 = vadd.f32 %v920_v7, %v97_v60 }
  0x12   :  { %764 = vpow2.f32 %v200_v48  ;;  %v997_v5 = vadd.f32 %v920_v7, %v98_v61  ;;  %v165_v6 = vsub.f32 0.0, %v981_v62  ;;  %v204_v8 = vmul.f32 1.442695, %v164_v63 }
  0x13   :  { %766 = vpow2.f32 %v202_v49  ;;  %v166_v9 = vsub.f32 0.0, %v985_v0  ;;  %v167_v10 = vsub.f32 0.0, %v991_v3  ;;  %v168_v11 = vsub.f32 0.0, %v994_v4 }
  0x14   :  { %v169_v12 = vsub.f32 0.0, %v997_v5  ;;  %v608_v13 = vunpack.c.l.bf16 %v728_v2  ;;  %768 = vpow2.f32 %v204_v8  ;;  %v206_v15 = vmul.f32 1.442695, %v165_v6 }
  0x15   :  { %v208_v16 = vmul.f32 1.442695, %v166_v9  ;;  %v609_v17 = vunpack.c.h.bf16 %v728_v2  ;;  %v210_v19 = vmul.f32 1.442695, %v167_v10  ;;  %v1007_v22 = vmul.f32 1.442695, %v168_v11 }
  0x16   :  { %v753_v18 = vpop.eup %752  ;;  %v1009_v23 = vmul.f32 1.442695, %v169_v12  ;;  %v99_v28 = vmul.f32 %v608_v13, %v906_v1  ;;  %770 = vpow2.f32 %v206_v15  ;;  %v612_v34 = vunpack.c.l.bf16 %v729_v14  ;;  %v1040_v12 = vld [vmem:[%s1208_s0 + $0x58] sm:$0xff]  }
  0x17   :  { %v755_v29 = vpop.eup %754  ;;  %v252_v32 = vadd.f32 1.0, %v753_v18  ;;  %v100_v33 = vmul.f32 %v609_v17, %v906_v1  ;;  %772 = vpow2.f32 %v208_v16  ;;  %v613_v38 = vunpack.c.h.bf16 %v729_v14 }
  0x18   :  { %v757_v35 = vpop.eup %756  ;;  %v253_v36 = vadd.f32 1.0, %v755_v29  ;;  %v1014_v37 = vadd.f32 %v920_v7, %v99_v28  ;;  %v101_v42 = vmul.f32 %v612_v34, %v906_v1  ;;  %v616_v6 = vunpack.c.l.bf16 %v730_v51 }
  0x19   :  { %v759_v39 = vpop.eup %758  ;;  %774 = vrcp.f32 %v252_v32  ;;  %v254_v40 = vadd.f32 1.0, %v757_v35  ;;  %v1017_v41 = vadd.f32 %v920_v7, %v100_v33  ;;  %v102_v46 = vmul.f32 %v613_v38, %v906_v1 }
  0x1a   :  { %v761_v43 = vpop.eup %760  ;;  %776 = vrcp.f32 %v253_v36  ;;  %v255_v44 = vadd.f32 1.0, %v759_v39  ;;  %v170_v45 = vsub.f32 0.0, %v1014_v37  ;;  %v1024_v50 = vadd.f32 %v920_v7, %v101_v42 }
  0x1b   :  { %v763_v47 = vpop.eup %762  ;;  %778 = vrcp.f32 %v254_v40  ;;  %v256_v48 = vadd.f32 1.0, %v761_v43  ;;  %v171_v49 = vsub.f32 0.0, %v1017_v41  ;;  %v1030_v55 = vadd.f32 %v920_v7, %v102_v46 }
  0x1c   :  { %v765_v52 = vpop.eup %764  ;;  %780 = vrcp.f32 %v255_v44  ;;  %v257_v53 = vadd.f32 1.0, %v763_v47  ;;  %v216_v54 = vmul.f32 1.442695, %v170_v45  ;;  %v172_v61 = vsub.f32 0.0, %v1024_v50 }
  0x1d   :  { %v767_v58 = vpop.eup %766  ;;  %782 = vrcp.f32 %v256_v48  ;;  %v258_v59 = vadd.f32 1.0, %v765_v52  ;;  %v218_v60 = vmul.f32 1.442695, %v171_v49  ;;  %v173_v2 = vsub.f32 0.0, %v1030_v55 }
  0x1e   :  { %784 = vrcp.f32 %v257_v53  ;;  %v259_v63 = vadd.f32 1.0, %v767_v58  ;;  %v769_v8 = vpop.eup %768  ;;  %v220_v9 = vmul.f32 1.442695, %v172_v61  ;;  %v617_v10 = vunpack.c.h.bf16 %v730_v51 }
  0x1f   :  { %786 = vrcp.f32 %v258_v59  ;;  %v620_v11 = vunpack.c.l.bf16 %v731_v56  ;;  %v260_v13 = vadd.f32 1.0, %v769_v8  ;;  %v222_v14 = vmul.f32 1.442695, %v173_v2 }
  0x20   :  { %788 = vrcp.f32 %v259_v63  ;;  %v103_v15 = vmul.f32 %v616_v6, %v906_v1  ;;  %v771_v16 = vpop.eup %770  ;;  %v104_v17 = vmul.f32 %v617_v10, %v906_v1  ;;  %v621_v18 = vunpack.c.h.bf16 %v731_v56 }
  0x21   :  { %790 = vpow2.f32 %v210_v19  ;;  %v105_v28 = vmul.f32 %v620_v11, %v906_v1  ;;  %v773_v29 = vpop.eup %772  ;;  %v261_v32 = vadd.f32 1.0, %v771_v16  ;;  %v624_v34 = vunpack.c.l.bf16 %v1040_v12 }
  0x22   :  { %792 = vrcp.f32 %v260_v13  ;;  %v1046_v33 = vadd.f32 %v920_v7, %v103_v15  ;;  %v262_v36 = vadd.f32 1.0, %v773_v29  ;;  %v1051_v38 = vadd.f32 %v920_v7, %v104_v17 }
  0x23   :  { %v775_v35 = vpop.eup %774  ;;  %794 = vpow2.f32 %v1007_v22  ;;  %v106_v19 = vmul.f32 %v621_v18, %v906_v1  ;;  %v1057_v43 = vadd.f32 %v920_v7, %v105_v28  ;;  %v107_v6 = vmul.f32 %v624_v34, %v906_v1 }
  0x24   :  { %v777_v39 = vpop.eup %776  ;;  %v316_v40 = vmul.f32 %v775_v35, %v929_v20  ;;  %796 = vrcp.f32 %v261_v32  ;;  %v174_v42 = vsub.f32 0.0, %v1046_v33  ;;  %v175_v22 = vsub.f32 0.0, %v1051_v38  ;;  %v734_v35 = vld [vmem:[%s1208_s0 + $0x68] sm:$0xff]  }
  0x25   :  { %v779_v44 = vpop.eup %778  ;;  %v317_v45 = vmul.f32 %v777_v39, %v932_v21  ;;  %798 = vrcp.f32 %v262_v36  ;;  %v1062_v46 = vadd.f32 %v920_v7, %v106_v19  ;;  %v176_v49 = vsub.f32 0.0, %v1057_v43 }
  0x26   :  { %v781_v47 = vpop.eup %780  ;;  %v318_v48 = vmul.f32 %v779_v44, %v937_v24  ;;  %800 = vpow2.f32 %v1009_v23  ;;  %v224_v20 = vmul.f32 1.442695, %v174_v42  ;;  %v226_v21 = vmul.f32 1.442695, %v175_v22 }
  0x27   :  { %v783_v51 = vpop.eup %782  ;;  %v645_v52 = vpack.c.bf16 %v317_v45, %v316_v40  ;;  %v319_v53 = vmul.f32 %v781_v47, %v940_v25  ;;  %802 = vpow2.f32 %v216_v54  ;;  %v177_v59 = vsub.f32 0.0, %v1062_v46  ;;  %v733_v54 = vld [vmem:[%s1208_s0 + $0x60] sm:$0xff]  }
  0x28   :  { %v785_v56 = vpop.eup %784  ;;  %v320_v58 = vmul.f32 %v783_v51, %v943_v26  ;;  %804 = vpow2.f32 %v218_v60  ;;  %v228_v61 = vmul.f32 1.442695, %v176_v49  ;;  %v625_v25 = vunpack.c.h.bf16 %v1040_v12 }
  0x29   :  { %v787_v63 = vpop.eup %786  ;;  %646 = vst [vmem:[%s1211_s3] sm:$0xff] %v645_v52   ;;  %v650_v24 = vpack.c.bf16 %v319_v53, %v318_v48  ;;  %v321_v23 = vmul.f32 %v785_v56, %v946_v27  ;;  %806 = vpow2.f32 %v220_v9  ;;  %v230_v2 = vmul.f32 1.442695, %v177_v59 }
  0x2a   :  { %v789_v26 = vpop.eup %788  ;;  %v322_v60 = vmul.f32 %v787_v63, %v951_v30  ;;  %808 = vpow2.f32 %v222_v14  ;;  %v108_v10 = vmul.f32 %v625_v25, %v906_v1  ;;  %v1086_v30 = vadd.f32 %v920_v7, %v107_v6 }
  0x2b   :  { %v791_v8 = vpop.eup %790  ;;  %737 = vst [vmem:[%s1211_s3 + $0x8] sm:$0xff] %v650_v24   ;;  %v655_v27 = vpack.c.bf16 %v321_v23, %v320_v58  ;;  %v323_v9 = vmul.f32 %v789_v26, %v954_v31  ;;  %810 = vpow2.f32 %v224_v20  ;;  %v628_v13 = vunpack.c.l.bf16 %v733_v54 }
  0x2c   :  { %v793_v11 = vpop.eup %792  ;;  %v263_v12 = vadd.f32 1.0, %v791_v8  ;;  %812 = vpow2.f32 %v226_v21  ;;  %v1093_v31 = vadd.f32 %v920_v7, %v108_v10  ;;  %v178_v28 = vsub.f32 0.0, %v1086_v30 }
  0x2d   :  { %v795_v14 = vpop.eup %794  ;;  %738 = vst [vmem:[%s1211_s3 + $0x10] sm:$0xff] %v655_v27   ;;  %v660_v15 = vpack.c.bf16 %v323_v9, %v322_v60  ;;  %v324_v16 = vmul.f32 %v793_v11, %v974_v57  ;;  %814 = vpow2.f32 %v228_v61  ;;  %v629_v29 = vunpack.c.h.bf16 %v733_v54  ;;  %v735_v61 = vld [vmem:[%s1208_s0 + $0x70] sm:$0xff]  }
  0x2e   :  { %v797_v17 = vpop.eup %796  ;;  %816 = vrcp.f32 %v263_v12  ;;  %v264_v18 = vadd.f32 1.0, %v795_v14  ;;  %v109_v57 = vmul.f32 %v628_v13, %v906_v1  ;;  %v179_v19 = vsub.f32 0.0, %v1093_v31 }
  0x2f   :  { %v799_v32 = vpop.eup %798  ;;  %739 = vst [vmem:[%s1211_s3 + $0x18] sm:$0xff] %v660_v15   ;;  %v325_v34 = vmul.f32 %v797_v17, %v981_v62  ;;  %818 = vpow2.f32 %v230_v2  ;;  %v232_v39 = vmul.f32 1.442695, %v178_v28  ;;  %v110_v40 = vmul.f32 %v629_v29, %v906_v1 }
  0x30   :  { %v801_v36 = vpop.eup %800  ;;  %820 = vrcp.f32 %v264_v18  ;;  %v326_v45 = vmul.f32 %v799_v32, %v985_v0  ;;  %v1108_v62 = vadd.f32 %v920_v7, %v109_v57  ;;  %v632_v49 = vunpack.c.l.bf16 %v734_v35  ;;  %v736_v18 = vld [vmem:[%s1208_s0 + $0x78] sm:$0xff]  }
  0x31   :  { %v803_v42 = vpop.eup %802  ;;  %v665_v44 = vpack.c.bf16 %v325_v34, %v324_v16  ;;  %v265_v22 = vadd.f32 1.0, %v801_v36  ;;  %822 = vpow2.f32 %v232_v39  ;;  %v1111_v20 = vadd.f32 %v920_v7, %v110_v40 }
  0x32   :  { %v805_v47 = vpop.eup %804  ;;  %v266_v48 = vadd.f32 1.0, %v803_v42  ;;  %v180_v0 = vsub.f32 0.0, %v1108_v62  ;;  %v633_v53 = vunpack.c.h.bf16 %v734_v35  ;;  %v234_v58 = vmul.f32 1.442695, %v179_v19 }
  0x33   :  { %v807_v51 = vpop.eup %806  ;;  %740 = vst [vmem:[%s1211_s3 + $0x20] sm:$0xff] %v665_v44   ;;  %824 = vrcp.f32 %v265_v22  ;;  %v267_v52 = vadd.f32 1.0, %v805_v47  ;;  %v111_v59 = vmul.f32 %v632_v49, %v906_v1  ;;  %v181_v23 = vsub.f32 0.0, %v1111_v20 }
  0x34   :  { %v809_v21 = vpop.eup %808  ;;  %826 = vrcp.f32 %v266_v48  ;;  %v268_v56 = vadd.f32 1.0, %v807_v51  ;;  %v112_v25 = vmul.f32 %v633_v53, %v906_v1  ;;  %v236_v60 = vmul.f32 1.442695, %v180_v0 }
  0x35   :  { %v811_v63 = vpop.eup %810  ;;  %828 = vrcp.f32 %v267_v52  ;;  %v269_v24 = vadd.f32 1.0, %v809_v21  ;;  %v1124_v2 = vadd.f32 %v920_v7, %v111_v59  ;;  %v636_v9 = vunpack.c.l.bf16 %v735_v61 }
  0x36   :  { %v813_v54 = vpop.eup %812  ;;  %830 = vrcp.f32 %v268_v56  ;;  %v270_v26 = vadd.f32 1.0, %v811_v63  ;;  %v1127_v27 = vadd.f32 %v920_v7, %v112_v25  ;;  %v637_v13 = vunpack.c.h.bf16 %v735_v61 }
  0x37   :  { %v815_v6 = vpop.eup %814  ;;  %832 = vrcp.f32 %v269_v24  ;;  %v271_v8 = vadd.f32 1.0, %v813_v54  ;;  %v182_v12 = vsub.f32 0.0, %v1124_v2  ;;  %v113_v17 = vmul.f32 %v636_v9, %v906_v1 }
  0x38   :  { %v817_v10 = vpop.eup %816  ;;  %834 = vrcp.f32 %v270_v26  ;;  %v272_v11 = vadd.f32 1.0, %v815_v6  ;;  %v183_v16 = vsub.f32 0.0, %v1127_v27  ;;  %v238_v32 = vmul.f32 1.442695, %v181_v23 }
  0x39   :  { %v819_v14 = vpop.eup %818  ;;  %v327_v15 = vmul.f32 %v817_v10, %v991_v3  ;;  %836 = vrcp.f32 %v271_v8  ;;  %v114_v34 = vmul.f32 %v637_v13, %v906_v1  ;;  %v240_v3 = vmul.f32 1.442695, %v182_v12 }
  0x3a   :  { %v821_v28 = vpop.eup %820  ;;  %v273_v29 = vadd.f32 1.0, %v819_v14  ;;  %838 = vrcp.f32 %v272_v11  ;;  %v1139_v19 = vadd.f32 %v920_v7, %v113_v17  ;;  %v640_v40 = vunpack.c.l.bf16 %v736_v18 }
  0x3b   :  { %v670_v57 = vpack.c.bf16 %v327_v15, %v326_v45  ;;  %v328_v35 = vmul.f32 %v821_v28, %v994_v4  ;;  %840 = vpow2.f32 %v234_v58  ;;  %v823_v36 = vpop.eup %822  ;;  %v1142_v39 = vadd.f32 %v920_v7, %v114_v34 }
  0x3c   :  { %842 = vrcp.f32 %v273_v29  ;;  %v242_v44 = vmul.f32 1.442695, %v183_v16  ;;  %v641_v45 = vunpack.c.h.bf16 %v736_v18  ;;  %v184_v47 = vsub.f32 0.0, %v1139_v19 }
  0x3d   :  { %v825_v42 = vpop.eup %824  ;;  %741 = vst [vmem:[%s1211_s3 + $0x28] sm:$0xff] %v670_v57   ;;  %844 = vpow2.f32 %v236_v60  ;;  %v185_v48 = vsub.f32 0.0, %v1142_v39  ;;  %v274_v52 = vadd.f32 1.0, %v823_v36  ;;  %v115_v0 = vmul.f32 %v640_v40, %v906_v1 }
  0x3e   :  { %v827_v4 = vpop.eup %826  ;;  %v329_v22 = vmul.f32 %v825_v42, %v997_v5  ;;  %846 = vpow2.f32 %v238_v32  ;;  %v116_v53 = vmul.f32 %v641_v45, %v906_v1  ;;  %v244_v59 = vmul.f32 1.442695, %v184_v47 }
  0x3f   :  { %v829_v49 = vpop.eup %828  ;;  %v330_v51 = vmul.f32 %v827_v4, %v1014_v37  ;;  %848 = vpow2.f32 %v240_v3  ;;  %v246_v63 = vmul.f32 1.442695, %v185_v48  ;;  %v1156_v24 = vadd.f32 %v920_v7, %v115_v0 }
  0x40   :  { %v831_v21 = vpop.eup %830  ;;  %v675_v56 = vpack.c.bf16 %v329_v22, %v328_v35  ;;  %v331_v58 = vmul.f32 %v829_v49, %v1017_v41  ;;  %850 = vpow2.f32 %v242_v44  ;;  %v1163_v41 = vadd.f32 %v920_v7, %v116_v53 }
  0x41   :  { %v833_v5 = vpop.eup %832  ;;  %v332_v61 = vmul.f32 %v831_v21, %v1024_v50  ;;  %852 = vpow2.f32 %v244_v59  ;;  %v186_v54 = vsub.f32 0.0, %v1156_v24 }
  0x42   :  { %v835_v37 = vpop.eup %834  ;;  %742 = vst [vmem:[%s1211_s3 + $0x30] sm:$0xff] %v675_v56   ;;  %v680_v1 = vpack.c.bf16 %v331_v58, %v330_v51  ;;  %v333_v23 = vmul.f32 %v833_v5, %v1030_v55  ;;  %854 = vpow2.f32 %v246_v63  ;;  %v187_v55 = vsub.f32 0.0, %v1163_v41 }
  0x43   :  { %v837_v25 = vpop.eup %836  ;;  %v334_v50 = vmul.f32 %v835_v37, %v1046_v33  ;;  %856 = vrcp.f32 %v274_v52  ;;  %v248_v9 = vmul.f32 1.442695, %v186_v54 }
  0x44   :  { %v839_v26 = vpop.eup %838  ;;  %743 = vst [vmem:[%s1211_s3 + $0x38] sm:$0xff] %v680_v1   ;;  %v685_v60 = vpack.c.bf16 %v333_v23, %v332_v61  ;;  %v335_v6 = vmul.f32 %v837_v25, %v1051_v38  ;;  %v250_v12 = vmul.f32 1.442695, %v187_v55 }
  0x45   :  { %v841_v8 = vpop.eup %840  ;;  %v336_v7 = vmul.f32 %v839_v26, %v1057_v43  ;;  %858 = vpow2.f32 %v248_v9 }
  0x46   :  { %v843_v10 = vpop.eup %842  ;;  %744 = vst [vmem:[%s1211_s3 + $0x40] sm:$0xff] %v685_v60   ;;  %v690_v33 = vpack.c.bf16 %v335_v6, %v334_v50  ;;  %v275_v11 = vadd.f32 1.0, %v841_v8 }
  0x47   :  { %v845_v13 = vpop.eup %844  ;;  %v337_v14 = vmul.f32 %v843_v10, %v1062_v46 }
  0x48   :  { %v847_v38 = vpop.eup %846  ;;  %745 = vst [vmem:[%s1211_s3 + $0x48] sm:$0xff] %v690_v33   ;;  %860 = vrcp.f32 %v275_v11  ;;  %v276_v43 = vadd.f32 1.0, %v845_v13 }
  0x49   :  { %v695_v15 = vpack.c.bf16 %v337_v14, %v336_v7  ;;  %v277_v16 = vadd.f32 1.0, %v847_v38  ;;  %862 = vpow2.f32 %v250_v12  ;;  %v849_v17 = vpop.eup %848 }
  0x4a   :  { %864 = vrcp.f32 %v276_v43  ;;  %v851_v18 = vpop.eup %850  ;;  %v278_v46 = vadd.f32 1.0, %v849_v17 }
  0x4b   :  { %746 = vst [vmem:[%s1211_s3 + $0x50] sm:$0xff] %v695_v15   ;;  %866 = vrcp.f32 %v277_v16  ;;  %v853_v28 = vpop.eup %852  ;;  %v279_v29 = vadd.f32 1.0, %v851_v18 }
  0x4c   :  { %v855_v32 = vpop.eup %854  ;;  %868 = vrcp.f32 %v278_v46  ;;  %v280_v34 = vadd.f32 1.0, %v853_v28 }
  0x4d   :  { %v857_v57 = vpop.eup %856  ;;  %870 = vrcp.f32 %v279_v29  ;;  %v281_v35 = vadd.f32 1.0, %v855_v32 }
  0x4e   :  { %872 = vrcp.f32 %v280_v34  ;;  %v338_v36 = vmul.f32 %v857_v57, %v1086_v30 }
  0x4f   :  { %874 = vrcp.f32 %v281_v35  ;;  %v859_v3 = vpop.eup %858 }
  0x50   :  { %v282_v42 = vadd.f32 1.0, %v859_v3 }
  0x52   :  { %v861_v40 = vpop.eup %860  ;;  %876 = vrcp.f32 %v282_v42 }
  0x53   :  { %v863_v44 = vpop.eup %862  ;;  %v339_v45 = vmul.f32 %v861_v40, %v1093_v31 }
  0x54   :  { %v865_v4 = vpop.eup %864  ;;  %v283_v22 = vadd.f32 1.0, %v863_v44 }
  0x55   :  { %v867_v47 = vpop.eup %866  ;;  %v700_v48 = vpack.c.bf16 %v339_v45, %v338_v36  ;;  %v340_v49 = vmul.f32 %v865_v4, %v1108_v62 }
  0x56   :  { %v341_v51 = vmul.f32 %v867_v47, %v1111_v20  ;;  %878 = vrcp.f32 %v283_v22  ;;  %v869_v52 = vpop.eup %868 }
  0x57   :  { %747 = vst [vmem:[%s1211_s3 + $0x58] sm:$0xff] %v700_v48   ;;  %v871_v30 = vpop.eup %870  ;;  %v342_v53 = vmul.f32 %v869_v52, %v1124_v2 }
  0x58   :  { %v705_v0 = vpack.c.bf16 %v341_v51, %v340_v49  ;;  %v873_v31 = vpop.eup %872  ;;  %v343_v21 = vmul.f32 %v871_v30, %v1127_v27 }
  0x59   :  { %v875_v56 = vpop.eup %874  ;;  %v344_v62 = vmul.f32 %v873_v31, %v1139_v19 }
  0x5a   :  { %748 = vst [vmem:[%s1211_s3 + $0x60] sm:$0xff] %v705_v0   ;;  %v710_v20 = vpack.c.bf16 %v343_v21, %v342_v53  ;;  %v345_v58 = vmul.f32 %v875_v56, %v1142_v39 }
  0x5c   :  { %749 = vst [vmem:[%s1211_s3 + $0x68] sm:$0xff] %v710_v20   ;;  %v715_v59 = vpack.c.bf16 %v345_v58, %v344_v62  ;;  %v877_v5 = vpop.eup %876 }
  0x5d   :  { %v346_v2 = vmul.f32 %v877_v5, %v1156_v24 }
  0x5e   :  { %750 = vst [vmem:[%s1211_s3 + $0x70] sm:$0xff] %v715_v59  }
  0x60   :  { %v879_v27 = vpop.eup %878 }
  0x61   :  { %v347_v61 = vmul.f32 %v879_v27, %v1163_v41 }
  0x63   :  { %v720_v63 = vpack.c.bf16 %v347_v61, %v346_v2 }
  0x65   :  { %751 = vst [vmem:[%s1211_s3 + $0x78] sm:$0xff] %v720_v63  }

// kernel: encoder_forward.40
= control target key start
LH: loop header
LB: loop body
LE: loop exit
PB: predicated region body
PF: predicated region fallthrough
CT: control target
= control target key end

     0   :  { %s2207_s18 = smov 0   ;;  %s2209_s19 = smov 0   ;;  %s2620_s0 = inlined_call_operand.vmem [shape: bf16[2,10,10,128], index: 0, kind: input, shape index: {}, may-alias: {0,1,2}]   ;;  %s2621_s1 = inlined_call_operand.vmem [shape: bf16[2,10,10,128], index: 1, kind: input, shape index: {}, may-alias: {0,1,2}]   ;;  %s2622_s2 = inlined_call_operand.vmem [shape: bf16[2,10,10,128], index: 2, kind: input, shape index: {}, may-alias: {0,1,2}]   ;;  %s2623_s3 = inlined_call_operand.vmem [shape: bf16[3,3,128,128], index: 3, kind: input, shape index: {}]   ;;  %s2624_s4 = inlined_call_operand.vmem [shape: f32[1,128], index: 4, kind: input, shape index: {}]   ;;  %s2625_s5 = inlined_call_operand.vmem [shape: bf16[2,8,8,128], index: 5, kind: output, shape index: {}]  }
   0x1   :  { %s2211_s20 = smov 0   ;;  %s2213_s21 = smov 0  }
   0x2   :  { %s2215_s22 = smov 0  }
   0x3 LB: > { %s24_s23 = sadd.s32 1, %s2165_s20  ;;  %s27_s24 = sadd.s32 1, %s2169_s21  ;;  %s2173_s22 = sphi %s2215_s22, %s15_s22   ;;  %s2169_s21 = sphi %s2213_s21, %s2629_s21   ;;  %s2165_s20 = sphi %s2211_s20, %s2628_s20   ;;  %s2161_s19 = sphi %s2209_s19, %s2627_s19   ;;  %s2157_s18 = sphi %s2207_s18, %s2626_s18  }
   0x4   : > { %p25_p0 = scmp.ge.s32.totalorder %s24_s23, 8  ;;  %p1505_p1 = scmp.ge.s32.totalorder %s2173_s22, 1 }
   0x5   : > { %p247_p2 = scmp.lt.s32.totalorder %s2173_s22, 17 }
   0x6   : > { %s2631_s23 = smov (%p25_p0, %s24_s23), 0  ;;  %s2633_s24 = smov (!%p25_p0, %s27_s24), %s2169_s21 }
   0x7   : > { %p248_p3 = pnand %p1505_p1, %p247_p2  ;;  %p29_p4 = scmp.ge.s32.totalorder %s2633_s24, 2 }
   0x8   : > { %v2057_v0 = vld [vmem:[%s2623_s3] sm:$0xff] (!%p248_p3)   ;;  %v2175_v1 = vmov (!%p248_p3), 0.0   ;;  %v2059_v3 = vld [vmem:[%s2623_s3 + $0x8] sm:$0xff] (!%p248_p3)   ;;  %vm2176_vm0 = vmmov (!%p248_p3), 0   ;;  %p302_p5 = scmp.lt.s32.totalorder (!%p248_p3), %s2161_s19, 1  ;;  %p304_p6 = scmp.lt.s32.totalorder (!%p248_p3), %s2157_s18, 9 }
   0x9   : > { %s2635_s24 = smov (%p29_p4, %s2633_s24), 0  ;;  %251 = sbr.rel (%p248_p3) target bundleno = 388 (0x184), region = 40 }
   0xa   : > { %1804 = vmatprep.subr.bf16.mxu1 (!%p248_p3), %v2175_v1  ;;  %1884 = vmatprep.subr.bf16.mxu0 (!%p248_p3), %v2175_v1  ;;  %v2058_v2 = vld [vmem:[%s2623_s3 + $0x100] sm:$0xff] (!%p248_p3)   ;;  %v2060_v4 = vld [vmem:[%s2623_s3 + $0x108] sm:$0xff] (!%p248_p3)   ;;  %v2061_v5 = vld [vmem:[%s2623_s3 + $0x10] sm:$0xff] (!%p248_p3)   ;;  %s311_s12 = sadd.s32 (!%p248_p3), 1, %s2157_s18  ;;  %s322_s11 = sadd.s32 (!%p248_p3), 2, %s2157_s18 }
   0xb   : > { %1805 = vmatpush3.bf16.msra.mxu1 (!%p248_p3), %v2057_v0  ;;  %1820 = vmatprep.mubr.msk.bf16.mxu1 (!%p248_p3), %vm2176_vm0, %v2175_v1  ;;  %v2062_v6 = vld [vmem:[%s2623_s3 + $0x110] sm:$0xff] (!%p248_p3)   ;;  %v2063_v7 = vld [vmem:[%s2623_s3 + $0x18] sm:$0xff] (!%p248_p3)   ;;  %p314_p7 = scmp.lt.s32.totalorder (!%p248_p3), %s311_s12, 9  ;;  %v2065_v9 = vld [vmem:[%s2623_s3 + $0x20] sm:$0xff] (!%p248_p3)   ;;  %p325_p8 = scmp.lt.s32.totalorder (!%p248_p3), %s322_s11, 9 }
   0xc   : > { %1885 = vmatpush3.bf16.msra.mxu0 (!%p248_p3), %v2058_v2  ;;  %1806 = vmatprep.subr.bf16.mxu1 (!%p248_p3), %v2175_v1  ;;  %v2064_v8 = vld [vmem:[%s2623_s3 + $0x118] sm:$0xff] (!%p248_p3)   ;;  %v2066_v10 = vld [vmem:[%s2623_s3 + $0x120] sm:$0xff] (!%p248_p3)   ;;  %v2067_v11 = vld [vmem:[%s2623_s3 + $0x28] sm:$0xff] (!%p248_p3)   ;;  %p335_p9 = scmp.lt.s32.totalorder (!%p248_p3), %s2157_s18, 7 }
   0xd   : > { %1886 = vmatprep.subr.bf16.mxu0 (!%p248_p3), %v2175_v1  ;;  %1900 = vmatprep.mubr.msk.bf16.mxu0 (!%p248_p3), %vm2176_vm0, %v2175_v1  ;;  %v2068_v12 = vld [vmem:[%s2623_s3 + $0x128] sm:$0xff] (!%p248_p3)   ;;  %v2069_v16 = vld [vmem:[%s2623_s3 + $0x30] sm:$0xff] (!%p248_p3)   ;;  %v2071_v19 = vld [vmem:[%s2623_s3 + $0x38] sm:$0xff] (!%p248_p3)  }
   0xe   : > { %v2070_v17 = vld [vmem:[%s2623_s3 + $0x130] sm:$0xff] (!%p248_p3)   ;;  %v2072_v22 = vld [vmem:[%s2623_s3 + $0x138] sm:$0xff] (!%p248_p3)   ;;  %v2074_v24 = vld [vmem:[%s2623_s3 + $0x40] sm:$0xff] (!%p248_p3)  }
   0xf   : > { %1807 = vmatpush3.bf16.msra.mxu1 (!%p248_p3), %v2059_v3  ;;  %v2076_v26 = vld [vmem:[%s2623_s3 + $0x140] sm:$0xff] (!%p248_p3)   ;;  %v2077_v27 = vld [vmem:[%s2623_s3 + $0x48] sm:$0xff] (!%p248_p3)   ;;  %v2079_v29 = vld [vmem:[%s2623_s3 + $0x50] sm:$0xff] (!%p248_p3)  }
  0x10   : > { %1887 = vmatpush3.bf16.msra.mxu0 %v2060_v4  ;;  %1808 = vmatprep.subr.bf16.mxu1 %v2175_v1  ;;  %s2637_s19 = smov (!%p302_p5, %s2161_s19), 1  ;;  %s2639_s12 = smov (!%p314_p7, %s311_s12), 9  ;;  %v2078_v28 = vld [vmem:[%s2623_s3 + $0x148] sm:$0xff]   ;;  %v2080_v30 = vld [vmem:[%s2623_s3 + $0x150] sm:$0xff]   ;;  %v2081_v31 = vld [vmem:[%s2623_s3 + $0x58] sm:$0xff]  }
  0x11   : > { %1888 = vmatprep.subr.bf16.mxu0 %v2175_v1  ;;  %s305_s13 = scalar_select %p304_p6, %s2157_s18, 9  ;;  %v2082_v32 = vld [vmem:[%s2623_s3 + $0x158] sm:$0xff]   ;;  %v2083_v35 = vld [vmem:[%s2623_s3 + $0x60] sm:$0xff]   ;;  %v2085_v38 = vld [vmem:[%s2623_s3 + $0x68] sm:$0xff]  }
  0x12   : > { %s2284_s25 = smul.u32 20, %s2637_s19  ;;  %s1508_s28 = sshll.u32 %s2639_s12, 1  ;;  %v2084_v36 = vld [vmem:[%s2623_s3 + $0x160] sm:$0xff]   ;;  %v2086_v39 = vld [vmem:[%s2623_s3 + $0x168] sm:$0xff]   ;;  %v2087_v40 = vld [vmem:[%s2623_s3 + $0x70] sm:$0xff]  }
  0x13   : > { %1809 = vmatpush3.bf16.msra.mxu1 %v2061_v5  ;;  %s1506_s7 = sshll.u32 %s305_s13, 1  ;;  %v2088_v42 = vld [vmem:[%s2623_s3 + $0x170] sm:$0xff]   ;;  %v2089_v46 = vld [vmem:[%s2623_s3 + $0x78] sm:$0xff]   ;;  %v2091_v50 = vld [vmem:[%s2623_s3 + $0x80] sm:$0xff]   ;;  %s2641_s11 = smov (!%p325_p8, %s322_s11), 9 }
  0x14   : > { %1889 = vmatpush3.bf16.msra.mxu0 %v2062_v6  ;;  %1810 = vmatprep.subr.bf16.mxu1 %v2175_v1  ;;  %s318_s6 = sadd.s32 %s2284_s25, %s1508_s28  ;;  %s308_s13 = sadd.s32 %s2284_s25, %s1506_s7  ;;  %v2090_v48 = vld [vmem:[%s2623_s3 + $0x178] sm:$0xff]   ;;  %v2093_v52 = vld [vmem:[%s2623_s3 + $0x180] sm:$0xff]   ;;  %v2094_v53 = vld [vmem:[%s2623_s3 + $0x88] sm:$0xff]  }
  0x15   : > { %1890 = vmatprep.subr.bf16.mxu0 %v2175_v1  ;;  %s1509_s10 = sshll.u32 %s318_s6, 2  ;;  %s1507_s29 = sshll.u32 %s308_s13, 2  ;;  %v2095_v54 = vld [vmem:[%s2623_s3 + $0x188] sm:$0xff]   ;;  %v2096_v55 = vld [vmem:[%s2623_s3 + $0x90] sm:$0xff]   ;;  %v2098_v57 = vld [vmem:[%s2623_s3 + $0x98] sm:$0xff]  }
  0x16   : > { %s2305_s16 = scalar_lea.vmem %s2621_s1, %s1509_s10  ;;  %s2329_s9 = scalar_lea.vmem %s2620_s0, %s1507_s29  ;;  %v2097_v56 = vld [vmem:[%s2623_s3 + $0x190] sm:$0xff]   ;;  %v2099_v58 = vld [vmem:[%s2623_s3 + $0x198] sm:$0xff]   ;;  %v2100_v59 = vld [vmem:[%s2623_s3 + $0xa0] sm:$0xff]  }
  0x17   : > { %1811 = vmatpush3.bf16.msra.mxu1 %v2063_v7  ;;  %v795_v13 = vld [vmem:[%s2305_s16] sm:$0xf]  ;;  %v2311_v14 = vld [vmem:[%s2305_s16 + $0x4] sm:$0x1]  ;;  %v2102_v61 = vld [vmem:[%s2623_s3 + $0xa8] sm:$0xff]   ;;  %s1510_s8 = sshll.u32 %s2641_s11, 1 }
  0x18   : > { %1891 = vmatpush3.bf16.msra.mxu0 %v2064_v8  ;;  %1812 = vmatprep.subr.bf16.mxu1 %v2175_v1  ;;  %v1613_v15 = vcombine.low %v795_v13, %v2311_v14  ;;  %v349_v23 = vld [vmem:[%s2329_s9] sm:$0xf]  ;;  %v2375_v34 = vld [vmem:[%s2329_s9 + $0x4] sm:$0x1]  ;;  %v2103_v62 = vld [vmem:[%s2623_s3 + $0x1a8] sm:$0xff]   ;;  %s329_s12 = sadd.s32 %s2284_s25, %s1510_s8  ;;  %s2643_s18 = smov (!%p335_p9, %s2157_s18), 7 }
  0x19   : > { %1892 = vmatprep.subr.bf16.mxu0 %v2175_v1  ;;  %v455_v33 = vld [vmem:[%s2329_s9] sm:$0xf]  ;;  %v2104_v63 = vld [vmem:[%s2623_s3 + $0xb0] sm:$0xff]   ;;  %s1511_s11 = sshll.u32 %s329_s12, 2  ;;  %v2106_v4 = vld [vmem:[%s2623_s3 + $0xb8] sm:$0xff]  }
  0x1a   : > { %v822_v18 = vshll.u32 %v1613_v15, 16  ;;  %v820_v20 = vshrl.u32 %v1613_v15, 16  ;;  %v1539_v37 = vcombine.low %v455_v33, %v2375_v34  ;;  %v916_v43 = vld [vmem:[%s2305_s16] sm:$0xe]  ;;  %v2105_v2 = vld [vmem:[%s2623_s3 + $0x1b0] sm:$0xff]   ;;  %v2107_v5 = vld [vmem:[%s2623_s3 + $0x1b8] sm:$0xff]   ;;  %s2487_s29 = scalar_lea.vmem %s2622_s2, %s1511_s11 }
  0x1b   : > { %1813 = vmatpush3.bf16.msra.mxu1 %v2065_v9  ;;  %v1638_v47 = vcombine.low %v916_v43, %v2311_v14  ;;  %v2101_v60 = vld [vmem:[%s2623_s3 + $0x1a0] sm:$0xff]   ;;  %v2114_v13 = vld [vmem:[%s2623_s3 + $0x1d0] sm:$0xff]   ;;  %v2115_v14 = vld [vmem:[%s2623_s3 + $0xd8] sm:$0xff]  }
  0x1c   : > { %1893 = vmatpush3.bf16.msra.mxu0 %v2066_v10  ;;  %1814 = vmatprep.subr.bf16.mxu1 %v2175_v1  ;;  %v824_v21 = vrot.slane %v822_v18, 1  ;;  %v482_v41 = vshll.u32 %v1539_v37, 16  ;;  %v480_v44 = vshrl.u32 %v1539_v37, 16  ;;  %v576_v0 = vld [vmem:[%s2329_s9] sm:$0xe]  ;;  %v2111_v10 = vld [vmem:[%s2623_s3 + $0xc8] sm:$0xff]  }
  0x1d   : > { %1894 = vmatprep.subr.bf16.mxu0 %v2175_v1  ;;  %v937_v51 = vrot.slane %v1638_v47, 1  ;;  %v1564_v3 = vcombine.low %v576_v0, %v2375_v34  ;;  %v2109_v7 = vld [vmem:[%s2623_s3 + $0xc0] sm:$0xff]   ;;  %v2116_v15 = vld [vmem:[%s2623_s3 + $0x1d8] sm:$0xff]   ;;  %v2127_v33 = vld [vmem:[%s2623_s3 + $0x208] sm:$0xff]  }
  0x1e   : > { %v825_v25 = vor.u32 %v824_v21, %v820_v20  ;;  %v484_v45 = vrot.slane %v482_v41, 1  ;;  %v1028_v8 = vld [vmem:[%s2487_s29] sm:$0xf]  ;;  %v1136_v18 = vld [vmem:[%s2487_s29 + $0x4] sm:$0x1]  ;;  %v2119_v20 = vld [vmem:[%s2623_s3 + $0xe8] sm:$0xff]  }
  0x1f   : > { %1815 = vmatpush3.bf16.msra.mxu1 %v2067_v11  ;;  %v597_v6 = vrot.slane %v1564_v3, 1  ;;  %v2110_v9 = vld [vmem:[%s2623_s3 + $0x1c0] sm:$0xff]   ;;  %v2112_v11 = vld [vmem:[%s2623_s3 + $0x1c8] sm:$0xff]   ;;  %v2128_v34 = vld [vmem:[%s2623_s3 + $0x210] sm:$0xff]  }
  0x20   : > { %1895 = vmatpush3.bf16.msra.mxu0 %v2068_v12  ;;  %1816 = vmatprep.subr.bf16.mxu1 %v2175_v1  ;;  %v485_v49 = vor.u32 %v484_v45, %v480_v44  ;;  %v2113_v12 = vld [vmem:[%s2623_s3 + $0xd0] sm:$0xff]   ;;  %v2131_v37 = vld [vmem:[%s2623_s3 + $0x228] sm:$0xff]   ;;  %v2133_v41 = vld [vmem:[%s2623_s3 + $0x238] sm:$0xff]  }
  0x21   : > { %1896 = vmatprep.subr.bf16.mxu0 %v2175_v1  ;;  %v1514_v47 = vld [vmem:[%s2624_s4] ss:$0 sm:$0xff] }
  0x23   : > { %1817 = vmatpush3.bf16.msra.mxu1 %v2069_v16  ;;  %v2117_v16 = vld [vmem:[%s2623_s3 + $0xe0] sm:$0xff]  }
  0x24   : > { %1897 = vmatpush3.bf16.msra.mxu0 %v2070_v17  ;;  %1818 = vmatprep.subr.bf16.mxu1 %v2175_v1  ;;  %v1135_v17 = vld [vmem:[%s2487_s29] sm:$0xf] }
  0x25   : > { %1898 = vmatprep.subr.bf16.mxu0 %v2175_v1  ;;  %v1687_v21 = vcombine.low %v1135_v17, %v1136_v18 }
  0x27   : > { %1819 = vmatpush3.bf16.msra.mxu1 %v2071_v19  ;;  %v2118_v19 = vld [vmem:[%s2623_s3 + $0x1e0] sm:$0xff]  }
  0x28   : > { %1899 = vmatpush3.bf16.msra.mxu0 %v2072_v22  ;;  %1824 = vmatprep.subr.bf16.mxu1 %v2175_v1  ;;  %v2120_v22 = vld [vmem:[%s2623_s3 + $0x1e8] sm:$0xff]  }
  0x29   : > { %1904 = vmatprep.subr.bf16.mxu0 %v2175_v1 }
  0x2a   : > { %1821 = vmatmul.mubr.bf16.vlgmr.msra.gmra.mrb[0].mxu1 %v349_v23  ;;  %v2121_v23 = vld [vmem:[%s2623_s3 + $0xf0] sm:$0xff]  }
  0x2b   : > { %1825 = vmatpush3.bf16.msra.mxu1 %v2074_v24  ;;  %1901 = vmatmul.mubr.bf16.vlgmr.msra.gmra.mrb[0].mxu0 %v825_v25  ;;  %v1162_v24 = vshll.u32 %v1687_v21, 16  ;;  %v2122_v25 = vld [vmem:[%s2623_s3 + $0x1f0] sm:$0xff]  }
  0x2c   : > { %1905 = vmatpush3.bf16.msra.mxu0 %v2076_v26  ;;  %1826 = vmatprep.subr.bf16.mxu1 %v2175_v1  ;;  %v2123_v26 = vld [vmem:[%s2623_s3 + $0xf8] sm:$0xff]  }
  0x2d   : > { %1906 = vmatprep.subr.bf16.mxu0 %v2175_v1  ;;  %1840 = vmatprep.mubr.msk.bf16.mxu1 %vm2176_vm0, %v2175_v1 }
  0x2e   : > { %1920 = vmatprep.mubr.msk.bf16.mxu0 %vm2176_vm0, %v2175_v1 }
  0x2f   : > { %1827 = vmatpush3.bf16.msra.mxu1 %v2077_v27  ;;  %v1160_v27 = vshrl.u32 %v1687_v21, 16 }
  0x30   : > { %1907 = vmatpush3.bf16.msra.mxu0 %v2078_v28  ;;  %1828 = vmatprep.subr.bf16.mxu1 %v2175_v1  ;;  %v1164_v28 = vrot.slane %v1162_v24, 1 }
  0x31   : > { %1908 = vmatprep.subr.bf16.mxu0 %v2175_v1 }
  0x33   : > { %1829 = vmatpush3.bf16.msra.mxu1 %v2079_v29  ;;  %v2124_v29 = vld [vmem:[%s2623_s3 + $0x1f8] sm:$0xff]  }
  0x34   : > { %1909 = vmatpush3.bf16.msra.mxu0 %v2080_v30  ;;  %1830 = vmatprep.subr.bf16.mxu1 %v2175_v1  ;;  %v688_v30 = vld [vmem:[%s2305_s16] sm:$0xf] }
  0x35   : > { %1910 = vmatprep.subr.bf16.mxu0 %v2175_v1 }
  0x37   : > { %1831 = vmatpush3.bf16.msra.mxu1 %v2081_v31  ;;  %v1165_v31 = vor.u32 %v1164_v28, %v1160_v27 }
  0x38   : > { %1911 = vmatpush3.bf16.msra.mxu0 %v2082_v32  ;;  %1832 = vmatprep.subr.bf16.mxu1 %v2175_v1  ;;  %v2126_v32 = vld [vmem:[%s2623_s3 + $0x200] sm:$0xff]  }
  0x39   : > { %1912 = vmatprep.subr.bf16.mxu0 %v2175_v1 }
  0x3b   : > { %1833 = vmatpush3.bf16.msra.mxu1 %v2083_v35  ;;  %v2129_v35 = vld [vmem:[%s2623_s3 + $0x218] sm:$0xff]  }
  0x3c   : > { %1913 = vmatpush3.bf16.msra.mxu0 %v2084_v36  ;;  %1834 = vmatprep.subr.bf16.mxu1 %v2175_v1  ;;  %v2130_v36 = vld [vmem:[%s2623_s3 + $0x220] sm:$0xff]  }
  0x3d   : > { %1914 = vmatprep.subr.bf16.mxu0 %v2175_v1 }
  0x3f   : > { %1835 = vmatpush3.bf16.msra.mxu1 %v2085_v38  ;;  %v2132_v38 = vld [vmem:[%s2623_s3 + $0x230] sm:$0xff]  }
  0x40   : > { %1915 = vmatpush3.bf16.msra.mxu0 %v2086_v39  ;;  %1836 = vmatprep.subr.bf16.mxu1 %v2175_v1  ;;  %v1256_v39 = vld [vmem:[%s2487_s29] sm:$0xe]  ;;  %s1512_s29 = sshll.u32 %s2637_s19, 3 }
  0x41   : > { %1916 = vmatprep.subr.bf16.mxu0 %v2175_v1  ;;  %s338_s6 = sadd.s32 %s1512_s29, %s2643_s18 }
  0x42   : > { %s1513_s7 = sshll.u32 %s338_s6, 2 }
  0x43   : > { %1837 = vmatpush3.bf16.msra.mxu1 %v2087_v40  ;;  %v1712_v40 = vcombine.low %v1256_v39, %v1136_v18  ;;  %s340_s10 = scalar_lea.vmem %s2625_s5, %s1513_s7 }
  0x44   : > { %1917 = vmatpush3.bf16.msra.mxu0 %v2088_v42  ;;  %1838 = vmatprep.subr.bf16.mxu1 %v2175_v1 }
  0x45   : > { %1918 = vmatprep.subr.bf16.mxu0 %v2175_v1  ;;  %v1277_v42 = vrot.slane %v1712_v40, 1 }
  0x47   : > { %1839 = vmatpush3.bf16.msra.mxu1 %v2089_v46 }
  0x48   : > { %1919 = vmatpush3.bf16.msra.mxu0 %v2090_v48  ;;  %1844 = vmatprep.subr.bf16.mxu1 %v2175_v1 }
  0x49   : > { %1924 = vmatprep.subr.bf16.mxu0 %v2175_v1 }
  0x4a   : > { %1841 = vmatmul.mubr.bf16.vlgmr.msra.gmra.mrb[0].mxu1 %v485_v49 }
  0x4b   : > { %1845 = vmatpush3.bf16.msra.mxu1 %v2091_v50  ;;  %1921 = vmatmul.mubr.bf16.vlgmr.msra.gmra.mrb[0].mxu0 %v937_v51 }
  0x4c   : > { %1925 = vmatpush3.bf16.msra.mxu0 %v2093_v52  ;;  %1846 = vmatprep.subr.bf16.mxu1 %v2175_v1 }
  0x4d   : > { %1926 = vmatprep.subr.bf16.mxu0 %v2175_v1  ;;  %1860 = vmatprep.mubr.msk.bf16.mxu1 %vm2176_vm0, %v2175_v1 }
  0x4e   : > { %1940 = vmatprep.mubr.msk.bf16.mxu0 %vm2176_vm0, %v2175_v1 }
  0x4f   : > { %1847 = vmatpush3.bf16.msra.mxu1 %v2094_v53 }
  0x50   : > { %1927 = vmatpush3.bf16.msra.mxu0 %v2095_v54  ;;  %1848 = vmatprep.subr.bf16.mxu1 %v2175_v1 }
  0x51   : > { %1928 = vmatprep.subr.bf16.mxu0 %v2175_v1 }
  0x53   : > { %1849 = vmatpush3.bf16.msra.mxu1 %v2096_v55 }
  0x54   : > { %1929 = vmatpush3.bf16.msra.mxu0 %v2097_v56  ;;  %1850 = vmatprep.subr.bf16.mxu1 %v2175_v1 }
  0x55   : > { %1930 = vmatprep.subr.bf16.mxu0 %v2175_v1 }
  0x57   : > { %1851 = vmatpush3.bf16.msra.mxu1 %v2098_v57 }
  0x58   : > { %1931 = vmatpush3.bf16.msra.mxu0 %v2099_v58  ;;  %1852 = vmatprep.subr.bf16.mxu1 %v2175_v1 }
  0x59   : > { %1932 = vmatprep.subr.bf16.mxu0 %v2175_v1 }
  0x5b   : > { %1853 = vmatpush3.bf16.msra.mxu1 %v2100_v59 }
  0x5c   : > { %1933 = vmatpush3.bf16.msra.mxu0 %v2101_v60  ;;  %1854 = vmatprep.subr.bf16.mxu1 %v2175_v1 }
  0x5d   : > { %1934 = vmatprep.subr.bf16.mxu0 %v2175_v1 }
  0x5f   : > { %1855 = vmatpush3.bf16.msra.mxu1 %v2102_v61 }
  0x60   : > { %1935 = vmatpush3.bf16.msra.mxu0 %v2103_v62  ;;  %1856 = vmatprep.subr.bf16.mxu1 %v2175_v1 }
  0x61   : > { %1936 = vmatprep.subr.bf16.mxu0 %v2175_v1 }
  0x63   : > { %1857 = vmatpush3.bf16.msra.mxu1 %v2104_v63 }
  0x64   : > { %1937 = vmatpush3.bf16.msra.mxu0 %v2105_v2  ;;  %1858 = vmatprep.subr.bf16.mxu1 %v2175_v1 }
  0x65   : > { %1938 = vmatprep.subr.bf16.mxu0 %v2175_v1 }
  0x67   : > { %1859 = vmatpush3.bf16.msra.mxu1 %v2106_v4 }
  0x68   : > { %1939 = vmatpush3.bf16.msra.mxu0 %v2107_v5  ;;  %1864 = vmatprep.subr.bf16.mxu1 %v2175_v1 }
  0x69   : > { %1944 = vmatprep.subr.bf16.mxu0 %v2175_v1 }
  0x6a   : > { %1861 = vmatmul.mubr.bf16.vlgmr.msra.gmra.mrb[0].mxu1 %v597_v6 }
  0x6b   : > { %1865 = vmatpush3.bf16.msra.mxu1 %v2109_v7  ;;  %1941 = vmatmul.mubr.bf16.vlgmr.msra.gmra.mrb[0].mxu0 %v1028_v8 }
  0x6c   : > { %1945 = vmatpush3.bf16.msra.mxu0 %v2110_v9  ;;  %1866 = vmatprep.subr.bf16.mxu1 %v2175_v1 }
  0x6d   : > { %1946 = vmatprep.subr.bf16.mxu0 %v2175_v1  ;;  %1880 = vmatprep.mubr.msk.bf16.mxu1 %vm2176_vm0, %v2175_v1 }
  0x6e   : > { %1960 = vmatprep.mubr.msk.bf16.mxu0 %vm2176_vm0, %v2175_v1 }
  0x6f   : > { %1867 = vmatpush3.bf16.msra.mxu1 %v2111_v10 }
  0x70   : > { %1947 = vmatpush3.bf16.msra.mxu0 %v2112_v11  ;;  %1868 = vmatprep.subr.bf16.mxu1 %v2175_v1 }
  0x71   : > { %1948 = vmatprep.subr.bf16.mxu0 %v2175_v1 }
  0x73   : > { %1869 = vmatpush3.bf16.msra.mxu1 %v2113_v12 }
  0x74   : > { %1949 = vmatpush3.bf16.msra.mxu0 %v2114_v13  ;;  %1870 = vmatprep.subr.bf16.mxu1 %v2175_v1 }
  0x75   : > { %1950 = vmatprep.subr.bf16.mxu0 %v2175_v1 }
  0x77   : > { %1871 = vmatpush3.bf16.msra.mxu1 %v2115_v14 }
  0x78   : > { %1951 = vmatpush3.bf16.msra.mxu0 %v2116_v15  ;;  %1872 = vmatprep.subr.bf16.mxu1 %v2175_v1 }
  0x79   : > { %1952 = vmatprep.subr.bf16.mxu0 %v2175_v1 }
  0x7b   : > { %1873 = vmatpush3.bf16.msra.mxu1 %v2117_v16 }
  0x7c   : > { %1953 = vmatpush3.bf16.msra.mxu0 %v2118_v19  ;;  %1874 = vmatprep.subr.bf16.mxu1 %v2175_v1 }
  0x7d   : > { %1954 = vmatprep.subr.bf16.mxu0 %v2175_v1 }
  0x7f   : > { %1875 = vmatpush3.bf16.msra.mxu1 %v2119_v20 }
  0x80   : > { %1955 = vmatpush3.bf16.msra.mxu0 %v2120_v22  ;;  %1876 = vmatprep.subr.bf16.mxu1 %v2175_v1 }
  0x81   : > { %1956 = vmatprep.subr.bf16.mxu0 %v2175_v1 }
  0x83   : > { %1877 = vmatpush3.bf16.msra.mxu1 %v2121_v23 }
  0x84   : > { %1957 = vmatpush3.bf16.msra.mxu0 %v2122_v25  ;;  %1878 = vmatprep.subr.bf16.mxu1 %v2175_v1 }
  0x85   : > { %1958 = vmatprep.subr.bf16.mxu0 %v2175_v1 }
  0x87   : > { %1879 = vmatpush3.bf16.msra.mxu1 %v2123_v26 }
  0x88   : > { %1959 = vmatpush3.bf16.msra.mxu0 %v2124_v29 }
  0x89   : > { %1964 = vmatprep.subr.bf16.mxu0 %v2175_v1 }
  0x8a   : > { %1881 = vmatmul.mubr.bf16.vlgmr.msra.gmra.mrb[0].mxu1 %v688_v30 }
  0x8b   : > { %1961 = vmatmul.mubr.bf16.vlgmr.msra.gmra.mrb[0].mxu0 %v1165_v31 }
  0x8c   : > { %1965 = vmatpush3.bf16.msra.mxu0 %v2126_v32  ;;  %1980 = vmatprep.mubr.msk.bf16.mxu0 %vm2176_vm0, %v2175_v1 }
  0x8d   : > { %1966 = vmatprep.subr.bf16.mxu0 %v2175_v1 }
  0x90   : > { %1967 = vmatpush3.bf16.msra.mxu0 %v2127_v33 }
  0x91   : > { %1968 = vmatprep.subr.bf16.mxu0 %v2175_v1 }
  0x94   : > { %1969 = vmatpush3.bf16.msra.mxu0 %v2128_v34 }
  0x95   : > { %1970 = vmatprep.subr.bf16.mxu0 %v2175_v1 }
  0x98   : > { %1971 = vmatpush3.bf16.msra.mxu0 %v2129_v35 }
  0x99   : > { %1972 = vmatprep.subr.bf16.mxu0 %v2175_v1 }
  0x9c   : > { %1973 = vmatpush3.bf16.msra.mxu0 %v2130_v36 }
  0x9d   : > { %1974 = vmatprep.subr.bf16.mxu0 %v2175_v1 }
  0xa0   : > { %1975 = vmatpush3.bf16.msra.mxu0 %v2131_v37 }
  0xa1   : > { %1976 = vmatprep.subr.bf16.mxu0 %v2175_v1 }
  0xa4   : > { %1977 = vmatpush3.bf16.msra.mxu0 %v2132_v38 }
  0xa5   : > { %1978 = vmatprep.subr.bf16.mxu0 %v2175_v1 }
  0xa8   : > { %1979 = vmatpush3.bf16.msra.mxu0 %v2133_v41 }
  0xab   : > { %1981 = vmatmul.mubr.bf16.vlgmr.msra.gmra.mrb[0].mxu0 %v1277_v42 }
 0x15d   : > { %v788_v43 = vpop.f32.mrb[0].mxu1 }
 0x15e   : > { %v1882_v44 = vpop.f32.mrb[1].mxu1  ;;  %v1984_v48 = vadd.f32 %v1514_v47, %v788_v43 }
 0x15f   : > { %v791_v45 = vpop.f32.mrb[2].mxu1 }
 0x160   : > { %v1883_v46 = vpop.f32.mrb[3].mxu1 }
 0x17e   : > { %v1361_v49 = vpop.f32.mrb[0].mxu0 }
 0x17f   : > { %v1985_v50 = vadd.f32 %v1984_v48, %v1361_v49  ;;  %v1982_v1 = vpop.f32.mrb[1].mxu0 }
 0x180   : > { %v1364_v51 = vpop.f32.mrb[2].mxu0 }
 0x181   : > { %v1368_v52 = vpack.c.bf16 %v1985_v50, %v1985_v50  ;;  %v1983_v53 = vpop.f32.mrb[3].mxu0 }
 0x183   : > { %1369 = vst [vmem:[%s340_s10] sm:$0xf] %v1368_v52 }
 0x184 PF: > { %s15_s22 = sadd.s32 1, %s2173_s22   ;;  %s2626_s18 = smov %s2165_s20 }
 0x185   : > { %p12_p10 = scmp.ge.s32.totalorder %s15_s22, 18   ;;  %s2627_s19 = smov %s2169_s21 }
 0x186   : > { %s2628_s20 = smov %s2631_s23  ;;  %s2629_s21 = smov %s2635_s24 }
 0x187   :  { %14 = sbr.rel (!%p12_p10) target bundleno = 3 (0x3), region = 84 }

// kernel: encoder_forward.44
= control target key start
LH: loop header
LB: loop body
LE: loop exit
PB: predicated region body
PF: predicated region fallthrough
CT: control target
= control target key end

     0   :  { %s1179_s1 = inlined_call_operand.vmem [shape: bf16[128,128], index: 1, kind: input, shape index: {}]   ;;  %s1180_s0 = inlined_call_operand.vmem [shape: bf16[256,128], index: 0, kind: input, shape index: {}]   ;;  %s1181_s2 = inlined_call_operand.vmem [shape: f32[1,128], index: 2, kind: input, shape index: {}]   ;;  %s1182_s3 = inlined_call_operand.vmem [shape: bf16[256,128], index: 3, kind: output, shape index: {}]  }
   0x1   :  { %v978_v0 = vld [vmem:[%s1179_s1] sm:$0xff]   ;;  %v979_v1 = vld [vmem:[%s1179_s1 + $0x8] sm:$0xff]   ;;  %v980_v2 = vld [vmem:[%s1179_s1 + $0x10] sm:$0xff]  }
   0x2   :  { %914 = vmatprep.subr.bf16.mxu0 %v978_v0  ;;  %962 = vmatprep.subr.bf16.mxu1 %v978_v0  ;;  %v981_v3 = vld [vmem:[%s1179_s1 + $0x18] sm:$0xff]   ;;  %v986_v4 = vld [vmem:[%s1180_s0] sm:$0xff]   ;;  %v983_v7 = vld [vmem:[%s1179_s1 + $0x28] sm:$0xff]  }
   0x3   :  { %915 = vmatpush3.bf16.msra.mxu0 %v978_v0  ;;  %970 = vmatpush3.bf16.msra.mxu1 %v978_v0  ;;  %v987_v5 = vld [vmem:[%s1180_s0 + $0x40] sm:$0xff]   ;;  %v984_v8 = vld [vmem:[%s1179_s1 + $0x30] sm:$0xff]   ;;  %v985_v9 = vld [vmem:[%s1179_s1 + $0x38] sm:$0xff]  }
   0x4   :  { %916 = vmatprep.subr.bf16.mxu0 %v979_v1  ;;  %963 = vmatprep.subr.bf16.mxu1 %v979_v1  ;;  %v982_v6 = vld [vmem:[%s1179_s1 + $0x20] sm:$0xff]   ;;  %v988_v10 = vld [vmem:[%s1180_s0 + $0x8] sm:$0xff]   ;;  %v990_v12 = vld [vmem:[%s1180_s0 + $0x10] sm:$0xff]  }
   0x5   :  { %930 = vmatprep.mubr.bf16.mxu0 %v986_v4  ;;  %946 = vmatprep.mubr.bf16.mxu1 %v987_v5  ;;  %v989_v11 = vld [vmem:[%s1180_s0 + $0x48] sm:$0xff]   ;;  %v991_v13 = vld [vmem:[%s1180_s0 + $0x50] sm:$0xff]   ;;  %v992_v14 = vld [vmem:[%s1180_s0 + $0x18] sm:$0xff]  }
   0x6   :  { %v993_v15 = vld [vmem:[%s1180_s0 + $0x58] sm:$0xff]   ;;  %v994_v16 = vld [vmem:[%s1180_s0 + $0x20] sm:$0xff]   ;;  %v996_v18 = vld [vmem:[%s1180_s0 + $0x28] sm:$0xff]  }
   0x7   :  { %917 = vmatpush3.bf16.msra.mxu0 %v979_v1  ;;  %971 = vmatpush3.bf16.msra.mxu1 %v979_v1  ;;  %v995_v17 = vld [vmem:[%s1180_s0 + $0x60] sm:$0xff]   ;;  %v997_v19 = vld [vmem:[%s1180_s0 + $0x68] sm:$0xff]   ;;  %v998_v20 = vld [vmem:[%s1180_s0 + $0x30] sm:$0xff]  }
   0x8   :  { %918 = vmatprep.subr.bf16.mxu0 %v980_v2  ;;  %964 = vmatprep.subr.bf16.mxu1 %v980_v2  ;;  %v999_v21 = vld [vmem:[%s1180_s0 + $0x70] sm:$0xff]   ;;  %v1000_v22 = vld [vmem:[%s1180_s0 + $0x38] sm:$0xff]   ;;  %v1097_v24 = vld [vmem:[%s1181_s2] ss:$0 sm:$0xff] }
   0x9   :  { %v1001_v23 = vld [vmem:[%s1180_s0 + $0x78] sm:$0xff]  }
   0xb   :  { %919 = vmatpush3.bf16.msra.mxu0 %v980_v2  ;;  %972 = vmatpush3.bf16.msra.mxu1 %v980_v2 }
   0xc   :  { %920 = vmatprep.subr.bf16.mxu0 %v981_v3  ;;  %965 = vmatprep.subr.bf16.mxu1 %v981_v3 }
   0xf   :  { %921 = vmatpush3.bf16.msra.mxu0 %v981_v3  ;;  %973 = vmatpush3.bf16.msra.mxu1 %v981_v3 }
  0x10   :  { %922 = vmatprep.subr.bf16.mxu0 %v982_v6  ;;  %966 = vmatprep.subr.bf16.mxu1 %v982_v6 }
  0x13   :  { %923 = vmatpush3.bf16.msra.mxu0 %v982_v6  ;;  %974 = vmatpush3.bf16.msra.mxu1 %v982_v6 }
  0x14   :  { %924 = vmatprep.subr.bf16.mxu0 %v983_v7  ;;  %967 = vmatprep.subr.bf16.mxu1 %v983_v7 }
  0x17   :  { %925 = vmatpush3.bf16.msra.mxu0 %v983_v7  ;;  %975 = vmatpush3.bf16.msra.mxu1 %v983_v7 }
  0x18   :  { %926 = vmatprep.subr.bf16.mxu0 %v984_v8  ;;  %968 = vmatprep.subr.bf16.mxu1 %v984_v8 }
  0x1b   :  { %927 = vmatpush3.bf16.msra.mxu0 %v984_v8  ;;  %976 = vmatpush3.bf16.msra.mxu1 %v984_v8 }
  0x1c   :  { %928 = vmatprep.subr.bf16.mxu0 %v985_v9  ;;  %969 = vmatprep.subr.bf16.mxu1 %v985_v9 }
  0x1f   :  { %929 = vmatpush3.bf16.msra.mxu0 %v985_v9  ;;  %977 = vmatpush3.bf16.msra.mxu1 %v985_v9 }
  0x22   :  { %931 = vmatmul.mubr.bf16.vlgmr.msra.gmra.mrb[0].mxu0 %v988_v10  ;;  %947 = vmatmul.mubr.bf16.vlgmr.msra.gmra.mrb[0].mxu1 %v989_v11 }
  0x23   :  { %934 = vmatprep.mubr.bf16.mxu0 %v990_v12  ;;  %950 = vmatprep.mubr.bf16.mxu1 %v991_v13 }
  0x2a   :  { %935 = vmatmul.mubr.bf16.gmra.mrb[4].mxu0 %v992_v14  ;;  %951 = vmatmul.mubr.bf16.gmra.mrb[4].mxu1 %v993_v15 }
  0x2b   :  { %938 = vmatprep.mubr.bf16.mxu0 %v994_v16  ;;  %954 = vmatprep.mubr.bf16.mxu1 %v995_v17 }
  0x32   :  { %939 = vmatmul.mubr.bf16.gmra.mrb[8].mxu0 %v996_v18  ;;  %955 = vmatmul.mubr.bf16.gmra.mrb[8].mxu1 %v997_v19 }
  0x33   :  { %942 = vmatprep.mubr.bf16.mxu0 %v998_v20  ;;  %958 = vmatprep.mubr.bf16.mxu1 %v999_v21 }
  0x3a   :  { %943 = vmatmul.mubr.bf16.gmra.mrb[12].mxu0 %v1000_v22  ;;  %959 = vmatmul.mubr.bf16.gmra.mrb[12].mxu1 %v1001_v23 }
  0xf5   :  { %v932_v25 = vpop.f32.mrb[0].mxu0  ;;  %v948_v26 = vpop.f32.mrb[0].mxu1 }
  0xf6   :  { %v316_v27 = vpop.f32.mrb[1].mxu0  ;;  %v380_v28 = vpop.f32.mrb[1].mxu1  ;;  %v445_v31 = vadd.f32 %v932_v25, %v1097_v24  ;;  %v461_v32 = vadd.f32 %v948_v26, %v1097_v24 }
  0xf7   :  { %v933_v29 = vpop.f32.mrb[2].mxu0  ;;  %v949_v30 = vpop.f32.mrb[2].mxu1  ;;  %v443_v37 = vadd.f32 %v1097_v24, %v316_v27  ;;  %v459_v38 = vadd.f32 %v1097_v24, %v380_v28 }
  0xf8   :  { %v446_v33 = vadd.f32 %v933_v29, %v1097_v24  ;;  %v462_v34 = vadd.f32 %v949_v30, %v1097_v24  ;;  %v319_v35 = vpop.f32.mrb[3].mxu0  ;;  %v383_v36 = vpop.f32.mrb[3].mxu1 }
  0xf9   :  { %v444_v39 = vadd.f32 %v1097_v24, %v319_v35  ;;  %v460_v40 = vadd.f32 %v1097_v24, %v383_v36 }
  0xfa   :  { %v803_v41 = vpack.c.bf16 %v446_v33, %v445_v31  ;;  %v843_v42 = vpack.c.bf16 %v462_v34, %v461_v32 }
  0xfb   :  { %v798_v43 = vpack.c.bf16 %v444_v39, %v443_v37  ;;  %v838_v44 = vpack.c.bf16 %v460_v40, %v459_v38 }
  0xfc   :  { %875 = vst [vmem:[%s1182_s3 + $0x8] sm:$0xff] %v803_v41   ;;  %883 = vst [vmem:[%s1182_s3 + $0x48] sm:$0xff] %v843_v42  }
  0xfd   :  { %799 = vst [vmem:[%s1182_s3] sm:$0xff] %v798_v43   ;;  %882 = vst [vmem:[%s1182_s3 + $0x40] sm:$0xff] %v838_v44   ;;  %v936_v45 = vpop.f32.mrb[4].mxu0  ;;  %v952_v46 = vpop.f32.mrb[4].mxu1 }
  0xfe   :  { %v332_v47 = vpop.f32.mrb[5].mxu0  ;;  %v396_v48 = vpop.f32.mrb[5].mxu1  ;;  %v449_v51 = vadd.f32 %v936_v45, %v1097_v24  ;;  %v465_v52 = vadd.f32 %v952_v46, %v1097_v24 }
  0xff   :  { %v937_v49 = vpop.f32.mrb[6].mxu0  ;;  %v953_v50 = vpop.f32.mrb[6].mxu1  ;;  %v447_v57 = vadd.f32 %v1097_v24, %v332_v47  ;;  %v463_v58 = vadd.f32 %v1097_v24, %v396_v48 }
 0x100   :  { %v450_v53 = vadd.f32 %v937_v49, %v1097_v24  ;;  %v466_v54 = vadd.f32 %v953_v50, %v1097_v24  ;;  %v335_v55 = vpop.f32.mrb[7].mxu0  ;;  %v399_v56 = vpop.f32.mrb[7].mxu1 }
 0x101   :  { %v448_v59 = vadd.f32 %v1097_v24, %v335_v55  ;;  %v464_v60 = vadd.f32 %v1097_v24, %v399_v56 }
 0x102   :  { %v813_v61 = vpack.c.bf16 %v450_v53, %v449_v51  ;;  %v853_v62 = vpack.c.bf16 %v466_v54, %v465_v52 }
 0x103   :  { %v808_v63 = vpack.c.bf16 %v448_v59, %v447_v57  ;;  %v848_v0 = vpack.c.bf16 %v464_v60, %v463_v58 }
 0x104   :  { %877 = vst [vmem:[%s1182_s3 + $0x18] sm:$0xff] %v813_v61   ;;  %885 = vst [vmem:[%s1182_s3 + $0x58] sm:$0xff] %v853_v62  }
 0x105   :  { %876 = vst [vmem:[%s1182_s3 + $0x10] sm:$0xff] %v808_v63   ;;  %884 = vst [vmem:[%s1182_s3 + $0x50] sm:$0xff] %v848_v0   ;;  %v940_v1 = vpop.f32.mrb[8].mxu0  ;;  %v956_v2 = vpop.f32.mrb[8].mxu1 }
 0x106   :  { %v348_v3 = vpop.f32.mrb[9].mxu0  ;;  %v412_v4 = vpop.f32.mrb[9].mxu1  ;;  %v453_v7 = vadd.f32 %v940_v1, %v1097_v24  ;;  %v469_v8 = vadd.f32 %v956_v2, %v1097_v24 }
 0x107   :  { %v941_v5 = vpop.f32.mrb[10].mxu0  ;;  %v957_v6 = vpop.f32.mrb[10].mxu1  ;;  %v451_v13 = vadd.f32 %v1097_v24, %v348_v3  ;;  %v467_v14 = vadd.f32 %v1097_v24, %v412_v4 }
 0x108   :  { %v454_v9 = vadd.f32 %v941_v5, %v1097_v24  ;;  %v470_v10 = vadd.f32 %v957_v6, %v1097_v24  ;;  %v351_v11 = vpop.f32.mrb[11].mxu0  ;;  %v415_v12 = vpop.f32.mrb[11].mxu1 }
 0x109   :  { %v452_v15 = vadd.f32 %v1097_v24, %v351_v11  ;;  %v468_v16 = vadd.f32 %v1097_v24, %v415_v12 }
 0x10a   :  { %v823_v17 = vpack.c.bf16 %v454_v9, %v453_v7  ;;  %v863_v18 = vpack.c.bf16 %v470_v10, %v469_v8 }
 0x10b   :  { %v818_v19 = vpack.c.bf16 %v452_v15, %v451_v13  ;;  %v858_v20 = vpack.c.bf16 %v468_v16, %v467_v14 }
 0x10c   :  { %879 = vst [vmem:[%s1182_s3 + $0x28] sm:$0xff] %v823_v17   ;;  %887 = vst [vmem:[%s1182_s3 + $0x68] sm:$0xff] %v863_v18  }
 0x10d   :  { %878 = vst [vmem:[%s1182_s3 + $0x20] sm:$0xff] %v818_v19   ;;  %886 = vst [vmem:[%s1182_s3 + $0x60] sm:$0xff] %v858_v20   ;;  %v944_v21 = vpop.f32.mrb[12].mxu0  ;;  %v960_v22 = vpop.f32.mrb[12].mxu1 }
 0x10e   :  { %v364_v23 = vpop.f32.mrb[13].mxu0  ;;  %v428_v25 = vpop.f32.mrb[13].mxu1  ;;  %v457_v28 = vadd.f32 %v944_v21, %v1097_v24  ;;  %v473_v29 = vadd.f32 %v960_v22, %v1097_v24 }
 0x10f   :  { %v945_v26 = vpop.f32.mrb[14].mxu0  ;;  %v961_v27 = vpop.f32.mrb[14].mxu1  ;;  %v455_v34 = vadd.f32 %v1097_v24, %v364_v23  ;;  %v471_v35 = vadd.f32 %v1097_v24, %v428_v25 }
 0x110   :  { %v458_v30 = vadd.f32 %v945_v26, %v1097_v24  ;;  %v474_v31 = vadd.f32 %v961_v27, %v1097_v24  ;;  %v367_v32 = vpop.f32.mrb[15].mxu0  ;;  %v431_v33 = vpop.f32.mrb[15].mxu1 }
 0x111   :  { %v456_v36 = vadd.f32 %v1097_v24, %v367_v32  ;;  %v472_v37 = vadd.f32 %v1097_v24, %v431_v33 }
 0x112   :  { %v833_v38 = vpack.c.bf16 %v458_v30, %v457_v28  ;;  %v873_v39 = vpack.c.bf16 %v474_v31, %v473_v29 }
 0x113   :  { %v828_v40 = vpack.c.bf16 %v456_v36, %v455_v34  ;;  %v868_v41 = vpack.c.bf16 %v472_v37, %v471_v35 }
 0x114   :  { %881 = vst [vmem:[%s1182_s3 + $0x38] sm:$0xff] %v833_v38   ;;  %889 = vst [vmem:[%s1182_s3 + $0x78] sm:$0xff] %v873_v39  }
 0x115   :  { %880 = vst [vmem:[%s1182_s3 + $0x30] sm:$0xff] %v828_v40   ;;  %888 = vst [vmem:[%s1182_s3 + $0x70] sm:$0xff] %v868_v41  }

// kernel: encoder_forward.37
= control target key start
LH: loop header
LB: loop body
LE: loop exit
PB: predicated region body
PF: predicated region fallthrough
CT: control target
= control target key end

     0   :  { %s4908_s1 = inlined_call_operand.vmem [shape: bf16[1152,128], index: 1, kind: input, shape index: {}]   ;;  %s4909_s0 = inlined_call_operand.vmem [shape: bf16[256,1152], index: 0, kind: input, shape index: {}]   ;;  %s4910_s2 = inlined_call_operand.vmem [shape: f32[1,128], index: 2, kind: input, shape index: {}]   ;;  %s4911_s3 = inlined_call_operand.vmem [shape: bf16[256,128], index: 3, kind: output, shape index: {}]  }
   0x1   :  { %v3542_v0 = vld [vmem:[%s4908_s1 + $0x40] sm:$0xff]   ;;  %v3544_v2 = vld [vmem:[%s4908_s1 + $0x48] sm:$0xff]   ;;  %v3546_v4 = vld [vmem:[%s4908_s1 + $0x50] sm:$0xff]  }
   0x2   :  { %v3543_v1 = vld [vmem:[%s4908_s1] sm:$0xff]   ;;  %3006 = vmatprep.subr.bf16.mxu0 %v3542_v0  ;;  %3526 = vmatprep.subr.bf16.mxu1 %v3542_v0  ;;  %v3545_v3 = vld [vmem:[%s4908_s1 + $0x8] sm:$0xff]   ;;  %v3547_v5 = vld [vmem:[%s4908_s1 + $0x10] sm:$0xff]  }
   0x3   :  { %3007 = vmatpush3.bf16.msra.mxu0 %v3543_v1  ;;  %3534 = vmatpush3.bf16.msra.mxu1 %v3543_v1  ;;  %v3548_v6 = vld [vmem:[%s4908_s1 + $0x58] sm:$0xff]   ;;  %v3550_v8 = vld [vmem:[%s4908_s1 + $0x60] sm:$0xff]   ;;  %v3552_v10 = vld [vmem:[%s4908_s1 + $0x68] sm:$0xff]  }
   0x4   :  { %3008 = vmatprep.subr.bf16.mxu0 %v3544_v2  ;;  %3527 = vmatprep.subr.bf16.mxu1 %v3544_v2  ;;  %v3549_v7 = vld [vmem:[%s4908_s1 + $0x18] sm:$0xff]   ;;  %v3551_v9 = vld [vmem:[%s4908_s1 + $0x20] sm:$0xff]   ;;  %v3553_v13 = vld [vmem:[%s4908_s1 + $0x28] sm:$0xff]  }
   0x5   :  { %v3560_v11 = vld [vmem:[%s4909_s0 + $0x4] ss:$36 sps:$4 sm:$0xff]   ;;  %v3554_v14 = vld [vmem:[%s4908_s1 + $0x70] sm:$0xff]   ;;  %v3556_v16 = vld [vmem:[%s4908_s1 + $0x78] sm:$0xff]  }
   0x6   :  { %v3563_v12 = vld [vmem:[%s4909_s0 + $0x364] ss:$36 sps:$4 sm:$0xff]   ;;  %1594 = vmatprep.mubr.bf16.mxu0 %v3560_v11  ;;  %v3555_v15 = vld [vmem:[%s4908_s1 + $0x30] sm:$0xff]   ;;  %v3557_v17 = vld [vmem:[%s4908_s1 + $0x38] sm:$0xff]  }
   0x7   :  { %3009 = vmatpush3.bf16.msra.mxu0 %v3545_v3  ;;  %3535 = vmatpush3.bf16.msra.mxu1 %v3545_v3  ;;  %v3564_v18 = vld [vmem:[%s4908_s1 + $0xc0] sm:$0xff]   ;;  %v3566_v23 = vld [vmem:[%s4908_s1 + $0xc8] sm:$0xff]   ;;  %v3576_v31 = vld [vmem:[%s4908_s1 + $0xd0] sm:$0xff]  }
   0x8   :  { %3010 = vmatprep.subr.bf16.mxu0 %v3546_v4  ;;  %3528 = vmatprep.subr.bf16.mxu1 %v3546_v4  ;;  %v3558_v19 = vld [vmem:[%s4909_s0] ss:$36 sps:$4 sm:$0xff]   ;;  %v3570_v25 = vld [vmem:[%s4909_s0 + $0x4c] ss:$36 sps:$4 sm:$0xff]   ;;  %v3578_v34 = vld [vmem:[%s4908_s1 + $0xd8] sm:$0xff]  }
   0x9   :  { %1690 = vmatprep.mubr.bf16.mxu1 %v3563_v12  ;;  %v3561_v20 = vld [vmem:[%s4909_s0 + $0x360] ss:$36 sps:$4 sm:$0xff]   ;;  %v3572_v26 = vld [vmem:[%s4909_s0 + $0x3ac] ss:$36 sps:$4 sm:$0xff]   ;;  %v3580_v35 = vld [vmem:[%s4909_s0 + $0x94] ss:$36 sps:$4 sm:$0xff]  }
   0xa   :  { %v3567_v21 = vld [vmem:[%s4908_s1 + $0x140] sm:$0xff]   ;;  %v3568_v27 = vld [vmem:[%s4908_s1 + $0x88] sm:$0xff]   ;;  %v3577_v32 = vld [vmem:[%s4908_s1 + $0x90] sm:$0xff]  }
   0xb   :  { %3011 = vmatpush3.bf16.msra.mxu0 %v3547_v5  ;;  %3536 = vmatpush3.bf16.msra.mxu1 %v3547_v5  ;;  %v3565_v22 = vld [vmem:[%s4908_s1 + $0x80] sm:$0xff]   ;;  %v3587_v28 = vld [vmem:[%s4908_s1 + $0x148] sm:$0xff]   ;;  %v3582_v36 = vld [vmem:[%s4909_s0 + $0x3f4] ss:$36 sps:$4 sm:$0xff]  }
   0xc   :  { %3012 = vmatprep.subr.bf16.mxu0 %v3548_v6  ;;  %3529 = vmatprep.subr.bf16.mxu1 %v3548_v6  ;;  %v3569_v24 = vld [vmem:[%s4908_s1 + $0x100] sm:$0xff]   ;;  %v3574_v29 = vld [vmem:[%s4909_s0 + $0x48] ss:$36 sps:$4 sm:$0xff]   ;;  %v3579_v37 = vld [vmem:[%s4908_s1 + $0x98] sm:$0xff]  }
   0xd   :  { %v3575_v30 = vld [vmem:[%s4909_s0 + $0x3a8] ss:$36 sps:$4 sm:$0xff]   ;;  %v3584_v38 = vld [vmem:[%s4909_s0 + $0x90] ss:$36 sps:$4 sm:$0xff]   ;;  %v3586_v40 = vld [vmem:[%s4908_s1 + $0xe0] sm:$0xff]  }
   0xe   :  { %v3589_v33 = vld [vmem:[%s4908_s1 + $0x108] sm:$0xff]   ;;  %v3585_v39 = vld [vmem:[%s4909_s0 + $0x3f0] ss:$36 sps:$4 sm:$0xff]   ;;  %v3588_v41 = vld [vmem:[%s4908_s1 + $0xa0] sm:$0xff]  }
   0xf   :  { %3013 = vmatpush3.bf16.msra.mxu0 %v3549_v7  ;;  %3537 = vmatpush3.bf16.msra.mxu1 %v3549_v7  ;;  %v3590_v42 = vld [vmem:[%s4908_s1 + $0xe8] sm:$0xff]   ;;  %v3601_v43 = vld [vmem:[%s4908_s1 + $0x150] sm:$0xff]   ;;  %v3592_v44 = vld [vmem:[%s4909_s0 + $0xdc] ss:$36 sps:$4 sm:$0xff]  }
  0x10   :  { %3014 = vmatprep.subr.bf16.mxu0 %v3550_v8  ;;  %3530 = vmatprep.subr.bf16.mxu1 %v3550_v8  ;;  %v3594_v45 = vld [vmem:[%s4909_s0 + $0x43c] ss:$36 sps:$4 sm:$0xff]   ;;  %v3603_v46 = vld [vmem:[%s4908_s1 + $0x110] sm:$0xff]   ;;  %v3591_v47 = vld [vmem:[%s4908_s1 + $0xa8] sm:$0xff]  }
  0x11   :  { %v3598_v48 = vld [vmem:[%s4908_s1 + $0xf0] sm:$0xff]   ;;  %v3596_v49 = vld [vmem:[%s4909_s0 + $0xd8] ss:$36 sps:$4 sm:$0xff]   ;;  %v3604_v53 = vld [vmem:[%s4909_s0 + $0x124] ss:$36 sps:$4 sm:$0xff]  }
  0x12   :  { %v3597_v50 = vld [vmem:[%s4909_s0 + $0x438] ss:$36 sps:$4 sm:$0xff]   ;;  %v3599_v51 = vld [vmem:[%s4908_s1 + $0xb0] sm:$0xff]   ;;  %v3606_v58 = vld [vmem:[%s4909_s0 + $0x8] ss:$36 sps:$4 sm:$0xff]  }
  0x13   :  { %3015 = vmatpush3.bf16.msra.mxu0 %v3551_v9  ;;  %3538 = vmatpush3.bf16.msra.mxu1 %v3551_v9  ;;  %v3600_v52 = vld [vmem:[%s4908_s1 + $0xf8] sm:$0xff]   ;;  %v3608_v54 = vld [vmem:[%s4909_s0 + $0xc] ss:$36 sps:$4 sm:$0xff]   ;;  %v3609_v59 = vld [vmem:[%s4909_s0 + $0x120] ss:$36 sps:$4 sm:$0xff]  }
  0x14   :  { %3016 = vmatprep.subr.bf16.mxu0 %v3552_v10  ;;  %3531 = vmatprep.subr.bf16.mxu1 %v3552_v10  ;;  %v3618_v55 = vld [vmem:[%s4908_s1 + $0x158] sm:$0xff]   ;;  %v3610_v60 = vld [vmem:[%s4908_s1 + $0x1c0] sm:$0xff]   ;;  %v3612_v62 = vld [vmem:[%s4909_s0 + $0x16c] ss:$36 sps:$4 sm:$0xff]  }
  0x15   :  { %v3619_v56 = vld [vmem:[%s4908_s1 + $0x118] sm:$0xff]   ;;  %v3611_v61 = vld [vmem:[%s4908_s1 + $0x180] sm:$0xff]   ;;  %v3626_v1 = vld [vmem:[%s4908_s1 + $0x1c8] sm:$0xff]  }
  0x16   :  { %v3602_v57 = vld [vmem:[%s4908_s1 + $0xb8] sm:$0xff]   ;;  %v3628_v0 = vld [vmem:[%s4908_s1 + $0x160] sm:$0xff]   ;;  %v3627_v3 = vld [vmem:[%s4908_s1 + $0x188] sm:$0xff]  }
  0x17   :  { %3017 = vmatpush3.bf16.msra.mxu0 %v3553_v13  ;;  %3539 = vmatpush3.bf16.msra.mxu1 %v3553_v13  ;;  %v3614_v63 = vld [vmem:[%s4909_s0 + $0x54] ss:$36 sps:$4 sm:$0xff]   ;;  %v3629_v2 = vld [vmem:[%s4908_s1 + $0x120] sm:$0xff]   ;;  %v3616_v4 = vld [vmem:[%s4909_s0 + $0x168] ss:$36 sps:$4 sm:$0xff]  }
  0x18   :  { %3018 = vmatprep.subr.bf16.mxu0 %v3554_v14  ;;  %3532 = vmatprep.subr.bf16.mxu1 %v3554_v14  ;;  %v3617_v5 = vld [vmem:[%s4909_s0 + $0x50] ss:$36 sps:$4 sm:$0xff]   ;;  %v3622_v7 = vld [vmem:[%s4909_s0 + $0x9c] ss:$36 sps:$4 sm:$0xff]   ;;  %v3642_v8 = vld [vmem:[%s4908_s1 + $0x168] sm:$0xff]  }
  0x19   :  { %v3620_v6 = vld [vmem:[%s4909_s0 + $0x1b4] ss:$36 sps:$4 sm:$0xff]   ;;  %v3644_v10 = vld [vmem:[%s4908_s1 + $0x128] sm:$0xff]   ;;  %v3630_v14 = vld [vmem:[%s4909_s0 + $0x1fc] ss:$36 sps:$4 sm:$0xff]  }
  0x1a   :  { %v3643_v9 = vld [vmem:[%s4908_s1 + $0x1d0] sm:$0xff]   ;;  %v3625_v13 = vld [vmem:[%s4909_s0 + $0x98] ss:$36 sps:$4 sm:$0xff]  }
  0x1b   :  { %3019 = vmatpush3.bf16.msra.mxu0 %v3555_v15  ;;  %3540 = vmatpush3.bf16.msra.mxu1 %v3555_v15  ;;  %v3645_v11 = vld [vmem:[%s4908_s1 + $0x190] sm:$0xff]  }
  0x1c   :  { %3020 = vmatprep.subr.bf16.mxu0 %v3556_v16  ;;  %3533 = vmatprep.subr.bf16.mxu1 %v3556_v16  ;;  %v3624_v12 = vld [vmem:[%s4909_s0 + $0x1b0] ss:$36 sps:$4 sm:$0xff]  }
  0x1d   :  { %v3652_v15 = vld [vmem:[%s4908_s1 + $0x170] sm:$0xff]  }
  0x1e   :  { %v3653_v16 = vld [vmem:[%s4908_s1 + $0x130] sm:$0xff]  }
  0x1f   :  { %3021 = vmatpush3.bf16.msra.mxu0 %v3557_v17  ;;  %3541 = vmatpush3.bf16.msra.mxu1 %v3557_v17  ;;  %v3632_v17 = vld [vmem:[%s4909_s0 + $0xe4] ss:$36 sps:$4 sm:$0xff]  }
  0x20   :  { %3118 = vmatprep.subr.bf16.mxu1 %v3564_v18  ;;  %3230 = vmatprep.subr.bf16.mxu0 %v3567_v21  ;;  %v3660_v18 = vld [vmem:[%s4908_s1 + $0x1d8] sm:$0xff]   ;;  %v3635_v21 = vld [vmem:[%s4909_s0 + $0xe0] ss:$36 sps:$4 sm:$0xff]  }
  0x22   :  { %1595 = vmatmul.mubr.bf16.vlgmr.msra.gmra.mrb[0].mxu0 %v3558_v19  ;;  %1691 = vmatmul.mubr.bf16.vlgmr.msra.gmra.mrb[0].mxu1 %v3561_v20  ;;  %v3661_v19 = vld [vmem:[%s4908_s1 + $0x198] sm:$0xff]  }
  0x23   :  { %3119 = vmatpush3.bf16.msra.mxu1 %v3565_v22  ;;  %3231 = vmatpush3.bf16.msra.mxu0 %v3569_v24  ;;  %v3634_v20 = vld [vmem:[%s4909_s0 + $0x1f8] ss:$36 sps:$4 sm:$0xff]   ;;  %v3636_v22 = vld [vmem:[%s4909_s0 + $0x244] ss:$36 sps:$4 sm:$0xff]  }
  0x24   :  { %3120 = vmatprep.subr.bf16.mxu1 %v3566_v23  ;;  %1602 = vmatprep.mubr.bf16.mxu0 %v3570_v25  ;;  %v3638_v23 = vld [vmem:[%s4909_s0 + $0x12c] ss:$36 sps:$4 sm:$0xff]   ;;  %v3668_v24 = vld [vmem:[%s4908_s1 + $0x178] sm:$0xff]  }
  0x25   :  { %1698 = vmatprep.mubr.bf16.mxu1 %v3572_v26  ;;  %3232 = vmatprep.subr.bf16.mxu0 %v3587_v28  ;;  %v3669_v25 = vld [vmem:[%s4908_s1 + $0x138] sm:$0xff]   ;;  %v3676_v26 = vld [vmem:[%s4908_s1 + $0x1e0] sm:$0xff]  }
  0x26   :  { %v3677_v28 = vld [vmem:[%s4908_s1 + $0x1a0] sm:$0xff]  }
  0x27   :  { %3121 = vmatpush3.bf16.msra.mxu1 %v3568_v27  ;;  %3233 = vmatpush3.bf16.msra.mxu0 %v3589_v33  ;;  %v3640_v27 = vld [vmem:[%s4909_s0 + $0x240] ss:$36 sps:$4 sm:$0xff]   ;;  %v3691_v33 = vld [vmem:[%s4908_s1 + $0x1e8] sm:$0xff]  }
  0x28   :  { %3122 = vmatprep.subr.bf16.mxu1 %v3576_v31  ;;  %3234 = vmatprep.subr.bf16.mxu0 %v3601_v43  ;;  %v3646_v31 = vld [vmem:[%s4909_s0 + $0x28c] ss:$36 sps:$4 sm:$0xff]   ;;  %v3662_v43 = vld [vmem:[%s4909_s0 + $0x31c] ss:$36 sps:$4 sm:$0xff]  }
  0x2a   :  { %1603 = vmatmul.mubr.bf16.gmra.mrb[4].mxu0 %v3574_v29  ;;  %1699 = vmatmul.mubr.bf16.gmra.mrb[4].mxu1 %v3575_v30  ;;  %v3678_v29 = vld [vmem:[%s4908_s1 + $0x200] sm:$0xff]   ;;  %v3641_v30 = vld [vmem:[%s4909_s0 + $0x128] ss:$36 sps:$4 sm:$0xff]  }
  0x2b   :  { %3123 = vmatpush3.bf16.msra.mxu1 %v3577_v32  ;;  %1610 = vmatprep.mubr.bf16.mxu0 %v3580_v35  ;;  %v3648_v32 = vld [vmem:[%s4909_s0 + $0x174] ss:$36 sps:$4 sm:$0xff]   ;;  %v3692_v35 = vld [vmem:[%s4908_s1 + $0x1a8] sm:$0xff]  }
  0x2c   :  { %3124 = vmatprep.subr.bf16.mxu1 %v3578_v34  ;;  %1706 = vmatprep.mubr.bf16.mxu1 %v3582_v36  ;;  %v3650_v34 = vld [vmem:[%s4909_s0 + $0x288] ss:$36 sps:$4 sm:$0xff]   ;;  %v3651_v36 = vld [vmem:[%s4909_s0 + $0x170] ss:$36 sps:$4 sm:$0xff]  }
  0x2d   :  { %3235 = vmatpush3.bf16.msra.mxu0 %v3603_v46  ;;  %v3667_v46 = vld [vmem:[%s4909_s0 + $0x200] ss:$36 sps:$4 sm:$0xff]  }
  0x2e   :  { %3236 = vmatprep.subr.bf16.mxu0 %v3618_v55  ;;  %v3693_v55 = vld [vmem:[%s4908_s1 + $0x208] sm:$0xff]  }
  0x2f   :  { %3125 = vmatpush3.bf16.msra.mxu1 %v3579_v37  ;;  %v3654_v37 = vld [vmem:[%s4909_s0 + $0x2d4] ss:$36 sps:$4 sm:$0xff]  }
  0x30   :  { %3126 = vmatprep.subr.bf16.mxu1 %v3586_v40  ;;  %v3659_v40 = vld [vmem:[%s4909_s0 + $0x1b8] ss:$36 sps:$4 sm:$0xff]  }
  0x31   :  { %3237 = vmatpush3.bf16.msra.mxu0 %v3619_v56  ;;  %v3708_v56 = vld [vmem:[%s4908_s1 + $0x210] sm:$0xff]  }
  0x32   :  { %1611 = vmatmul.mubr.bf16.gmra.mrb[8].mxu0 %v3584_v38  ;;  %1707 = vmatmul.mubr.bf16.gmra.mrb[8].mxu1 %v3585_v39  ;;  %v3656_v38 = vld [vmem:[%s4909_s0 + $0x1bc] ss:$36 sps:$4 sm:$0xff]   ;;  %v3658_v39 = vld [vmem:[%s4909_s0 + $0x2d0] ss:$36 sps:$4 sm:$0xff]  }
  0x33   :  { %3127 = vmatpush3.bf16.msra.mxu1 %v3588_v41  ;;  %1618 = vmatprep.mubr.bf16.mxu0 %v3592_v44  ;;  %v3706_v41 = vld [vmem:[%s4908_s1 + $0x1f0] sm:$0xff]   ;;  %v3664_v44 = vld [vmem:[%s4909_s0 + $0x204] ss:$36 sps:$4 sm:$0xff]  }
  0x34   :  { %3128 = vmatprep.subr.bf16.mxu1 %v3590_v42  ;;  %1714 = vmatprep.mubr.bf16.mxu1 %v3594_v45  ;;  %v3707_v42 = vld [vmem:[%s4908_s1 + $0x1b0] sm:$0xff]   ;;  %v3666_v45 = vld [vmem:[%s4909_s0 + $0x318] ss:$36 sps:$4 sm:$0xff]  }
  0x35   :  { %3238 = vmatprep.subr.bf16.mxu0 %v3628_v0  ;;  %v3690_v0 = vld [vmem:[%s4909_s0 + $0xa0] ss:$36 sps:$4 sm:$0xff]  }
  0x36   :  { %3239 = vmatpush3.bf16.msra.mxu0 %v3629_v2  ;;  %v3696_v2 = vld [vmem:[%s4909_s0 + $0xec] ss:$36 sps:$4 sm:$0xff]  }
  0x37   :  { %3129 = vmatpush3.bf16.msra.mxu1 %v3591_v47  ;;  %3240 = vmatprep.subr.bf16.mxu0 %v3642_v8  ;;  %v3721_v47 = vld [vmem:[%s4908_s1 + $0x1f8] sm:$0xff]  }
  0x38   :  { %3130 = vmatprep.subr.bf16.mxu1 %v3598_v48  ;;  %v3722_v48 = vld [vmem:[%s4908_s1 + $0x1b8] sm:$0xff]  }
  0x39   :  { %v3702_v8 = vld [vmem:[%s4909_s0 + $0x134] ss:$36 sps:$4 sm:$0xff]  }
  0x3a   :  { %1619 = vmatmul.mubr.bf16.gmra.mrb[12].mxu0 %v3596_v49  ;;  %1715 = vmatmul.mubr.bf16.gmra.mrb[12].mxu1 %v3597_v50  ;;  %v3670_v49 = vld [vmem:[%s4909_s0 + $0x24c] ss:$36 sps:$4 sm:$0xff]   ;;  %v3674_v50 = vld [vmem:[%s4909_s0 + $0x14] ss:$36 sps:$4 sm:$0xff]  }
  0x3b   :  { %3131 = vmatpush3.bf16.msra.mxu1 %v3599_v51  ;;  %1626 = vmatprep.mubr.bf16.mxu0 %v3604_v53  ;;  %v3672_v51 = vld [vmem:[%s4909_s0 + $0x10] ss:$36 sps:$4 sm:$0xff]  }
  0x3c   :  { %3132 = vmatprep.subr.bf16.mxu1 %v3600_v52  ;;  %1755 = vmatprep.mubr.bf16.mxu1 %v3608_v54  ;;  %v3675_v52 = vld [vmem:[%s4909_s0 + $0x248] ss:$36 sps:$4 sm:$0xff]   ;;  %v3679_v53 = vld [vmem:[%s4909_s0 + $0x294] ss:$36 sps:$4 sm:$0xff]   ;;  %v3681_v54 = vld [vmem:[%s4909_s0 + $0x5c] ss:$36 sps:$4 sm:$0xff]  }
  0x3d   :  { %3241 = vmatpush3.bf16.msra.mxu0 %v3644_v10  ;;  %v3704_v10 = vld [vmem:[%s4909_s0 + $0x368] ss:$36 sps:$4 sm:$0xff]  }
  0x3e   :  { %3242 = vmatprep.subr.bf16.mxu0 %v3652_v15  ;;  %v3714_v15 = vld [vmem:[%s4909_s0 + $0x178] ss:$36 sps:$4 sm:$0xff]  }
  0x3f   :  { %3133 = vmatpush3.bf16.msra.mxu1 %v3602_v57  ;;  %v3683_v57 = vld [vmem:[%s4909_s0 + $0x290] ss:$36 sps:$4 sm:$0xff]  }
  0x40   :  { %3342 = vmatprep.subr.bf16.mxu1 %v3610_v60  ;;  %v3687_v60 = vld [vmem:[%s4909_s0 + $0xa4] ss:$36 sps:$4 sm:$0xff]  }
  0x41   :  { %3243 = vmatpush3.bf16.msra.mxu0 %v3653_v16  ;;  %v3715_v16 = vld [vmem:[%s4909_s0 + $0x3fc] ss:$36 sps:$4 sm:$0xff]  }
  0x42   :  { %1627 = vmatmul.mubr.bf16.gmra.mrb[16].mxu0 %v3609_v59  ;;  %1756 = vmatmul.mubr.bf16.vlgmr.msra.gmra.mrb[16].mxu1 %v3606_v58  ;;  %v3684_v58 = vld [vmem:[%s4909_s0 + $0x58] ss:$36 sps:$4 sm:$0xff]  }
  0x43   :  { %3343 = vmatpush3.bf16.msra.mxu1 %v3611_v61  ;;  %1634 = vmatprep.mubr.bf16.mxu0 %v3612_v62  ;;  %v3685_v59 = vld [vmem:[%s4909_s0 + $0x2dc] ss:$36 sps:$4 sm:$0xff]  }
  0x44   :  { %1763 = vmatprep.mubr.bf16.mxu1 %v3614_v63  ;;  %3344 = vmatprep.subr.bf16.mxu1 %v3626_v1  ;;  %v3723_v61 = vld [vmem:[%s4908_s1 + $0x218] sm:$0xff]   ;;  %v3736_v62 = vld [vmem:[%s4908_s1 + $0x220] sm:$0xff]  }
  0x45   :  { %3244 = vmatprep.subr.bf16.mxu0 %v3668_v24  ;;  %v3689_v63 = vld [vmem:[%s4909_s0 + $0x2d8] ss:$36 sps:$4 sm:$0xff]   ;;  %v3694_v1 = vld [vmem:[%s4909_s0 + $0x324] ss:$36 sps:$4 sm:$0xff]  }
  0x46   :  { %3245 = vmatpush3.bf16.msra.mxu0 %v3669_v25  ;;  %v3730_v24 = vld [vmem:[%s4909_s0 + $0x254] ss:$36 sps:$4 sm:$0xff]   ;;  %v3734_v25 = vld [vmem:[%s4909_s0 + $0x1c] ss:$36 sps:$4 sm:$0xff]  }
  0x47   :  { %3345 = vmatpush3.bf16.msra.mxu1 %v3627_v3  ;;  %3478 = vmatprep.subr.bf16.mxu0 %v3678_v29  ;;  %v3749_v3 = vld [vmem:[%s4908_s1 + $0x228] sm:$0xff]  }
  0x48   :  { %3346 = vmatprep.subr.bf16.mxu1 %v3643_v9  ;;  %v3775_v9 = vld [vmem:[%s4908_s1 + $0x238] sm:$0xff]  }
  0x4a   :  { %1635 = vmatmul.mubr.bf16.gmra.mrb[20].mxu0 %v3616_v4  ;;  %1764 = vmatmul.mubr.bf16.gmra.mrb[20].mxu1 %v3617_v5  ;;  %v3698_v4 = vld [vmem:[%s4909_s0 + $0x320] ss:$36 sps:$4 sm:$0xff]   ;;  %v3699_v5 = vld [vmem:[%s4909_s0 + $0xe8] ss:$36 sps:$4 sm:$0xff]  }
  0x4b   :  { %1642 = vmatprep.mubr.bf16.mxu0 %v3620_v6  ;;  %1771 = vmatprep.mubr.bf16.mxu1 %v3622_v7  ;;  %v3762_v6 = vld [vmem:[%s4908_s1 + $0x230] sm:$0xff]  }
  0x4c   :  { %3347 = vmatpush3.bf16.msra.mxu1 %v3645_v11  ;;  %v3700_v7 = vld [vmem:[%s4909_s0 + $0x36c] ss:$36 sps:$4 sm:$0xff]  }
  0x4d   :  { %3348 = vmatprep.subr.bf16.mxu1 %v3660_v18  ;;  %v3705_v11 = vld [vmem:[%s4909_s0 + $0x130] ss:$36 sps:$4 sm:$0xff]   ;;  %v3719_v18 = vld [vmem:[%s4909_s0 + $0x3f8] ss:$36 sps:$4 sm:$0xff]  }
  0x50   :  { %3349 = vmatpush3.bf16.msra.mxu1 %v3661_v19  ;;  %v3720_v19 = vld [vmem:[%s4909_s0 + $0x1c0] ss:$36 sps:$4 sm:$0xff]  }
  0x51   :  { %3350 = vmatprep.subr.bf16.mxu1 %v3676_v26  ;;  %v3732_v26 = vld [vmem:[%s4909_s0 + $0x18] ss:$36 sps:$4 sm:$0xff]  }
  0x52   :  { %1643 = vmatmul.mubr.bf16.gmra.mrb[24].mxu0 %v3624_v12  ;;  %1772 = vmatmul.mubr.bf16.gmra.mrb[24].mxu1 %v3625_v13  ;;  %v3709_v12 = vld [vmem:[%s4909_s0 + $0x3b4] ss:$36 sps:$4 sm:$0xff]   ;;  %v3711_v13 = vld [vmem:[%s4909_s0 + $0x17c] ss:$36 sps:$4 sm:$0xff]  }
  0x53   :  { %1650 = vmatprep.mubr.bf16.mxu0 %v3630_v14  ;;  %1779 = vmatprep.mubr.bf16.mxu1 %v3632_v17  ;;  %v3713_v14 = vld [vmem:[%s4909_s0 + $0x3b0] ss:$36 sps:$4 sm:$0xff]   ;;  %v3717_v17 = vld [vmem:[%s4909_s0 + $0x1c4] ss:$36 sps:$4 sm:$0xff]  }
  0x54   :  { %3351 = vmatpush3.bf16.msra.mxu1 %v3677_v28  ;;  %v3737_v28 = vld [vmem:[%s4909_s0 + $0x29c] ss:$36 sps:$4 sm:$0xff]  }
  0x55   :  { %3352 = vmatprep.subr.bf16.mxu1 %v3691_v33  ;;  %v3745_v33 = vld [vmem:[%s4909_s0 + $0xac] ss:$36 sps:$4 sm:$0xff]  }
  0x58   :  { %3353 = vmatpush3.bf16.msra.mxu1 %v3692_v35  ;;  %v3748_v35 = vld [vmem:[%s4909_s0 + $0xa8] ss:$36 sps:$4 sm:$0xff]  }
  0x59   :  { %3354 = vmatprep.subr.bf16.mxu1 %v3706_v41  ;;  %v3758_v41 = vld [vmem:[%s4909_s0 + $0x13c] ss:$36 sps:$4 sm:$0xff]  }
  0x5a   :  { %1651 = vmatmul.mubr.bf16.gmra.mrb[28].mxu0 %v3634_v20  ;;  %1780 = vmatmul.mubr.bf16.gmra.mrb[28].mxu1 %v3635_v21  ;;  %v3724_v20 = vld [vmem:[%s4909_s0 + $0x444] ss:$36 sps:$4 sm:$0xff]   ;;  %v3726_v21 = vld [vmem:[%s4909_s0 + $0x20c] ss:$36 sps:$4 sm:$0xff]  }
  0x5b   :  { %1658 = vmatprep.mubr.bf16.mxu0 %v3636_v22  ;;  %1787 = vmatprep.mubr.bf16.mxu1 %v3638_v23  ;;  %v3728_v22 = vld [vmem:[%s4909_s0 + $0x440] ss:$36 sps:$4 sm:$0xff]   ;;  %v3729_v23 = vld [vmem:[%s4909_s0 + $0x208] ss:$36 sps:$4 sm:$0xff]  }
  0x5c   :  { %3355 = vmatpush3.bf16.msra.mxu1 %v3707_v42  ;;  %v3760_v42 = vld [vmem:[%s4909_s0 + $0x370] ss:$36 sps:$4 sm:$0xff]  }
  0x5d   :  { %3356 = vmatprep.subr.bf16.mxu1 %v3721_v47  ;;  %v3768_v47 = vld [vmem:[%s4909_s0 + $0x180] ss:$36 sps:$4 sm:$0xff]  }
  0x60   :  { %3357 = vmatpush3.bf16.msra.mxu1 %v3722_v48  ;;  %v3769_v48 = vld [vmem:[%s4909_s0 + $0x404] ss:$36 sps:$4 sm:$0xff]  }
  0x62   :  { %1659 = vmatmul.mubr.bf16.gmra.mrb[32].mxu0 %v3640_v27  ;;  %1788 = vmatmul.mubr.bf16.gmra.mrb[32].mxu1 %v3641_v30  ;;  %v3735_v27 = vld [vmem:[%s4909_s0 + $0x250] ss:$36 sps:$4 sm:$0xff]   ;;  %v3741_v30 = vld [vmem:[%s4909_s0 + $0x298] ss:$36 sps:$4 sm:$0xff]  }
  0x63   :  { %1666 = vmatprep.mubr.bf16.mxu0 %v3646_v31  ;;  %1795 = vmatprep.mubr.bf16.mxu1 %v3648_v32  ;;  %v3742_v31 = vld [vmem:[%s4909_s0 + $0x60] ss:$36 sps:$4 sm:$0xff]  }
  0x64   :  { %v3743_v32 = vld [vmem:[%s4909_s0 + $0x2e4] ss:$36 sps:$4 sm:$0xff]  }
  0x6a   :  { %1667 = vmatmul.mubr.bf16.gmra.mrb[36].mxu0 %v3650_v34  ;;  %1796 = vmatmul.mubr.bf16.gmra.mrb[36].mxu1 %v3651_v36  ;;  %v3747_v34 = vld [vmem:[%s4909_s0 + $0x2e0] ss:$36 sps:$4 sm:$0xff]   ;;  %v3750_v36 = vld [vmem:[%s4909_s0 + $0x32c] ss:$36 sps:$4 sm:$0xff]  }
  0x6b   :  { %1674 = vmatprep.mubr.bf16.mxu0 %v3654_v37  ;;  %1803 = vmatprep.mubr.bf16.mxu1 %v3656_v38  ;;  %v3752_v37 = vld [vmem:[%s4909_s0 + $0xf4] ss:$36 sps:$4 sm:$0xff]   ;;  %v3754_v38 = vld [vmem:[%s4909_s0 + $0x328] ss:$36 sps:$4 sm:$0xff]  }
  0x72   :  { %1675 = vmatmul.mubr.bf16.gmra.mrb[40].mxu0 %v3658_v39  ;;  %1804 = vmatmul.mubr.bf16.gmra.mrb[40].mxu1 %v3659_v40  ;;  %v3755_v39 = vld [vmem:[%s4909_s0 + $0xf0] ss:$36 sps:$4 sm:$0xff]  }
  0x73   :  { %1682 = vmatprep.mubr.bf16.mxu0 %v3662_v43  ;;  %1811 = vmatprep.mubr.bf16.mxu1 %v3664_v44  ;;  %v3756_v40 = vld [vmem:[%s4909_s0 + $0x374] ss:$36 sps:$4 sm:$0xff]   ;;  %v3763_v44 = vld [vmem:[%s4909_s0 + $0x3bc] ss:$36 sps:$4 sm:$0xff]  }
  0x74   :  { %v3761_v43 = vld [vmem:[%s4909_s0 + $0x138] ss:$36 sps:$4 sm:$0xff]  }
  0x7a   :  { %1683 = vmatmul.mubr.bf16.gmra.mrb[44].mxu0 %v3666_v45  ;;  %1812 = vmatmul.mubr.bf16.gmra.mrb[44].mxu1 %v3667_v46  ;;  %v3765_v45 = vld [vmem:[%s4909_s0 + $0x184] ss:$36 sps:$4 sm:$0xff]   ;;  %v3767_v46 = vld [vmem:[%s4909_s0 + $0x3b8] ss:$36 sps:$4 sm:$0xff]  }
  0x7b   :  { %1819 = vmatprep.mubr.bf16.mxu1 %v3670_v49  ;;  %1916 = vmatprep.mubr.bf16.mxu0 %v3674_v50  ;;  %v3771_v49 = vld [vmem:[%s4909_s0 + $0x1cc] ss:$36 sps:$4 sm:$0xff]   ;;  %v3773_v50 = vld [vmem:[%s4909_s0 + $0x400] ss:$36 sps:$4 sm:$0xff]  }
  0x82   :  { %1820 = vmatmul.mubr.bf16.gmra.mrb[48].mxu1 %v3675_v52  ;;  %1917 = vmatmul.mubr.bf16.vlgmr.msra.gmra.mrb[48].mxu0 %v3672_v51  ;;  %v3774_v51 = vld [vmem:[%s4909_s0 + $0x1c8] ss:$36 sps:$4 sm:$0xff]  }
  0x83   :  { %3479 = vmatpush3.bf16.msra.mxu0 %v3678_v29  ;;  %1827 = vmatprep.mubr.bf16.mxu1 %v3679_v53  ;;  %v3739_v29 = vld [vmem:[%s4909_s0 + $0x64] ss:$36 sps:$4 sm:$0xff]   ;;  %v3776_v52 = vld [vmem:[%s4909_s0 + $0x44c] ss:$36 sps:$4 sm:$0xff]   ;;  %v3778_v53 = vld [vmem:[%s4909_s0 + $0x214] ss:$36 sps:$4 sm:$0xff]  }
  0x84   :  { %1924 = vmatprep.mubr.bf16.mxu0 %v3681_v54  ;;  %3480 = vmatprep.subr.bf16.mxu0 %v3693_v55 }
  0x87   :  { %3481 = vmatpush3.bf16.msra.mxu0 %v3693_v55 }
  0x88   :  { %3482 = vmatprep.subr.bf16.mxu0 %v3708_v56 }
  0x8a   :  { %1828 = vmatmul.mubr.bf16.gmra.mrb[52].mxu1 %v3683_v57  ;;  %1925 = vmatmul.mubr.bf16.gmra.mrb[52].mxu0 %v3684_v58  ;;  %v3780_v58 = vld [vmem:[%s4909_s0 + $0x448] ss:$36 sps:$4 sm:$0xff]  }
  0x8b   :  { %1835 = vmatprep.mubr.bf16.mxu1 %v3685_v59  ;;  %1932 = vmatprep.mubr.bf16.mxu0 %v3687_v60  ;;  %v3781_v59 = vld [vmem:[%s4909_s0 + $0x210] ss:$36 sps:$4 sm:$0xff]  }
  0x8c   :  { %3483 = vmatpush3.bf16.msra.mxu0 %v3708_v56 }
  0x8d   :  { %3484 = vmatprep.subr.bf16.mxu0 %v3723_v61 }
  0x90   :  { %3485 = vmatpush3.bf16.msra.mxu0 %v3723_v61 }
  0x91   :  { %3486 = vmatprep.subr.bf16.mxu0 %v3736_v62 }
  0x92   :  { %1836 = vmatmul.mubr.bf16.gmra.mrb[56].mxu1 %v3689_v63  ;;  %1933 = vmatmul.mubr.bf16.gmra.mrb[56].mxu0 %v3690_v0  ;;  %v3782_v0 = vld [vmem:[%s4909_s0 + $0x25c] ss:$36 sps:$4 sm:$0xff]  }
  0x93   :  { %1843 = vmatprep.mubr.bf16.mxu1 %v3694_v1  ;;  %1940 = vmatprep.mubr.bf16.mxu0 %v3696_v2  ;;  %v3784_v1 = vld [vmem:[%s4909_s0 + $0x20] ss:$36 sps:$4 sm:$0xff]  }
  0x94   :  { %3487 = vmatpush3.bf16.msra.mxu0 %v3736_v62 }
  0x95   :  { %3488 = vmatprep.subr.bf16.mxu0 %v3749_v3 }
  0x98   :  { %3489 = vmatpush3.bf16.msra.mxu0 %v3749_v3 }
  0x99   :  { %3490 = vmatprep.subr.bf16.mxu0 %v3762_v6 }
  0x9a   :  { %1844 = vmatmul.mubr.bf16.gmra.mrb[60].mxu1 %v3698_v4  ;;  %1941 = vmatmul.mubr.bf16.gmra.mrb[60].mxu0 %v3699_v5 }
  0x9b   :  { %1851 = vmatprep.mubr.bf16.mxu1 %v3700_v7  ;;  %1948 = vmatprep.mubr.bf16.mxu0 %v3702_v8 }
  0x9c   :  { %3491 = vmatpush3.bf16.msra.mxu0 %v3762_v6 }
  0x9d   :  { %3492 = vmatprep.subr.bf16.mxu0 %v3775_v9 }
  0xa0   :  { %3493 = vmatpush3.bf16.msra.mxu0 %v3775_v9 }
  0xa2   :  { %1852 = vmatmul.mubr.bf16.gmra.mrb[64].mxu1 %v3704_v10  ;;  %1949 = vmatmul.mubr.bf16.gmra.mrb[64].mxu0 %v3705_v11  ;;  %v3785_v10 = vld [vmem:[%s4909_s0 + $0x258] ss:$36 sps:$4 sm:$0xff]   ;;  %v3786_v11 = vld [vmem:[%s4909_s0 + $0x68] ss:$36 sps:$4 sm:$0xff]  }
  0xa3   :  { %1859 = vmatprep.mubr.bf16.mxu1 %v3709_v12  ;;  %1956 = vmatprep.mubr.bf16.mxu0 %v3711_v13 }
  0xaa   :  { %1860 = vmatmul.mubr.bf16.gmra.mrb[68].mxu1 %v3713_v14  ;;  %1957 = vmatmul.mubr.bf16.gmra.mrb[68].mxu0 %v3714_v15 }
  0xab   :  { %1867 = vmatprep.mubr.bf16.mxu1 %v3715_v16  ;;  %1964 = vmatprep.mubr.bf16.mxu0 %v3717_v17  ;;  %v3787_v16 = vld [vmem:[%s4909_s0 + $0x2a4] ss:$36 sps:$4 sm:$0xff]   ;;  %v3789_v17 = vld [vmem:[%s4909_s0 + $0xb0] ss:$36 sps:$4 sm:$0xff]  }
  0xb2   :  { %1868 = vmatmul.mubr.bf16.gmra.mrb[72].mxu1 %v3719_v18  ;;  %1965 = vmatmul.mubr.bf16.gmra.mrb[72].mxu0 %v3720_v19 }
  0xb3   :  { %1875 = vmatprep.mubr.bf16.mxu1 %v3724_v20  ;;  %1972 = vmatprep.mubr.bf16.mxu0 %v3726_v21 }
  0xba   :  { %1876 = vmatmul.mubr.bf16.gmra.mrb[76].mxu1 %v3728_v22  ;;  %1973 = vmatmul.mubr.bf16.gmra.mrb[76].mxu0 %v3729_v23 }
  0xbb   :  { %1980 = vmatprep.mubr.bf16.mxu0 %v3730_v24  ;;  %2077 = vmatprep.mubr.bf16.mxu1 %v3734_v25 }
  0xc2   :  { %1981 = vmatmul.mubr.bf16.gmra.mrb[80].mxu0 %v3735_v27  ;;  %2078 = vmatmul.mubr.bf16.vlgmr.msra.gmra.mrb[80].mxu1 %v3732_v26  ;;  %v3790_v26 = vld [vmem:[%s4909_s0 + $0x2a0] ss:$36 sps:$4 sm:$0xff]   ;;  %v3791_v27 = vld [vmem:[%s4909_s0 + $0xf8] ss:$36 sps:$4 sm:$0xff]  }
  0xc3   :  { %1988 = vmatprep.mubr.bf16.mxu0 %v3737_v28  ;;  %2085 = vmatprep.mubr.bf16.mxu1 %v3739_v29 }
  0xca   :  { %1989 = vmatmul.mubr.bf16.gmra.mrb[84].mxu0 %v3741_v30  ;;  %2086 = vmatmul.mubr.bf16.gmra.mrb[84].mxu1 %v3742_v31 }
  0xcb   :  { %1996 = vmatprep.mubr.bf16.mxu0 %v3743_v32  ;;  %2093 = vmatprep.mubr.bf16.mxu1 %v3745_v33  ;;  %v3792_v32 = vld [vmem:[%s4909_s0 + $0x2ec] ss:$36 sps:$4 sm:$0xff]   ;;  %v3794_v33 = vld [vmem:[%s4909_s0 + $0x140] ss:$36 sps:$4 sm:$0xff]  }
  0xd2   :  { %1997 = vmatmul.mubr.bf16.gmra.mrb[88].mxu0 %v3747_v34  ;;  %2094 = vmatmul.mubr.bf16.gmra.mrb[88].mxu1 %v3748_v35 }
  0xd3   :  { %2004 = vmatprep.mubr.bf16.mxu0 %v3750_v36  ;;  %2101 = vmatprep.mubr.bf16.mxu1 %v3752_v37 }
  0xda   :  { %2005 = vmatmul.mubr.bf16.gmra.mrb[92].mxu0 %v3754_v38  ;;  %2102 = vmatmul.mubr.bf16.gmra.mrb[92].mxu1 %v3755_v39 }
  0xdb   :  { %2012 = vmatprep.mubr.bf16.mxu0 %v3756_v40  ;;  %2109 = vmatprep.mubr.bf16.mxu1 %v3758_v41 }
  0xe2   :  { %2013 = vmatmul.mubr.bf16.gmra.mrb[96].mxu0 %v3760_v42  ;;  %2110 = vmatmul.mubr.bf16.gmra.mrb[96].mxu1 %v3761_v43  ;;  %v3795_v42 = vld [vmem:[%s4909_s0 + $0x2e8] ss:$36 sps:$4 sm:$0xff]  }
  0xe3   :  { %2020 = vmatprep.mubr.bf16.mxu0 %v3763_v44  ;;  %2117 = vmatprep.mubr.bf16.mxu1 %v3765_v45  ;;  %v3796_v43 = vld [vmem:[%s4909_s0 + $0x188] ss:$36 sps:$4 sm:$0xff]  }
  0xea   :  { %2021 = vmatmul.mubr.bf16.gmra.mrb[100].mxu0 %v3767_v46  ;;  %2118 = vmatmul.mubr.bf16.gmra.mrb[100].mxu1 %v3768_v47 }
  0xeb   :  { %2028 = vmatprep.mubr.bf16.mxu0 %v3769_v48  ;;  %2125 = vmatprep.mubr.bf16.mxu1 %v3771_v49  ;;  %v3797_v48 = vld [vmem:[%s4909_s0 + $0x334] ss:$36 sps:$4 sm:$0xff]  }
  0xec   :  { %v3799_v49 = vld [vmem:[%s4909_s0 + $0x1d0] ss:$36 sps:$4 sm:$0xff]  }
  0xf2   :  { %2029 = vmatmul.mubr.bf16.gmra.mrb[104].mxu0 %v3773_v50  ;;  %2126 = vmatmul.mubr.bf16.gmra.mrb[104].mxu1 %v3774_v51 }
  0xf3   :  { %2036 = vmatprep.mubr.bf16.mxu0 %v3776_v52  ;;  %2133 = vmatprep.mubr.bf16.mxu1 %v3778_v53 }
  0xf5   :  { %v3094_v54 = vpop.f32.mrb[0].mxu1  ;;  %v3022_v55 = vpop.f32.mrb[0].mxu0 }
  0xf6   :  { %v3095_v56 = vpop.f32.mrb[1].mxu1  ;;  %v3023_v57 = vpop.f32.mrb[1].mxu0 }
  0xf7   :  { %v4394_v60 = vadd.f32 %v3095_v56, %v3094_v54  ;;  %v3097_v61 = vpop.f32.mrb[2].mxu1  ;;  %v4396_v62 = vadd.f32 %v3023_v57, %v3022_v55  ;;  %v3025_v63 = vpop.f32.mrb[2].mxu0 }
  0xf8   :  { %v3098_v2 = vpop.f32.mrb[3].mxu1  ;;  %v3026_v3 = vpop.f32.mrb[3].mxu0 }
  0xf9   :  { %v4404_v4 = vadd.f32 %v3098_v2, %v3097_v61  ;;  %v4406_v5 = vadd.f32 %v3026_v3, %v3025_v63  ;;  %v3802_v2 = vld [vmem:[%s4909_s0 + $0x37c] ss:$36 sps:$4 sm:$0xff]  }
  0xfa   :  { %2037 = vmatmul.mubr.bf16.gmra.mrb[108].mxu0 %v3780_v58  ;;  %2134 = vmatmul.mubr.bf16.gmra.mrb[108].mxu1 %v3781_v59  ;;  %v3800_v58 = vld [vmem:[%s4909_s0 + $0x330] ss:$36 sps:$4 sm:$0xff]   ;;  %v3801_v59 = vld [vmem:[%s4909_s0 + $0x218] ss:$36 sps:$4 sm:$0xff]   ;;  %v3804_v3 = vld [vmem:[%s4909_s0 + $0x260] ss:$36 sps:$4 sm:$0xff]  }
  0xfb   :  { %2141 = vmatprep.mubr.bf16.mxu1 %v3782_v0  ;;  %3494 = vmatprep.mubr.bf16.mxu0 %v3784_v1 }
  0xfd   :  { %v3100_v6 = vpop.f32.mrb[4].mxu1  ;;  %v3028_v7 = vpop.f32.mrb[4].mxu0 }
  0xfe   :  { %v3101_v8 = vpop.f32.mrb[5].mxu1  ;;  %v3029_v9 = vpop.f32.mrb[5].mxu0 }
  0xff   :  { %v4414_v12 = vadd.f32 %v3101_v8, %v3100_v6  ;;  %v3103_v13 = vpop.f32.mrb[6].mxu1  ;;  %v4416_v14 = vadd.f32 %v3029_v9, %v3028_v7  ;;  %v3031_v15 = vpop.f32.mrb[6].mxu0 }
 0x100   :  { %v3104_v18 = vpop.f32.mrb[7].mxu1  ;;  %v3032_v19 = vpop.f32.mrb[7].mxu0 }
 0x101   :  { %v4424_v20 = vadd.f32 %v3104_v18, %v3103_v13  ;;  %v4426_v21 = vadd.f32 %v3032_v19, %v3031_v15  ;;  %v3805_v18 = vld [vmem:[%s4909_s0 + $0x378] ss:$36 sps:$4 sm:$0xff]  }
 0x102   :  { %2142 = vmatmul.mubr.bf16.gmra.mrb[112].mxu1 %v3785_v10  ;;  %3495 = vmatmul.mubr.bf16.vlgmr.msra.gmra.mrb[112].mxu0 %v3786_v11 }
 0x103   :  { %2149 = vmatprep.mubr.bf16.mxu1 %v3787_v16  ;;  %3498 = vmatprep.mubr.bf16.mxu0 %v3789_v17 }
 0x105   :  { %v3106_v22 = vpop.f32.mrb[8].mxu1  ;;  %v3034_v23 = vpop.f32.mrb[8].mxu0 }
 0x106   :  { %v3107_v24 = vpop.f32.mrb[9].mxu1  ;;  %v3035_v25 = vpop.f32.mrb[9].mxu0 }
 0x107   :  { %v4434_v28 = vadd.f32 %v3107_v24, %v3106_v22  ;;  %v3109_v29 = vpop.f32.mrb[10].mxu1  ;;  %v4436_v30 = vadd.f32 %v3035_v25, %v3034_v23  ;;  %v3037_v31 = vpop.f32.mrb[10].mxu0  ;;  %v3807_v24 = vld [vmem:[%s4909_s0 + $0x3c4] ss:$36 sps:$4 sm:$0xff]   ;;  %v3809_v25 = vld [vmem:[%s4909_s0 + $0x2f0] ss:$36 sps:$4 sm:$0xff]  }
 0x108   :  { %v3110_v34 = vpop.f32.mrb[11].mxu1  ;;  %v3038_v35 = vpop.f32.mrb[11].mxu0 }
 0x109   :  { %v4444_v36 = vadd.f32 %v3110_v34, %v3109_v29  ;;  %v4446_v37 = vadd.f32 %v3038_v35, %v3037_v31 }
 0x10a   :  { %2150 = vmatmul.mubr.bf16.gmra.mrb[116].mxu1 %v3790_v26  ;;  %3499 = vmatmul.mubr.bf16.gmra.mrb[116].mxu0 %v3791_v27 }
 0x10b   :  { %2157 = vmatprep.mubr.bf16.mxu1 %v3792_v32  ;;  %3502 = vmatprep.mubr.bf16.mxu0 %v3794_v33 }
 0x10d   :  { %v3112_v38 = vpop.f32.mrb[12].mxu1  ;;  %v3040_v39 = vpop.f32.mrb[12].mxu0 }
 0x10e   :  { %v3113_v40 = vpop.f32.mrb[13].mxu1  ;;  %v3041_v41 = vpop.f32.mrb[13].mxu0 }
 0x10f   :  { %v4454_v44 = vadd.f32 %v3113_v40, %v3112_v38  ;;  %v3115_v45 = vpop.f32.mrb[14].mxu1  ;;  %v4456_v46 = vadd.f32 %v3041_v41, %v3040_v39  ;;  %v3043_v47 = vpop.f32.mrb[14].mxu0  ;;  %v3810_v40 = vld [vmem:[%s4909_s0 + $0x3c0] ss:$36 sps:$4 sm:$0xff]  }
 0x110   :  { %v3116_v50 = vpop.f32.mrb[15].mxu1  ;;  %v3044_v51 = vpop.f32.mrb[15].mxu0 }
 0x111   :  { %v4464_v52 = vadd.f32 %v3116_v50, %v3115_v45  ;;  %v4466_v53 = vadd.f32 %v3044_v51, %v3043_v47  ;;  %v3812_v45 = vld [vmem:[%s4909_s0 + $0x40c] ss:$36 sps:$4 sm:$0xff]   ;;  %v3814_v47 = vld [vmem:[%s4909_s0 + $0x380] ss:$36 sps:$4 sm:$0xff]  }
 0x112   :  { %2158 = vmatmul.mubr.bf16.gmra.mrb[120].mxu1 %v3795_v42  ;;  %3503 = vmatmul.mubr.bf16.gmra.mrb[120].mxu0 %v3796_v43 }
 0x113   :  { %2165 = vmatprep.mubr.bf16.mxu1 %v3797_v48  ;;  %3506 = vmatprep.mubr.bf16.mxu0 %v3799_v49 }
 0x115   :  { %v3134_v54 = vpop.f32.mrb[16].mxu1  ;;  %v3046_v55 = vpop.f32.mrb[16].mxu0 }
 0x116   :  { %v3135_v56 = vpop.f32.mrb[17].mxu1  ;;  %v3047_v57 = vpop.f32.mrb[17].mxu0 }
 0x117   :  { %v3136_v61 = vadd.f32 %v3135_v56, %v3134_v54  ;;  %v3137_v63 = vpop.f32.mrb[18].mxu1  ;;  %v4474_v0 = vadd.f32 %v3047_v57, %v3046_v55  ;;  %v3049_v1 = vpop.f32.mrb[18].mxu0 }
 0x118   :  { %v3138_v6 = vpop.f32.mrb[19].mxu1  ;;  %v3050_v7 = vpop.f32.mrb[19].mxu0 }
 0x119   :  { %v4483_v8 = vadd.f32 %v3136_v61, %v4396_v62  ;;  %v3139_v9 = vadd.f32 %v3138_v6, %v3137_v63  ;;  %v4485_v10 = vadd.f32 %v3050_v7, %v3049_v1  ;;  %v3806_v62 = vld [vmem:[%s4909_s0 + $0x2a8] ss:$36 sps:$4 sm:$0xff]   ;;  %v3819_v6 = vld [vmem:[%s4909_s0 + $0x410] ss:$36 sps:$4 sm:$0xff]  }
 0x11a   :  { %2166 = vmatmul.mubr.bf16.gmra.mrb[124].mxu1 %v3800_v58  ;;  %3507 = vmatmul.mubr.bf16.gmra.mrb[124].mxu0 %v3801_v59  ;;  %v3815_v61 = vld [vmem:[%s4909_s0 + $0x408] ss:$36 sps:$4 sm:$0xff]  }
 0x11b   :  { %v4488_v11 = vadd.f32 %v3139_v9, %v4406_v5  ;;  %2173 = vmatprep.mubr.bf16.mxu1 %v3802_v2  ;;  %3510 = vmatprep.mubr.bf16.mxu0 %v3804_v3  ;;  %v3817_v3 = vld [vmem:[%s4909_s0 + $0x454] ss:$36 sps:$4 sm:$0xff]  }
 0x11d   :  { %v3140_v13 = vpop.f32.mrb[20].mxu1  ;;  %v3052_v15 = vpop.f32.mrb[20].mxu0 }
 0x11e   :  { %v3141_v16 = vpop.f32.mrb[21].mxu1  ;;  %v3053_v17 = vpop.f32.mrb[21].mxu0 }
 0x11f   :  { %v3142_v19 = vadd.f32 %v3141_v16, %v3140_v13  ;;  %v3143_v22 = vpop.f32.mrb[22].mxu1  ;;  %v4496_v23 = vadd.f32 %v3053_v17, %v3052_v15  ;;  %v3055_v5 = vpop.f32.mrb[22].mxu0 }
 0x120   :  { %v3144_v26 = vpop.f32.mrb[23].mxu1  ;;  %v3056_v27 = vpop.f32.mrb[23].mxu0 }
 0x121   :  { %v4505_v29 = vadd.f32 %v3142_v19, %v4416_v14  ;;  %v3145_v31 = vadd.f32 %v3144_v26, %v3143_v22  ;;  %v4507_v32 = vadd.f32 %v3056_v27, %v3055_v5  ;;  %v3811_v14 = vld [vmem:[%s4909_s0 + $0x338] ss:$36 sps:$4 sm:$0xff]   ;;  %v3820_v5 = vld [vmem:[%s4909_s0 + $0x450] ss:$36 sps:$4 sm:$0xff]  }
 0x122   :  { %2174 = vmatmul.mubr.bf16.gmra.mrb[128].mxu1 %v3805_v18  ;;  %3511 = vmatmul.mubr.bf16.gmra.mrb[128].mxu0 %v3806_v62 }
 0x123   :  { %v4510_v33 = vadd.f32 %v3145_v31, %v4426_v21  ;;  %2181 = vmatprep.mubr.bf16.mxu1 %v3807_v24  ;;  %3514 = vmatprep.mubr.bf16.mxu0 %v3809_v25 }
 0x125   :  { %v3146_v34 = vpop.f32.mrb[24].mxu1  ;;  %v3058_v35 = vpop.f32.mrb[24].mxu0 }
 0x126   :  { %v3147_v38 = vpop.f32.mrb[25].mxu1  ;;  %v3059_v39 = vpop.f32.mrb[25].mxu0 }
 0x127   :  { %v3148_v41 = vadd.f32 %v3147_v38, %v3146_v34  ;;  %v3149_v42 = vpop.f32.mrb[26].mxu1  ;;  %v4518_v43 = vadd.f32 %v3059_v39, %v3058_v35  ;;  %v3061_v21 = vpop.f32.mrb[26].mxu0 }
 0x128   :  { %v3150_v48 = vpop.f32.mrb[27].mxu1  ;;  %v3062_v49 = vpop.f32.mrb[27].mxu0 }
 0x129   :  { %v4527_v50 = vadd.f32 %v3148_v41, %v4436_v30  ;;  %v3151_v51 = vadd.f32 %v3150_v48, %v3149_v42  ;;  %v4529_v54 = vadd.f32 %v3062_v49, %v3061_v21  ;;  %v3816_v30 = vld [vmem:[%s4909_s0 + $0x3c8] ss:$36 sps:$4 sm:$0xff]  }
 0x12a   :  { %2182 = vmatmul.mubr.bf16.gmra.mrb[132].mxu1 %v3810_v40  ;;  %3515 = vmatmul.mubr.bf16.gmra.mrb[132].mxu0 %v3811_v14 }
 0x12b   :  { %v4532_v55 = vadd.f32 %v3151_v51, %v4446_v37  ;;  %2189 = vmatprep.mubr.bf16.mxu1 %v3812_v45  ;;  %3518 = vmatprep.mubr.bf16.mxu0 %v3814_v47 }
 0x12d   :  { %v3152_v56 = vpop.f32.mrb[28].mxu1  ;;  %v3064_v57 = vpop.f32.mrb[28].mxu0 }
 0x12e   :  { %v3153_v58 = vpop.f32.mrb[29].mxu1  ;;  %v3065_v59 = vpop.f32.mrb[29].mxu0 }
 0x12f   :  { %v3154_v63 = vadd.f32 %v3153_v58, %v3152_v56  ;;  %v3155_v1 = vpop.f32.mrb[30].mxu1  ;;  %v4540_v2 = vadd.f32 %v3065_v59, %v3064_v57  ;;  %v3067_v37 = vpop.f32.mrb[30].mxu0 }
 0x130   :  { %v3156_v7 = vpop.f32.mrb[31].mxu1  ;;  %v3068_v9 = vpop.f32.mrb[31].mxu0 }
 0x131   :  { %v4549_v13 = vadd.f32 %v3154_v63, %v4456_v46  ;;  %v3157_v15 = vadd.f32 %v3156_v7, %v3155_v1  ;;  %v4551_v16 = vadd.f32 %v3068_v9, %v3067_v37  ;;  %v3821_v46 = vld [vmem:[%s4909_s0 + $0x458] ss:$36 sps:$4 sm:$0xff]  }
 0x132   :  { %2190 = vmatmul.mubr.bf16.gmra.mrb[136].mxu1 %v3815_v61  ;;  %3519 = vmatmul.mubr.bf16.gmra.mrb[136].mxu0 %v3816_v30 }
 0x133   :  { %v4554_v17 = vadd.f32 %v3157_v15, %v4466_v53  ;;  %2197 = vmatprep.mubr.bf16.mxu1 %v3817_v3  ;;  %3522 = vmatprep.mubr.bf16.mxu0 %v3819_v6 }
 0x135   :  { %v3158_v18 = vpop.f32.mrb[32].mxu1  ;;  %v3070_v62 = vpop.f32.mrb[32].mxu0 }
 0x136   :  { %v3159_v19 = vpop.f32.mrb[33].mxu1  ;;  %v3071_v22 = vpop.f32.mrb[33].mxu0 }
 0x137   :  { %v3160_v24 = vadd.f32 %v3159_v19, %v3158_v18  ;;  %v3161_v25 = vpop.f32.mrb[34].mxu1  ;;  %v3072_v26 = vadd.f32 %v3071_v22, %v3070_v62  ;;  %v3073_v27 = vpop.f32.mrb[34].mxu0 }
 0x138   :  { %v3162_v53 = vpop.f32.mrb[35].mxu1  ;;  %v3074_v31 = vpop.f32.mrb[35].mxu0 }
 0x139   :  { %v4563_v34 = vadd.f32 %v3160_v24, %v4474_v0  ;;  %v3163_v35 = vadd.f32 %v3162_v53, %v3161_v25  ;;  %v3075_v38 = vadd.f32 %v3074_v31, %v3073_v27 }
 0x13a   :  { %2198 = vmatmul.mubr.bf16.gmra.mrb[140].mxu1 %v3820_v5  ;;  %3523 = vmatmul.mubr.bf16.gmra.mrb[140].mxu0 %v3821_v46 }
 0x13b   :  { %v4566_v39 = vadd.f32 %v3163_v35, %v4485_v10 }
 0x13d   :  { %v3164_v40 = vpop.f32.mrb[36].mxu1  ;;  %v3076_v14 = vpop.f32.mrb[36].mxu0 }
 0x13e   :  { %v3165_v41 = vpop.f32.mrb[37].mxu1  ;;  %v3077_v42 = vpop.f32.mrb[37].mxu0 }
 0x13f   :  { %v3166_v21 = vadd.f32 %v3165_v41, %v3164_v40  ;;  %v3167_v45 = vpop.f32.mrb[38].mxu1  ;;  %v3078_v47 = vadd.f32 %v3077_v42, %v3076_v14  ;;  %v3079_v48 = vpop.f32.mrb[38].mxu0 }
 0x140   :  { %v3168_v49 = vpop.f32.mrb[39].mxu1  ;;  %v3080_v51 = vpop.f32.mrb[39].mxu0 }
 0x141   :  { %v4569_v0 = vadd.f32 %v3166_v21, %v4496_v23  ;;  %v3169_v56 = vadd.f32 %v3168_v49, %v3167_v45  ;;  %v3081_v57 = vadd.f32 %v3080_v51, %v3079_v48 }
 0x143   :  { %v4572_v58 = vadd.f32 %v3169_v56, %v4507_v32 }
 0x145   :  { %v3170_v10 = vpop.f32.mrb[40].mxu1  ;;  %v3082_v59 = vpop.f32.mrb[40].mxu0 }
 0x146   :  { %v3171_v61 = vpop.f32.mrb[41].mxu1  ;;  %v3083_v30 = vpop.f32.mrb[41].mxu0 }
 0x147   :  { %v3172_v63 = vadd.f32 %v3171_v61, %v3170_v10  ;;  %v3173_v1 = vpop.f32.mrb[42].mxu1  ;;  %v4574_v37 = vadd.f32 %v3083_v30, %v3082_v59  ;;  %v3085_v3 = vpop.f32.mrb[42].mxu0 }
 0x148   :  { %v3174_v6 = vpop.f32.mrb[43].mxu1  ;;  %v3086_v7 = vpop.f32.mrb[43].mxu0 }
 0x149   :  { %v4577_v9 = vadd.f32 %v3172_v63, %v4518_v43  ;;  %v3175_v23 = vadd.f32 %v3174_v6, %v3173_v1  ;;  %v3087_v15 = vadd.f32 %v3086_v7, %v3085_v3 }
 0x14b   :  { %v4580_v18 = vadd.f32 %v3175_v23, %v4529_v54 }
 0x14d   :  { %v3176_v32 = vpop.f32.mrb[44].mxu1  ;;  %v3088_v62 = vpop.f32.mrb[44].mxu0 }
 0x14e   :  { %v3177_v19 = vpop.f32.mrb[45].mxu1  ;;  %v3089_v22 = vpop.f32.mrb[45].mxu0 }
 0x14f   :  { %v3178_v5 = vadd.f32 %v3177_v19, %v3176_v32  ;;  %v3179_v46 = vpop.f32.mrb[46].mxu1  ;;  %v4582_v24 = vadd.f32 %v3089_v22, %v3088_v62  ;;  %v3091_v25 = vpop.f32.mrb[46].mxu0 }
 0x150   :  { %v3180_v27 = vpop.f32.mrb[47].mxu1  ;;  %v3092_v53 = vpop.f32.mrb[47].mxu0 }
 0x151   :  { %v4585_v31 = vadd.f32 %v3178_v5, %v4540_v2  ;;  %v3181_v43 = vadd.f32 %v3180_v27, %v3179_v46  ;;  %v4587_v35 = vadd.f32 %v3092_v53, %v3091_v25 }
 0x153   :  { %v4590_v54 = vadd.f32 %v3181_v43, %v4551_v16 }
 0x155   :  { %v3182_v40 = vpop.f32.mrb[48].mxu1  ;;  %v3246_v14 = vpop.f32.mrb[48].mxu0 }
 0x156   :  { %v3183_v41 = vpop.f32.mrb[49].mxu1  ;;  %v3247_v42 = vpop.f32.mrb[49].mxu0 }
 0x157   :  { %v3184_v21 = vadd.f32 %v3183_v41, %v3182_v40  ;;  %v3248_v45 = vadd.f32 %v3247_v42, %v3246_v14  ;;  %v3185_v48 = vpop.f32.mrb[50].mxu1  ;;  %v3249_v49 = vpop.f32.mrb[50].mxu0 }
 0x158   :  { %v3186_v51 = vpop.f32.mrb[51].mxu1  ;;  %v3250_v56 = vpop.f32.mrb[51].mxu0 }
 0x159   :  { %v4592_v10 = vadd.f32 %v3184_v21, %v3072_v26  ;;  %v4595_v2 = vadd.f32 %v3248_v45, %v4483_v8  ;;  %v3187_v59 = vadd.f32 %v3186_v51, %v3185_v48  ;;  %v3251_v61 = vadd.f32 %v3250_v56, %v3249_v49 }
 0x15b   :  { %v4597_v30 = vadd.f32 %v3187_v59, %v3075_v38  ;;  %v4600_v16 = vadd.f32 %v3251_v61, %v4488_v11 }
 0x15d   :  { %v3188_v63 = vpop.f32.mrb[52].mxu1  ;;  %v3252_v1 = vpop.f32.mrb[52].mxu0 }
 0x15e   :  { %v3189_v3 = vpop.f32.mrb[53].mxu1  ;;  %v3253_v6 = vpop.f32.mrb[53].mxu0 }
 0x15f   :  { %v3190_v7 = vadd.f32 %v3189_v3, %v3188_v63  ;;  %v3254_v23 = vadd.f32 %v3253_v6, %v3252_v1  ;;  %v3191_v32 = vpop.f32.mrb[54].mxu1  ;;  %v3255_v62 = vpop.f32.mrb[54].mxu0 }
 0x160   :  { %v3192_v26 = vpop.f32.mrb[55].mxu1  ;;  %v3256_v19 = vpop.f32.mrb[55].mxu0 }
 0x161   :  { %v4602_v22 = vadd.f32 %v3190_v7, %v3078_v47  ;;  %v4605_v8 = vadd.f32 %v3254_v23, %v4505_v29  ;;  %v3193_v38 = vadd.f32 %v3192_v26, %v3191_v32  ;;  %v3257_v5 = vadd.f32 %v3256_v19, %v3255_v62 }
 0x163   :  { %v4607_v46 = vadd.f32 %v3193_v38, %v3081_v57  ;;  %v4610_v11 = vadd.f32 %v3257_v5, %v4510_v33 }
 0x165   :  { %v3194_v25 = vpop.f32.mrb[56].mxu1  ;;  %v3258_v27 = vpop.f32.mrb[56].mxu0 }
 0x166   :  { %v3195_v53 = vpop.f32.mrb[57].mxu1  ;;  %v3259_v43 = vpop.f32.mrb[57].mxu0 }
 0x167   :  { %v3196_v40 = vadd.f32 %v3195_v53, %v3194_v25  ;;  %v3260_v14 = vadd.f32 %v3259_v43, %v3258_v27  ;;  %v3197_v41 = vpop.f32.mrb[58].mxu1  ;;  %v3261_v42 = vpop.f32.mrb[58].mxu0 }
 0x168   :  { %v3198_v47 = vpop.f32.mrb[59].mxu1  ;;  %v3262_v21 = vpop.f32.mrb[59].mxu0 }
 0x169   :  { %v4613_v29 = vadd.f32 %v3196_v40, %v4574_v37  ;;  %v4616_v45 = vadd.f32 %v3260_v14, %v4527_v50  ;;  %v3199_v57 = vadd.f32 %v3198_v47, %v3197_v41  ;;  %v3263_v48 = vadd.f32 %v3262_v21, %v3261_v42 }
 0x16b   :  { %v4618_v33 = vadd.f32 %v3199_v57, %v3087_v15  ;;  %v4621_v49 = vadd.f32 %v3263_v48, %v4532_v55 }
 0x16d   :  { %v3200_v51 = vpop.f32.mrb[60].mxu1  ;;  %v3264_v56 = vpop.f32.mrb[60].mxu0 }
 0x16e   :  { %v3201_v59 = vpop.f32.mrb[61].mxu1  ;;  %v3265_v61 = vpop.f32.mrb[61].mxu0 }
 0x16f   :  { %v3202_v63 = vadd.f32 %v3201_v59, %v3200_v51  ;;  %v3266_v1 = vadd.f32 %v3265_v61, %v3264_v56  ;;  %v3203_v3 = vpop.f32.mrb[62].mxu1  ;;  %v3267_v6 = vpop.f32.mrb[62].mxu0 }
 0x170   :  { %v3204_v37 = vpop.f32.mrb[63].mxu1  ;;  %v3268_v7 = vpop.f32.mrb[63].mxu0 }
 0x171   :  { %v4624_v50 = vadd.f32 %v3202_v63, %v4582_v24  ;;  %v4627_v23 = vadd.f32 %v3266_v1, %v4549_v13  ;;  %v3205_v15 = vadd.f32 %v3204_v37, %v3203_v3  ;;  %v3269_v32 = vadd.f32 %v3268_v7, %v3267_v6 }
 0x173   :  { %v4630_v55 = vadd.f32 %v3205_v15, %v4587_v35  ;;  %v4633_v62 = vadd.f32 %v3269_v32, %v4554_v17 }
 0x175   :  { %v3206_v26 = vpop.f32.mrb[64].mxu1  ;;  %v3270_v19 = vpop.f32.mrb[64].mxu0 }
 0x176   :  { %v3207_v38 = vpop.f32.mrb[65].mxu1  ;;  %v3271_v5 = vpop.f32.mrb[65].mxu0 }
 0x177   :  { %v3208_v25 = vadd.f32 %v3207_v38, %v3206_v26  ;;  %v3272_v27 = vadd.f32 %v3271_v5, %v3270_v19  ;;  %v3209_v53 = vpop.f32.mrb[66].mxu1  ;;  %v3273_v24 = vpop.f32.mrb[66].mxu0 }
 0x178   :  { %v3210_v43 = vpop.f32.mrb[67].mxu1  ;;  %v3274_v40 = vpop.f32.mrb[67].mxu0 }
 0x179   :  { %v4636_v13 = vadd.f32 %v3208_v25, %v4394_v60  ;;  %v4639_v14 = vadd.f32 %v3272_v27, %v4563_v34  ;;  %v3211_v35 = vadd.f32 %v3210_v43, %v3209_v53  ;;  %v3275_v41 = vadd.f32 %v3274_v40, %v3273_v24 }
 0x17b   :  { %v4642_v17 = vadd.f32 %v3211_v35, %v4404_v4  ;;  %v4645_v42 = vadd.f32 %v3275_v41, %v4566_v39 }
 0x17d   :  { %v3212_v47 = vpop.f32.mrb[68].mxu1  ;;  %v3276_v21 = vpop.f32.mrb[68].mxu0 }
 0x17e   :  { %v3213_v57 = vpop.f32.mrb[69].mxu1  ;;  %v3277_v48 = vpop.f32.mrb[69].mxu0 }
 0x17f   :  { %v3214_v51 = vadd.f32 %v3213_v57, %v3212_v47  ;;  %v3278_v56 = vadd.f32 %v3277_v48, %v3276_v21  ;;  %v3215_v59 = vpop.f32.mrb[70].mxu1  ;;  %v3279_v60 = vpop.f32.mrb[70].mxu0 }
 0x180   :  { %v3216_v61 = vpop.f32.mrb[71].mxu1  ;;  %v3280_v63 = vpop.f32.mrb[71].mxu0 }
 0x181   :  { %v4648_v34 = vadd.f32 %v3214_v51, %v4414_v12  ;;  %v4651_v1 = vadd.f32 %v3278_v56, %v4569_v0  ;;  %v3217_v4 = vadd.f32 %v3216_v61, %v3215_v59  ;;  %v3281_v3 = vadd.f32 %v3280_v63, %v3279_v60 }
 0x183   :  { %v4654_v39 = vadd.f32 %v3217_v4, %v4424_v20  ;;  %v4657_v6 = vadd.f32 %v3281_v3, %v4572_v58 }
 0x185   :  { %v3218_v37 = vpop.f32.mrb[72].mxu1  ;;  %v3282_v7 = vpop.f32.mrb[72].mxu0 }
 0x186   :  { %v3219_v15 = vpop.f32.mrb[73].mxu1  ;;  %v3283_v32 = vpop.f32.mrb[73].mxu0 }
 0x187   :  { %v3220_v26 = vadd.f32 %v3219_v15, %v3218_v37  ;;  %v3284_v19 = vadd.f32 %v3283_v32, %v3282_v7  ;;  %v3221_v38 = vpop.f32.mrb[74].mxu1  ;;  %v3285_v12 = vpop.f32.mrb[74].mxu0 }
 0x188   :  { %v3222_v5 = vpop.f32.mrb[75].mxu1  ;;  %v3286_v25 = vpop.f32.mrb[75].mxu0 }
 0x189   :  { %v4660_v0 = vadd.f32 %v3220_v26, %v4434_v28  ;;  %v4663_v27 = vadd.f32 %v3284_v19, %v4577_v9  ;;  %v3223_v20 = vadd.f32 %v3222_v5, %v3221_v38  ;;  %v3287_v53 = vadd.f32 %v3286_v25, %v3285_v12 }
 0x18b   :  { %v4666_v58 = vadd.f32 %v3223_v20, %v4444_v36  ;;  %v4669_v24 = vadd.f32 %v3287_v53, %v4580_v18 }
 0x18d   :  { %v3224_v43 = vpop.f32.mrb[76].mxu1  ;;  %v3288_v40 = vpop.f32.mrb[76].mxu0 }
 0x18e   :  { %v3225_v35 = vpop.f32.mrb[77].mxu1  ;;  %v3289_v41 = vpop.f32.mrb[77].mxu0 }
 0x18f   :  { %v3226_v47 = vadd.f32 %v3225_v35, %v3224_v43  ;;  %v3290_v21 = vadd.f32 %v3289_v41, %v3288_v40  ;;  %v3227_v57 = vpop.f32.mrb[78].mxu1  ;;  %v3291_v28 = vpop.f32.mrb[78].mxu0 }
 0x190   :  { %v3228_v48 = vpop.f32.mrb[79].mxu1  ;;  %v3292_v51 = vpop.f32.mrb[79].mxu0 }
 0x191   :  { %v4672_v9 = vadd.f32 %v3226_v47, %v4454_v44  ;;  %v4675_v56 = vadd.f32 %v3290_v21, %v4585_v31  ;;  %v3229_v36 = vadd.f32 %v3228_v48, %v3227_v57  ;;  %v3293_v59 = vadd.f32 %v3292_v51, %v3291_v28 }
 0x193   :  { %v4678_v18 = vadd.f32 %v3229_v36, %v4464_v52  ;;  %v4681_v60 = vadd.f32 %v3293_v59, %v4590_v54 }
 0x195   :  { %v3294_v61 = vpop.f32.mrb[80].mxu0  ;;  %v3358_v63 = vpop.f32.mrb[80].mxu1 }
 0x196   :  { %v3295_v4 = vpop.f32.mrb[81].mxu0  ;;  %v3359_v3 = vpop.f32.mrb[81].mxu1 }
 0x197   :  { %v3296_v37 = vadd.f32 %v3295_v4, %v3294_v61  ;;  %v3360_v7 = vadd.f32 %v3359_v3, %v3358_v63  ;;  %v3297_v15 = vpop.f32.mrb[82].mxu0  ;;  %v3361_v44 = vpop.f32.mrb[82].mxu1 }
 0x198   :  { %v3298_v32 = vpop.f32.mrb[83].mxu0  ;;  %v3362_v26 = vpop.f32.mrb[83].mxu1 }
 0x199   :  { %v4684_v31 = vadd.f32 %v3296_v37, %v4592_v10  ;;  %v3299_v19 = vadd.f32 %v3298_v32, %v3297_v15  ;;  %v3363_v38 = vadd.f32 %v3362_v26, %v3361_v44  ;;  %v4687_v52 = vadd.f32 %v3360_v7, %v4595_v2 }
 0x19b   :  { %v4690_v54 = vadd.f32 %v3299_v19, %v4597_v30  ;;  %v4693_v12 = vadd.f32 %v3363_v38, %v4600_v16 }
 0x19d   :  { %v3300_v5 = vpop.f32.mrb[84].mxu0  ;;  %v3364_v25 = vpop.f32.mrb[84].mxu1 }
 0x19e   :  { %v3301_v20 = vpop.f32.mrb[85].mxu0  ;;  %v3365_v53 = vpop.f32.mrb[85].mxu1 }
 0x19f   :  { %v3302_v43 = vadd.f32 %v3301_v20, %v3300_v5  ;;  %v3366_v40 = vadd.f32 %v3365_v53, %v3364_v25  ;;  %v3303_v35 = vpop.f32.mrb[86].mxu0  ;;  %v3367_v10 = vpop.f32.mrb[86].mxu1 }
 0x1a0   :  { %v3304_v41 = vpop.f32.mrb[87].mxu0  ;;  %v3368_v47 = vpop.f32.mrb[87].mxu1 }
 0x1a1   :  { %v4696_v21 = vadd.f32 %v3302_v43, %v4602_v22  ;;  %v3305_v2 = vadd.f32 %v3304_v41, %v3303_v35  ;;  %v3369_v57 = vadd.f32 %v3368_v47, %v3367_v10  ;;  %v4699_v30 = vadd.f32 %v3366_v40, %v4605_v8 }
 0x1a3   :  { %v4702_v16 = vadd.f32 %v3305_v2, %v4607_v46  ;;  %v4705_v28 = vadd.f32 %v3369_v57, %v4610_v11 }
 0x1a5   :  { %v3306_v48 = vpop.f32.mrb[88].mxu0  ;;  %v3370_v51 = vpop.f32.mrb[88].mxu1 }
 0x1a6   :  { %v3307_v36 = vpop.f32.mrb[89].mxu0  ;;  %v3371_v59 = vpop.f32.mrb[89].mxu1 }
 0x1a7   :  { %v3308_v61 = vadd.f32 %v3307_v36, %v3306_v48  ;;  %v3372_v63 = vadd.f32 %v3371_v59, %v3370_v51  ;;  %v3309_v4 = vpop.f32.mrb[90].mxu0  ;;  %v3373_v22 = vpop.f32.mrb[90].mxu1 }
 0x1a8   :  { %v3310_v3 = vpop.f32.mrb[91].mxu0  ;;  %v3374_v37 = vpop.f32.mrb[91].mxu1 }
 0x1a9   :  { %v4708_v7 = vadd.f32 %v3308_v61, %v4613_v29  ;;  %v3311_v8 = vadd.f32 %v3310_v3, %v3309_v4  ;;  %v3375_v15 = vadd.f32 %v3374_v37, %v3373_v22  ;;  %v4711_v46 = vadd.f32 %v3372_v63, %v4616_v45 }
 0x1ab   :  { %v4714_v11 = vadd.f32 %v3311_v8, %v4618_v33  ;;  %v4717_v44 = vadd.f32 %v3375_v15, %v4621_v49 }
 0x1ad   :  { %v3312_v32 = vpop.f32.mrb[92].mxu0  ;;  %v3376_v26 = vpop.f32.mrb[92].mxu1 }
 0x1ae   :  { %v3313_v19 = vpop.f32.mrb[93].mxu0  ;;  %v3377_v38 = vpop.f32.mrb[93].mxu1 }
 0x1af   :  { %v3314_v5 = vadd.f32 %v3313_v19, %v3312_v32  ;;  %v3378_v25 = vadd.f32 %v3377_v38, %v3376_v26  ;;  %v3315_v20 = vpop.f32.mrb[94].mxu0  ;;  %v3379_v29 = vpop.f32.mrb[94].mxu1 }
 0x1b0   :  { %v3316_v53 = vpop.f32.mrb[95].mxu0  ;;  %v3380_v43 = vpop.f32.mrb[95].mxu1 }
 0x1b1   :  { %v4720_v40 = vadd.f32 %v3314_v5, %v4624_v50  ;;  %v3317_v45 = vadd.f32 %v3316_v53, %v3315_v20  ;;  %v3381_v35 = vadd.f32 %v3380_v43, %v3379_v29  ;;  %v4723_v33 = vadd.f32 %v3378_v25, %v4627_v23 }
 0x1b3   :  { %v4726_v49 = vadd.f32 %v3317_v45, %v4630_v55  ;;  %v4729_v10 = vadd.f32 %v3381_v35, %v4633_v62 }
 0x1b5   :  { %v3318_v41 = vpop.f32.mrb[96].mxu0  ;;  %v3382_v47 = vpop.f32.mrb[96].mxu1 }
 0x1b6   :  { %v3319_v2 = vpop.f32.mrb[97].mxu0  ;;  %v3383_v57 = vpop.f32.mrb[97].mxu1 }
 0x1b7   :  { %v3320_v48 = vadd.f32 %v3319_v2, %v3318_v41  ;;  %v3384_v51 = vadd.f32 %v3383_v57, %v3382_v47  ;;  %v3321_v36 = vpop.f32.mrb[98].mxu0  ;;  %v3385_v50 = vpop.f32.mrb[98].mxu1 }
 0x1b8   :  { %v3322_v59 = vpop.f32.mrb[99].mxu0  ;;  %v3386_v61 = vpop.f32.mrb[99].mxu1 }
 0x1b9   :  { %v4732_v63 = vadd.f32 %v3320_v48, %v4636_v13  ;;  %v3323_v23 = vadd.f32 %v3322_v59, %v3321_v36  ;;  %v3387_v4 = vadd.f32 %v3386_v61, %v3385_v50  ;;  %v4735_v55 = vadd.f32 %v3384_v51, %v4639_v14 }
 0x1bb   :  { %v4738_v62 = vadd.f32 %v3323_v23, %v4642_v17  ;;  %v4741_v22 = vadd.f32 %v3387_v4, %v4645_v42 }
 0x1bd   :  { %v3324_v3 = vpop.f32.mrb[100].mxu0  ;;  %v3388_v37 = vpop.f32.mrb[100].mxu1 }
 0x1be   :  { %v3325_v8 = vpop.f32.mrb[101].mxu0  ;;  %v3389_v15 = vpop.f32.mrb[101].mxu1 }
 0x1bf   :  { %v3326_v32 = vadd.f32 %v3325_v8, %v3324_v3  ;;  %v3390_v26 = vadd.f32 %v3389_v15, %v3388_v37  ;;  %v3327_v19 = vpop.f32.mrb[102].mxu0  ;;  %v3391_v13 = vpop.f32.mrb[102].mxu1 }
 0x1c0   :  { %v3328_v38 = vpop.f32.mrb[103].mxu0  ;;  %v3392_v5 = vpop.f32.mrb[103].mxu1 }
 0x1c1   :  { %v4744_v25 = vadd.f32 %v3326_v32, %v4648_v34  ;;  %v3329_v14 = vadd.f32 %v3328_v38, %v3327_v19  ;;  %v3393_v20 = vadd.f32 %v3392_v5, %v3391_v13  ;;  %v4747_v17 = vadd.f32 %v3390_v26, %v4651_v1 }
 0x1c3   :  { %v4750_v42 = vadd.f32 %v3329_v14, %v4654_v39  ;;  %v4753_v29 = vadd.f32 %v3393_v20, %v4657_v6 }
 0x1c5   :  { %v3330_v53 = vpop.f32.mrb[104].mxu0  ;;  %v3394_v43 = vpop.f32.mrb[104].mxu1 }
 0x1c6   :  { %v3331_v45 = vpop.f32.mrb[105].mxu0  ;;  %v3395_v35 = vpop.f32.mrb[105].mxu1 }
 0x1c7   :  { %v3332_v41 = vadd.f32 %v3331_v45, %v3330_v53  ;;  %v3396_v47 = vadd.f32 %v3395_v35, %v3394_v43  ;;  %v3333_v2 = vpop.f32.mrb[106].mxu0  ;;  %v3397_v34 = vpop.f32.mrb[106].mxu1 }
 0x1c8   :  { %v3334_v57 = vpop.f32.mrb[107].mxu0  ;;  %v3398_v48 = vpop.f32.mrb[107].mxu1 }
 0x1c9   :  { %v4756_v51 = vadd.f32 %v3332_v41, %v4660_v0  ;;  %v3335_v1 = vadd.f32 %v3334_v57, %v3333_v2  ;;  %v3399_v36 = vadd.f32 %v3398_v48, %v3397_v34  ;;  %v4759_v39 = vadd.f32 %v3396_v47, %v4663_v27 }
 0x1cb   :  { %v4762_v6 = vadd.f32 %v3335_v1, %v4666_v58  ;;  %v4765_v50 = vadd.f32 %v3399_v36, %v4669_v24 }
 0x1cd   :  { %v3336_v59 = vpop.f32.mrb[108].mxu0  ;;  %v3400_v61 = vpop.f32.mrb[108].mxu1 }
 0x1ce   :  { %v3337_v23 = vpop.f32.mrb[109].mxu0  ;;  %v3401_v4 = vpop.f32.mrb[109].mxu1 }
 0x1cf   :  { %v3338_v3 = vadd.f32 %v3337_v23, %v3336_v59  ;;  %v3402_v37 = vadd.f32 %v3401_v4, %v3400_v61  ;;  %v3339_v8 = vpop.f32.mrb[110].mxu0  ;;  %v3403_v0 = vpop.f32.mrb[110].mxu1 }
 0x1d0   :  { %v3340_v15 = vpop.f32.mrb[111].mxu0  ;;  %v3404_v32 = vpop.f32.mrb[111].mxu1 }
 0x1d1   :  { %v4768_v26 = vadd.f32 %v3338_v3, %v4672_v9  ;;  %v3341_v27 = vadd.f32 %v3340_v15, %v3339_v8  ;;  %v3405_v19 = vadd.f32 %v3404_v32, %v3403_v0  ;;  %v4771_v58 = vadd.f32 %v3402_v37, %v4675_v56  ;;  %v4783_v9 = vld [vmem:[%s4910_s2] ss:$0 sm:$0xff] }
 0x1d3   :  { %v4774_v24 = vadd.f32 %v3341_v27, %v4678_v18  ;;  %v4777_v13 = vadd.f32 %v3405_v19, %v4681_v60 }
 0x1d5   :  { %v3406_v38 = vpop.f32.mrb[112].mxu1  ;;  %v3496_v5 = vpop.f32.mrb[112].mxu0 }
 0x1d6   :  { %v2249_v14 = vadd.f32 %v3496_v5, %v4699_v30  ;;  %v3407_v20 = vpop.f32.mrb[113].mxu1  ;;  %v2240_v53 = vpop.f32.mrb[113].mxu0 }
 0x1d7   :  { %v3408_v43 = vadd.f32 %v3407_v20, %v3406_v38  ;;  %v2241_v56 = vadd.f32 %v2240_v53, %v4687_v52  ;;  %v3409_v45 = vpop.f32.mrb[114].mxu1  ;;  %v3497_v18 = vpop.f32.mrb[114].mxu0 }
 0x1d8   :  { %v2252_v35 = vadd.f32 %v3497_v18, %v4705_v28  ;;  %v3410_v60 = vpop.f32.mrb[115].mxu1  ;;  %v2243_v41 = vpop.f32.mrb[115].mxu0  ;;  %v2369_v34 = vadd.f32 %v4783_v9, %v2249_v14 }
 0x1d9   :  { %v3411_v47 = vadd.f32 %v3410_v60, %v3409_v45  ;;  %v2244_v2 = vadd.f32 %v2243_v41, %v4693_v12  ;;  %v4789_v30 = vadd.f32 %v3408_v43, %v4684_v31  ;;  %v2367_v48 = vadd.f32 %v4783_v9, %v2241_v56 }
 0x1da   :  { %v2370_v57 = vadd.f32 %v4783_v9, %v2252_v35 }
 0x1db   :  { %v2368_v52 = vadd.f32 %v4783_v9, %v2244_v2  ;;  %v4796_v1 = vadd.f32 %v3411_v47, %v4690_v54 }
 0x1dc   :  { %v2919_v28 = vpack.c.bf16 %v2370_v57, %v2369_v34 }
 0x1dd   :  { %v2914_v36 = vpack.c.bf16 %v2368_v52, %v2367_v48  ;;  %v3412_v59 = vpop.f32.mrb[116].mxu1  ;;  %v3500_v61 = vpop.f32.mrb[116].mxu0 }
 0x1de   :  { %2991 = vst [vmem:[%s4911_s3 + $0x8] sm:$0xff] %v2919_v28   ;;  %v2265_v31 = vadd.f32 %v3500_v61, %v4723_v33  ;;  %v3413_v12 = vpop.f32.mrb[117].mxu1  ;;  %v2256_v23 = vpop.f32.mrb[117].mxu0 }
 0x1df   :  { %2915 = vst [vmem:[%s4911_s3] sm:$0xff] %v2914_v36   ;;  %v3414_v4 = vadd.f32 %v3413_v12, %v3412_v59  ;;  %v2257_v54 = vadd.f32 %v2256_v23, %v4711_v46  ;;  %v3415_v3 = vpop.f32.mrb[118].mxu1  ;;  %v3501_v37 = vpop.f32.mrb[118].mxu0 }
 0x1e0   :  { %v2268_v8 = vadd.f32 %v3501_v37, %v4729_v10  ;;  %v3416_v0 = vpop.f32.mrb[119].mxu1  ;;  %v2259_v15 = vpop.f32.mrb[119].mxu0  ;;  %v2373_v19 = vadd.f32 %v4783_v9, %v2265_v31 }
 0x1e1   :  { %v3417_v32 = vadd.f32 %v3416_v0, %v3415_v3  ;;  %v2260_v27 = vadd.f32 %v2259_v15, %v4717_v44  ;;  %v2152_v33 = vadd.f32 %v3414_v4, %v4696_v21  ;;  %v2371_v5 = vadd.f32 %v4783_v9, %v2257_v54 }
 0x1e2   :  { %v2374_v38 = vadd.f32 %v4783_v9, %v2268_v8 }
 0x1e3   :  { %v2372_v14 = vadd.f32 %v4783_v9, %v2260_v27  ;;  %v2155_v46 = vadd.f32 %v3417_v32, %v4702_v16 }
 0x1e4   :  { %v2929_v20 = vpack.c.bf16 %v2374_v38, %v2373_v19 }
 0x1e5   :  { %v2924_v53 = vpack.c.bf16 %v2372_v14, %v2371_v5  ;;  %v3418_v10 = vpop.f32.mrb[120].mxu1  ;;  %v3504_v43 = vpop.f32.mrb[120].mxu0 }
 0x1e6   :  { %2993 = vst [vmem:[%s4911_s3 + $0x18] sm:$0xff] %v2929_v20   ;;  %v2281_v21 = vadd.f32 %v3504_v43, %v4747_v17  ;;  %v3419_v44 = vpop.f32.mrb[121].mxu1  ;;  %v2272_v56 = vpop.f32.mrb[121].mxu0 }
 0x1e7   :  { %2992 = vst [vmem:[%s4911_s3 + $0x10] sm:$0xff] %v2924_v53   ;;  %v3420_v45 = vadd.f32 %v3419_v44, %v3418_v10  ;;  %v2273_v18 = vadd.f32 %v2272_v56, %v4735_v55  ;;  %v3421_v16 = vpop.f32.mrb[122].mxu1  ;;  %v3505_v35 = vpop.f32.mrb[122].mxu0 }
 0x1e8   :  { %v2284_v60 = vadd.f32 %v3505_v35, %v4753_v29  ;;  %v3422_v41 = vpop.f32.mrb[123].mxu1  ;;  %v2275_v47 = vpop.f32.mrb[123].mxu0  ;;  %v2377_v57 = vadd.f32 %v4783_v9, %v2281_v21 }
 0x1e9   :  { %v3423_v2 = vadd.f32 %v3422_v41, %v3421_v16  ;;  %v2276_v34 = vadd.f32 %v2275_v47, %v4741_v22  ;;  %v4825_v17 = vadd.f32 %v3420_v45, %v4708_v7  ;;  %v2375_v52 = vadd.f32 %v4783_v9, %v2273_v18 }
 0x1ea   :  { %v2378_v48 = vadd.f32 %v4783_v9, %v2284_v60 }
 0x1eb   :  { %v2376_v55 = vadd.f32 %v4783_v9, %v2276_v34  ;;  %v4832_v28 = vadd.f32 %v3423_v2, %v4714_v11 }
 0x1ec   :  { %v2939_v29 = vpack.c.bf16 %v2378_v48, %v2377_v57 }
 0x1ed   :  { %v2934_v36 = vpack.c.bf16 %v2376_v55, %v2375_v52  ;;  %v3424_v59 = vpop.f32.mrb[124].mxu1  ;;  %v3508_v61 = vpop.f32.mrb[124].mxu0 }
 0x1ee   :  { %2995 = vst [vmem:[%s4911_s3 + $0x28] sm:$0xff] %v2939_v29   ;;  %v2297_v7 = vadd.f32 %v3508_v61, %v4771_v58  ;;  %v3425_v22 = vpop.f32.mrb[125].mxu1  ;;  %v2288_v31 = vpop.f32.mrb[125].mxu0 }
 0x1ef   :  { %2994 = vst [vmem:[%s4911_s3 + $0x20] sm:$0xff] %v2934_v36   ;;  %v3426_v12 = vadd.f32 %v3425_v22, %v3424_v59  ;;  %v2289_v11 = vadd.f32 %v2288_v31, %v4759_v39  ;;  %v3427_v23 = vpop.f32.mrb[126].mxu1  ;;  %v3509_v4 = vpop.f32.mrb[126].mxu0 }
 0x1f0   :  { %v2300_v54 = vadd.f32 %v3509_v4, %v4777_v13  ;;  %v3428_v3 = vpop.f32.mrb[127].mxu1  ;;  %v2291_v37 = vpop.f32.mrb[127].mxu0  ;;  %v2381_v15 = vadd.f32 %v4783_v9, %v2297_v7 }
 0x1f1   :  { %v3429_v8 = vadd.f32 %v3428_v3, %v3427_v23  ;;  %v2292_v0 = vadd.f32 %v2291_v37, %v4765_v50  ;;  %v2168_v58 = vadd.f32 %v3426_v12, %v4720_v40  ;;  %v2379_v27 = vadd.f32 %v4783_v9, %v2289_v11 }
 0x1f2   :  { %v2382_v32 = vadd.f32 %v4783_v9, %v2300_v54 }
 0x1f3   :  { %v2380_v19 = vadd.f32 %v4783_v9, %v2292_v0  ;;  %v2171_v39 = vadd.f32 %v3429_v8, %v4726_v49 }
 0x1f4   :  { %v2949_v38 = vpack.c.bf16 %v2382_v32, %v2381_v15 }
 0x1f5   :  { %v2944_v5 = vpack.c.bf16 %v2380_v19, %v2379_v27  ;;  %v3430_v13 = vpop.f32.mrb[128].mxu1  ;;  %v3512_v14 = vpop.f32.mrb[128].mxu0 }
 0x1f6   :  { %2997 = vst [vmem:[%s4911_s3 + $0x38] sm:$0xff] %v2949_v38   ;;  %v2313_v50 = vadd.f32 %v3512_v14, %v2152_v33  ;;  %v3431_v40 = vpop.f32.mrb[129].mxu1  ;;  %v2304_v20 = vpop.f32.mrb[129].mxu0 }
 0x1f7   :  { %2996 = vst [vmem:[%s4911_s3 + $0x30] sm:$0xff] %v2944_v5   ;;  %v3432_v53 = vadd.f32 %v3431_v40, %v3430_v13  ;;  %v2305_v10 = vadd.f32 %v2304_v20, %v4789_v30  ;;  %v3433_v43 = vpop.f32.mrb[130].mxu1  ;;  %v3513_v49 = vpop.f32.mrb[130].mxu0 }
 0x1f8   :  { %v2316_v21 = vadd.f32 %v3513_v49, %v2155_v46  ;;  %v3434_v44 = vpop.f32.mrb[131].mxu1  ;;  %v2307_v56 = vpop.f32.mrb[131].mxu0  ;;  %v2385_v33 = vadd.f32 %v4783_v9, %v2313_v50 }
 0x1f9   :  { %v3435_v45 = vadd.f32 %v3434_v44, %v3433_v43  ;;  %v2308_v18 = vadd.f32 %v2307_v56, %v4796_v1  ;;  %v2176_v16 = vadd.f32 %v3432_v53, %v4732_v63  ;;  %v2383_v60 = vadd.f32 %v4783_v9, %v2305_v10 }
 0x1fa   :  { %v2386_v35 = vadd.f32 %v4783_v9, %v2316_v21 }
 0x1fb   :  { %v2384_v41 = vadd.f32 %v4783_v9, %v2308_v18  ;;  %v2179_v30 = vadd.f32 %v3435_v45, %v4738_v62 }
 0x1fc   :  { %v2959_v47 = vpack.c.bf16 %v2386_v35, %v2385_v33 }
 0x1fd   :  { %v2954_v2 = vpack.c.bf16 %v2384_v41, %v2383_v60  ;;  %v3436_v46 = vpop.f32.mrb[132].mxu1  ;;  %v3516_v34 = vpop.f32.mrb[132].mxu0 }
 0x1fe   :  { %2999 = vst [vmem:[%s4911_s3 + $0x48] sm:$0xff] %v2959_v47   ;;  %v2329_v1 = vadd.f32 %v3516_v34, %v2168_v58  ;;  %v3437_v63 = vpop.f32.mrb[133].mxu1  ;;  %v2320_v57 = vpop.f32.mrb[133].mxu0 }
 0x1ff   :  { %2998 = vst [vmem:[%s4911_s3 + $0x40] sm:$0xff] %v2954_v2   ;;  %v3438_v48 = vadd.f32 %v3437_v63, %v3436_v46  ;;  %v2321_v52 = vadd.f32 %v2320_v57, %v4825_v17  ;;  %v3439_v55 = vpop.f32.mrb[134].mxu1  ;;  %v3517_v62 = vpop.f32.mrb[134].mxu0 }
 0x200   :  { %v2332_v29 = vadd.f32 %v3517_v62, %v2171_v39  ;;  %v3440_v36 = vpop.f32.mrb[135].mxu1  ;;  %v2323_v59 = vpop.f32.mrb[135].mxu0  ;;  %v2389_v31 = vadd.f32 %v4783_v9, %v2329_v1 }
 0x201   :  { %v3441_v61 = vadd.f32 %v3440_v36, %v3439_v55  ;;  %v2324_v7 = vadd.f32 %v2323_v59, %v4832_v28  ;;  %v2184_v22 = vadd.f32 %v3438_v48, %v4744_v25  ;;  %v2387_v11 = vadd.f32 %v4783_v9, %v2321_v52 }
 0x202   :  { %v2390_v12 = vadd.f32 %v4783_v9, %v2332_v29 }
 0x203   :  { %v2388_v23 = vadd.f32 %v4783_v9, %v2324_v7  ;;  %v2187_v17 = vadd.f32 %v3441_v61, %v4750_v42 }
 0x204   :  { %v2969_v4 = vpack.c.bf16 %v2390_v12, %v2389_v31 }
 0x205   :  { %v2964_v54 = vpack.c.bf16 %v2388_v23, %v2387_v11  ;;  %v3442_v3 = vpop.f32.mrb[136].mxu1  ;;  %v3520_v37 = vpop.f32.mrb[136].mxu0 }
 0x206   :  { %3001 = vst [vmem:[%s4911_s3 + $0x58] sm:$0xff] %v2969_v4   ;;  %v2345_v28 = vadd.f32 %v3520_v37, %v2184_v22  ;;  %v3443_v25 = vpop.f32.mrb[137].mxu1  ;;  %v2336_v8 = vpop.f32.mrb[137].mxu0 }
 0x207   :  { %3000 = vst [vmem:[%s4911_s3 + $0x50] sm:$0xff] %v2964_v54   ;;  %v3444_v0 = vadd.f32 %v3443_v25, %v3442_v3  ;;  %v2337_v58 = vadd.f32 %v2336_v8, %v2176_v16  ;;  %v3445_v15 = vpop.f32.mrb[138].mxu1  ;;  %v3521_v32 = vpop.f32.mrb[138].mxu0 }
 0x208   :  { %v2348_v42 = vadd.f32 %v3521_v32, %v2187_v17  ;;  %v3446_v27 = vpop.f32.mrb[139].mxu1  ;;  %v2339_v19 = vpop.f32.mrb[139].mxu0  ;;  %v2393_v13 = vadd.f32 %v4783_v9, %v2345_v28 }
 0x209   :  { %v3447_v39 = vadd.f32 %v3446_v27, %v3445_v15  ;;  %v2340_v38 = vadd.f32 %v2339_v19, %v2179_v30  ;;  %v2192_v5 = vadd.f32 %v3444_v0, %v4756_v51  ;;  %v2391_v50 = vadd.f32 %v4783_v9, %v2337_v58 }
 0x20a   :  { %v2394_v14 = vadd.f32 %v4783_v9, %v2348_v42 }
 0x20b   :  { %v2392_v40 = vadd.f32 %v4783_v9, %v2340_v38  ;;  %v2195_v20 = vadd.f32 %v3447_v39, %v4762_v6 }
 0x20c   :  { %v2979_v53 = vpack.c.bf16 %v2394_v14, %v2393_v13 }
 0x20d   :  { %v2974_v10 = vpack.c.bf16 %v2392_v40, %v2391_v50  ;;  %v3448_v43 = vpop.f32.mrb[140].mxu1  ;;  %v3524_v49 = vpop.f32.mrb[140].mxu0 }
 0x20e   :  { %3003 = vst [vmem:[%s4911_s3 + $0x68] sm:$0xff] %v2979_v53   ;;  %v3449_v21 = vpop.f32.mrb[141].mxu1  ;;  %v2352_v51 = vpop.f32.mrb[141].mxu0 }
 0x20f   :  { %3002 = vst [vmem:[%s4911_s3 + $0x60] sm:$0xff] %v2974_v10   ;;  %v3450_v44 = vadd.f32 %v3449_v21, %v3448_v43  ;;  %v2353_v56 = vadd.f32 %v2352_v51, %v2192_v5  ;;  %v3451_v45 = vpop.f32.mrb[142].mxu1  ;;  %v3525_v18 = vpop.f32.mrb[142].mxu0 }
 0x210   :  { %v3452_v16 = vpop.f32.mrb[143].mxu1  ;;  %v2355_v6 = vpop.f32.mrb[143].mxu0 }
 0x211   :  { %v2200_v33 = vadd.f32 %v3450_v44, %v4768_v26  ;;  %v3453_v35 = vadd.f32 %v3452_v16, %v3451_v45  ;;  %v2356_v60 = vadd.f32 %v2355_v6, %v2195_v20  ;;  %v2395_v30 = vadd.f32 %v4783_v9, %v2353_v56 }
 0x213   :  { %v2361_v41 = vadd.f32 %v3524_v49, %v2200_v33  ;;  %v2203_v47 = vadd.f32 %v3453_v35, %v4774_v24  ;;  %v2396_v2 = vadd.f32 %v4783_v9, %v2356_v60 }
 0x215   :  { %v2364_v46 = vadd.f32 %v3525_v18, %v2203_v47  ;;  %v2984_v34 = vpack.c.bf16 %v2396_v2, %v2395_v30  ;;  %v2397_v1 = vadd.f32 %v4783_v9, %v2361_v41 }
 0x217   :  { %v2398_v63 = vadd.f32 %v4783_v9, %v2364_v46  ;;  %3004 = vst [vmem:[%s4911_s3 + $0x70] sm:$0xff] %v2984_v34  }
 0x219   :  { %v2989_v26 = vpack.c.bf16 %v2398_v63, %v2397_v1 }
 0x21b   :  { %3005 = vst [vmem:[%s4911_s3 + $0x78] sm:$0xff] %v2989_v26  }

</bundles_post_ra>
